<compile_context>
chip_gen: v7x
topology: tpu7x:2x2x1
jax: 0.10.0
libtpu: 0.0.40
codegen_flags: <defaults>
</compile_context>

<pallas_src>
import functools
import math

import jax
import jax.numpy as jnp
from jax.experimental import pallas as pl
from jax.experimental.pallas import tpu as pltpu


def _relu(x):
    return jnp.maximum(x, 0.0)


def _round_up(x, m):
    return ((x + m - 1) // m) * m


def butd_kernel(k_actual,
                v_ref, q_ref,
                wvp_ref, bvp_ref,      # v_proj : FCNet([Dv, Hp])           (bf16 / f32)
                wq_ref, bq_ref,        # fused q_proj|q_net : [Dq, 2Hp]     (bf16 / f32)
                wl_ref, bl_ref,        # linear : FCNet([Hp, 1]) as [1,Hp] / [1,1]
                wvn_ref, bvn_ref,      # v_net  : FCNet([Dv, Hp])           (bf16 / f32)
                joint_ref, att_ref):
    TB, Kp, Dv = v_ref.shape
    Hp = wvp_ref.shape[1]

    v = v_ref[...]                                          # [TB, Kp, Dv] bf16
    q = q_ref[...]                                          # [TB, Dq]     bf16

    # ---- v projection: one [TB*Kp, Dv] x [Dv, Hp] MXU matmul ----
    v2d = v.reshape(TB * Kp, Dv)                            # Kp is sublane-aligned -> free
    v_proj = _relu(
        jnp.dot(v2d, wvp_ref[...], preferred_element_type=jnp.float32)
        + bvp_ref[...])                                     # [TB*Kp, Hp] f32
    v_proj = v_proj.reshape(TB, Kp, Hp)

    # ---- fused q projections: q @ [wqp | wqn] in a single matmul ----
    q_both = _relu(
        jnp.dot(q, wq_ref[...], preferred_element_type=jnp.float32)
        + bq_ref[...])                                      # [TB, 2*Hp] f32
    q_proj = q_both[:, :Hp]                                 # lane-aligned view
    q_repr = q_both[:, Hp:]                                 # lane-aligned view

    # ---- logits: fold wl into q_proj, then lane-reduce over Hp ----
    # TODO(synk): nn.Dropout(0.2) is identity at inference time (eval mode).
    qw = q_proj * wl_ref[...]                               # [TB, Hp]
    logits = _relu(jnp.sum(v_proj * qw[:, None, :], axis=-1)
                   + bl_ref[...])                           # [TB, Kp] (K on lanes)

    # ---- mask padded K slots so they get exactly zero attention ----
    if k_actual < Kp:
        kmask = jax.lax.broadcasted_iota(jnp.int32, (TB, Kp), 1) < k_actual
        logits = jnp.where(kmask, logits, -jnp.inf)

    # ---- softmax over K (lane-dense, f32; exact EUP reciprocal) ----
    m = jnp.max(logits, axis=-1, keepdims=True)             # [TB, 1]
    e = jnp.exp(logits - m)                                 # [TB, Kp]
    denom = jnp.sum(e, axis=-1, keepdims=True)              # [TB, 1]
    att = e * pl.reciprocal(denom, approx=False)            # [TB, Kp]

    # ---- attended visual feature: stays on VPU/XLU (f32 accumulation) ----
    v_emb = jnp.sum(att[:, :, None] * v.astype(jnp.float32), axis=1)   # [TB, Dv]

    # ---- joint embedding ----
    v_repr = _relu(
        jnp.dot(v_emb.astype(wvn_ref.dtype), wvn_ref[...],
                preferred_element_type=jnp.float32)
        + bvn_ref[...])                                     # [TB, Hp]

    joint_ref[...] = (q_repr * v_repr).astype(joint_ref.dtype)
    att_ref[...] = att.astype(att_ref.dtype)


def _tpu_vmem_capacity_bytes():
    try:
        return int(pltpu.get_tpu_info().vmem_capacity_bytes)
    except Exception:
        return 64 * 1024 * 1024        # conservative (v7x per-TC)


def _default_batch_tile():
    # v5e: 128-row MXU; v6e / v7x: 256-row MXU.
    try:
        kind = jax.devices()[0].device_kind.lower()
    except Exception:
        kind = ""
    return 128 if "v5" in kind else 256


def _pad_cols(w, cols):
    pad = cols - w.shape[1]
    return w if pad == 0 else jnp.pad(w, ((0, 0), (0, pad)))


def butd_forward(v, q, params, *, batch_tile=None,
                 weight_dtype=jnp.bfloat16, stream_dtype=jnp.bfloat16):
    """v: [B, K, Dv] f32, q: [B, Dq] f32 -> (joint_emb [B, H], att [B, K, 1])."""
    B, K, Dv = v.shape
    Dq = q.shape[1]
    H = params["wvp"].shape[1]

    # Sublane / lane alignment targets.
    k_align = 8 if jnp.dtype(stream_dtype).itemsize == 4 else 16
    Kp = _round_up(K, k_align)          # makes the (TB,K)->TB*K reshape free
    Hp = _round_up(H, 128)              # lane-tile-aligned slices of q_both

    # ---- parameters, padded to Hp; MXU weights in bf16, biases/wl in f32 ----
    wvp = _pad_cols(params["wvp"], Hp).astype(weight_dtype)
    bvp = _pad_cols(params["bvp"], Hp)
    wq = jnp.concatenate([_pad_cols(params["wqp"], Hp),
                          _pad_cols(params["wqn"], Hp)], axis=1).astype(weight_dtype)
    bq = jnp.concatenate([_pad_cols(params["bqp"], Hp),
                          _pad_cols(params["bqn"], Hp)], axis=1)
    wl = _pad_cols(params["wl"], Hp)
    bl = params["bl"]
    wvn = _pad_cols(params["wvn"], Hp).astype(weight_dtype)
    bvn = _pad_cols(params["bvn"], Hp)

    # ---- per-generation batch tile + explicit VMEM budget ----
    if batch_tile is None:
        batch_tile = _default_batch_tile()
    TB = max(8, min(_round_up(batch_tile, 8), _round_up(B, 8)))

    def nbytes(shape, dt):
        return math.prod(shape) * jnp.dtype(dt).itemsize

    w_bytes = (2 * nbytes((Dv, Hp), weight_dtype)          # wvp + wvn (single-buffered)
               + nbytes((Dq, 2 * Hp), weight_dtype)        # fused wq
               + 4 * nbytes((1, Hp), jnp.float32)
               + nbytes((1, 2 * Hp), jnp.float32) + 4)

    def vmem_estimate(tb):
        stream = 2 * (nbytes((tb, Kp, Dv), stream_dtype)   # v double-buffered
                      + nbytes((tb, Dq), stream_dtype))
        outs = 2 * (nbytes((tb, Hp), jnp.float32) + nbytes((tb, Kp), jnp.float32))
        # dominant f32 temporaries (v_proj vs att*v; lifetimes mostly disjoint)
        interm = max(nbytes((tb, Kp, Hp), jnp.float32),
                     nbytes((tb, Kp, Dv), jnp.float32))
        return stream + outs + w_bytes + interm

    phys_vmem = _tpu_vmem_capacity_bytes()
    budget = int(phys_vmem * 0.70)
    while TB > 8 and vmem_estimate(TB) > budget:
        TB = max(8, (TB // 2 // 8) * 8)

    vmem_limit = min(int(phys_vmem * 0.85),
                     max(32 * 1024 * 1024, int(vmem_estimate(TB) * 1.25)))

    Bp = _round_up(B, TB)
    # TODO(synk): on v7x (2 TensorCores) prefer an even grid count Bp // TB so
    # the parallel batch axis shards evenly; a single grid step idles one TC.

    v_p = jnp.pad(v, ((0, Bp - B), (0, Kp - K), (0, 0))).astype(stream_dtype)
    q_p = jnp.pad(q, ((0, Bp - B), (0, 0))).astype(stream_dtype)

    kernel = functools.partial(butd_kernel, K)

    def call(single_buffer_weights):
        if single_buffer_weights:
            inv = lambda shape: pl.BlockSpec(shape, lambda b: (0, 0),
                                             pipeline_mode=pl.Buffered(1))
        else:
            inv = lambda shape: pl.BlockSpec(shape, lambda b: (0, 0))

        grid_spec = pltpu.PrefetchScalarGridSpec(
            num_scalar_prefetch=0,
            grid=(Bp // TB,),
            in_specs=[
                pl.BlockSpec((TB, Kp, Dv), lambda b: (b, 0, 0)),   # v  (streamed)
                pl.BlockSpec((TB, Dq), lambda b: (b, 0)),          # q  (streamed)
                inv((Dv, Hp)), inv((1, Hp)),                       # v_proj
                inv((Dq, 2 * Hp)), inv((1, 2 * Hp)),               # fused q_proj|q_net
                inv((1, Hp)), inv((1, 1)),                         # linear (lane reduce)
                inv((Dv, Hp)), inv((1, Hp)),                       # v_net
            ],
            out_specs=[
                pl.BlockSpec((TB, Hp), lambda b: (b, 0)),          # joint_emb
                pl.BlockSpec((TB, Kp), lambda b: (b, 0)),          # att (lane-dense)
            ],
        )
        return pl.pallas_call(
            kernel,
            out_shape=(
                jax.ShapeDtypeStruct((Bp, Hp), jnp.float32),
                jax.ShapeDtypeStruct((Bp, Kp), jnp.float32),
            ),
            grid_spec=grid_spec,
            compiler_params=pltpu.CompilerParams(
                dimension_semantics=("parallel",),
                vmem_limit_bytes=vmem_limit,
            ),
        )(v_p, q_p, wvp, bvp, wq, bq, wl, bl, wvn, bvn)

    try:
        joint, att = call(True)
    except Exception:
        # TODO(synk): pipeline_mode=pl.Buffered(1) unsupported on this jax
        # build; fall back to default double-buffered weight specs.
        joint, att = call(False)

    joint = joint[:B, :H]
    att = att[:B, :K].reshape(B, K, 1)   # torch returns [B, K, 1]
    return joint, att


def butd_reference(v, q, params):
    """Pure-JAX f32 reference mirroring the PyTorch module (eval mode)."""
    vp = _relu(v @ params["wvp"] + params["bvp"])                       # [B,K,H]
    qp = _relu(q @ params["wqp"] + params["bqp"])[:, None, :]           # [B,1,H]
    joint_repr = vp * qp
    logits = _relu(jnp.sum(joint_repr * params["wl"], -1, keepdims=True)
                   + params["bl"])                                      # [B,K,1]
    att = jax.nn.softmax(logits, axis=1)
    v_emb = jnp.sum(att * v, axis=1)                                    # [B,Dv]
    q_repr = _relu(q @ params["wqn"] + params["bqn"])
    v_repr = _relu(v_emb @ params["wvn"] + params["bvn"])
    return q_repr * v_repr, att


def init_params(key, Dv, Dq, H):
    ks = jax.random.split(key, 10)
    s = 0.1
    return {
        "wvp": s * jax.random.normal(ks[0], (Dv, H), jnp.float32),
        "bvp": s * jax.random.normal(ks[1], (1, H), jnp.float32),
        "wqp": s * jax.random.normal(ks[2], (Dq, H), jnp.float32),
        "bqp": s * jax.random.normal(ks[3], (1, H), jnp.float32),
        "wl":  s * jax.random.normal(ks[4], (1, H), jnp.float32),
        "bl":  s * jax.random.normal(ks[5], (1, 1), jnp.float32),
        "wqn": s * jax.random.normal(ks[6], (Dq, H), jnp.float32),
        "bqn": s * jax.random.normal(ks[7], (1, H), jnp.float32),
        "wvn": s * jax.random.normal(ks[8], (Dv, H), jnp.float32),
        "bvn": s * jax.random.normal(ks[9], (1, H), jnp.float32),
    }


if __name__ == "__main__":
    # Small, deliberately unaligned shapes to exercise the batch / K / H
    # padding and the padded-K softmax masking paths.
    B, K, Dv, Dq, H = 12, 12, 40, 24, 48

    key = jax.random.PRNGKey(0)
    k_v, k_q, k_p = jax.random.split(key, 3)
    v = jax.random.normal(k_v, (B, K, Dv), jnp.float32)
    q = jax.random.normal(k_q, (B, Dq), jnp.float32)
    params = init_params(k_p, Dv, Dq, H)

    joint_emb, att = butd_forward(v, q, params)
    joint_emb = jax.block_until_ready(joint_emb)
    att = jax.block_until_ready(att)

    joint_ref, att_ref = butd_reference(v, q, params)
    assert joint_emb.shape == (B, H) and att.shape == (B, K, 1)
    # bf16 streams + bf16 MXU weights -> tolerance loosened vs f32 reference.
    assert jnp.allclose(joint_emb, joint_ref, atol=3e-2, rtol=3e-2)
    assert jnp.allclose(att, att_ref, atol=3e-2, rtol=3e-2)
    # padded-K masking + exact reciprocal: attention rows sum to 1.
    assert jnp.allclose(att.sum(axis=1), 1.0, atol=1e-3)

    print("KERNEL_OK")
</pallas_src>

<mosaic_0001>
module attributes {stable_mosaic.version = 11 : i64} {
  func.func @butd_kernel(%arg0: i32, %arg1: memref<16x16x40xbf16, #tpu.memory_space<vmem>>, %arg2: memref<16x24xbf16, #tpu.memory_space<vmem>>, %arg3: memref<40x128xbf16, #tpu.memory_space<vmem>>, %arg4: memref<1x128xf32, #tpu.memory_space<vmem>>, %arg5: memref<24x256xbf16, #tpu.memory_space<vmem>>, %arg6: memref<1x256xf32, #tpu.memory_space<vmem>>, %arg7: memref<1x128xf32, #tpu.memory_space<vmem>>, %arg8: memref<1x1xf32, #tpu.memory_space<vmem>>, %arg9: memref<40x128xbf16, #tpu.memory_space<vmem>>, %arg10: memref<1x128xf32, #tpu.memory_space<vmem>>, %arg11: memref<16x128xf32, #tpu.memory_space<vmem>>, %arg12: memref<16x16xf32, #tpu.memory_space<vmem>>) attributes {dimension_semantics = [#tpu.dimension_semantics<parallel>], iteration_bounds = array<i64: 1>, scalar_prefetch = 0 : i64, scratch_operands = 0 : i64, tpu.core_type = #tpu.core_type<tc>, window_params = [{transform_indices = @transform_0, window_bounds = array<i64: 16, 16, 40>}, {transform_indices = @transform_1, window_bounds = array<i64: 16, 24>}, {pipeline_mode = #tpu.pipeline_mode<synchronous>, transform_indices = @transform_2, window_bounds = array<i64: 40, 128>}, {pipeline_mode = #tpu.pipeline_mode<synchronous>, transform_indices = @transform_3, window_bounds = array<i64: 1, 128>}, {pipeline_mode = #tpu.pipeline_mode<synchronous>, transform_indices = @transform_4, window_bounds = array<i64: 24, 256>}, {pipeline_mode = #tpu.pipeline_mode<synchronous>, transform_indices = @transform_5, window_bounds = array<i64: 1, 256>}, {pipeline_mode = #tpu.pipeline_mode<synchronous>, transform_indices = @transform_6, window_bounds = array<i64: 1, 128>}, {pipeline_mode = #tpu.pipeline_mode<synchronous>, transform_indices = @transform_7, window_bounds = array<i64: 1, 1>}, {pipeline_mode = #tpu.pipeline_mode<synchronous>, transform_indices = @transform_8, window_bounds = array<i64: 40, 128>}, {pipeline_mode = #tpu.pipeline_mode<synchronous>, transform_indices = @transform_9, window_bounds = array<i64: 1, 128>}, {transform_indices = @transform_10, window_bounds = array<i64: 16, 128>}, {transform_indices = @transform_11, window_bounds = array<i64: 16, 16>}]} {
    %c0 = arith.constant 0 : index
    %c0_0 = arith.constant 0 : index
    %c0_1 = arith.constant 0 : index
    %0 = vector.load %arg1[%c0, %c0_0, %c0_1] : memref<16x16x40xbf16, #tpu.memory_space<vmem>>, vector<16x16x40xbf16>
    %c0_2 = arith.constant 0 : index
    %c0_3 = arith.constant 0 : index
    %1 = vector.load %arg2[%c0_2, %c0_3] : memref<16x24xbf16, #tpu.memory_space<vmem>>, vector<16x24xbf16>
    %2 = vector.shape_cast %0 : vector<16x16x40xbf16> to vector<256x40xbf16>
    %c0_4 = arith.constant 0 : index
    %c0_5 = arith.constant 0 : index
    %3 = vector.load %arg3[%c0_4, %c0_5] : memref<40x128xbf16, #tpu.memory_space<vmem>>, vector<40x128xbf16>
    %cst = arith.constant dense<0.000000e+00> : vector<256x128xf32>
    %4 = tpu.matmul %2, %3, %cst {dimension_numbers = #tpu.dot_dimension_numbers<[1], [0], [0], [1], [0, 0, 1, 1], [], []>} : vector<256x40xbf16>, vector<40x128xbf16>, vector<256x128xf32> -> vector<256x128xf32>
    %c0_6 = arith.constant 0 : index
    %c0_7 = arith.constant 0 : index
    %5 = vector.load %arg4[%c0_6, %c0_7] : memref<1x128xf32, #tpu.memory_space<vmem>>, vector<1x128xf32>
    %6 = vector.broadcast %5 : vector<1x128xf32> to vector<256x128xf32>
    %7 = arith.addf %4, %6 : vector<256x128xf32>
    %cst_8 = arith.constant 0.000000e+00 : f32
    %8 = vector.broadcast %cst_8 : f32 to vector<256x128xf32>
    %9 = arith.maximumf %7, %8 : vector<256x128xf32>
    %10 = vector.shape_cast %9 : vector<256x128xf32> to vector<16x16x128xf32>
    %c0_9 = arith.constant 0 : index
    %c0_10 = arith.constant 0 : index
    %11 = vector.load %arg5[%c0_9, %c0_10] : memref<24x256xbf16, #tpu.memory_space<vmem>>, vector<24x256xbf16>
    %cst_11 = arith.constant dense<0.000000e+00> : vector<16x256xf32>
    %12 = tpu.matmul %1, %11, %cst_11 {dimension_numbers = #tpu.dot_dimension_numbers<[1], [0], [0], [1], [0, 0, 1, 1], [], []>} : vector<16x24xbf16>, vector<24x256xbf16>, vector<16x256xf32> -> vector<16x256xf32>
    %c0_12 = arith.constant 0 : index
    %c0_13 = arith.constant 0 : index
    %13 = vector.load %arg6[%c0_12, %c0_13] : memref<1x256xf32, #tpu.memory_space<vmem>>, vector<1x256xf32>
    %14 = vector.broadcast %13 : vector<1x256xf32> to vector<16x256xf32>
    %15 = arith.addf %12, %14 : vector<16x256xf32>
    %cst_14 = arith.constant 0.000000e+00 : f32
    %16 = vector.broadcast %cst_14 : f32 to vector<16x256xf32>
    %17 = arith.maximumf %15, %16 : vector<16x256xf32>
    %18 = vector.extract_strided_slice %17 {offsets = [0, 0], sizes = [16, 128], strides = [1, 1]} : vector<16x256xf32> to vector<16x128xf32>
    %19 = vector.extract_strided_slice %17 {offsets = [0, 128], sizes = [16, 128], strides = [1, 1]} : vector<16x256xf32> to vector<16x128xf32>
    %c0_15 = arith.constant 0 : index
    %c0_16 = arith.constant 0 : index
    %20 = vector.load %arg7[%c0_15, %c0_16] : memref<1x128xf32, #tpu.memory_space<vmem>>, vector<1x128xf32>
    %21 = vector.broadcast %20 : vector<1x128xf32> to vector<16x128xf32>
    %22 = arith.mulf %18, %21 : vector<16x128xf32>
    %23 = vector.shape_cast %22 : vector<16x128xf32> to vector<16x1x128xf32>
    %24 = vector.broadcast %23 : vector<16x1x128xf32> to vector<16x16x128xf32>
    %25 = arith.mulf %10, %24 : vector<16x16x128xf32>
    %cst_17 = arith.constant dense<0.000000e+00> : vector<16x16xf32>
    %26 = vector.multi_reduction <add>, %25, %cst_17 [2] : vector<16x16x128xf32> to vector<16x16xf32>
    %c0_18 = arith.constant 0 : index
    %c0_19 = arith.constant 0 : index
    %27 = vector.load %arg8[%c0_18, %c0_19] : memref<1x1xf32, #tpu.memory_space<vmem>>, vector<1x1xf32>
    %28 = vector.broadcast %27 : vector<1x1xf32> to vector<16x16xf32>
    %29 = arith.addf %26, %28 : vector<16x16xf32>
    %cst_20 = arith.constant 0.000000e+00 : f32
    %30 = vector.broadcast %cst_20 : f32 to vector<16x16xf32>
    %31 = arith.maximumf %29, %30 : vector<16x16xf32>
    %32 = tpu.iota {dimensions = array<i32: 1>} : vector<16x16xi32>
    %c12_i32 = arith.constant 12 : i32
    %33 = vector.broadcast %c12_i32 : i32 to vector<16x16xi32>
    %34 = arith.cmpi slt, %32, %33 : vector<16x16xi32>
    %cst_21 = arith.constant 0xFF800000 : f32
    %35 = vector.broadcast %cst_21 : f32 to vector<16x16xf32>
    %36 = arith.select %34, %31, %35 : vector<16x16xi1>, vector<16x16xf32>
    %cst_22 = arith.constant dense<0xFF800000> : vector<16xf32>
    %37 = vector.multi_reduction <maximumf>, %36, %cst_22 [1] : vector<16x16xf32> to vector<16xf32>
    %38 = vector.shape_cast %37 : vector<16xf32> to vector<16x1xf32>
    %39 = vector.broadcast %38 : vector<16x1xf32> to vector<16x16xf32>
    %40 = arith.subf %36, %39 : vector<16x16xf32>
    %41 = math.exp %40 : vector<16x16xf32>
    %cst_23 = arith.constant dense<0.000000e+00> : vector<16xf32>
    %42 = vector.multi_reduction <add>, %41, %cst_23 [1] : vector<16x16xf32> to vector<16xf32>
    %43 = vector.shape_cast %42 : vector<16xf32> to vector<16x1xf32>
    %44 = tpu.reciprocal %43 : vector<16x1xf32> -> vector<16x1xf32>
    %45 = vector.broadcast %44 : vector<16x1xf32> to vector<16x16xf32>
    %46 = arith.mulf %41, %45 : vector<16x16xf32>
    %47 = vector.shape_cast %46 : vector<16x16xf32> to vector<16x16x1xf32>
    %48 = arith.extf %0 : vector<16x16x40xbf16> to vector<16x16x40xf32>
    %49 = vector.broadcast %47 : vector<16x16x1xf32> to vector<16x16x40xf32>
    %50 = arith.mulf %49, %48 : vector<16x16x40xf32>
    %cst_24 = arith.constant dense<0.000000e+00> : vector<16x40xf32>
    %51 = vector.multi_reduction <add>, %50, %cst_24 [1] : vector<16x16x40xf32> to vector<16x40xf32>
    %52 = arith.truncf %51 : vector<16x40xf32> to vector<16x40xbf16>
    %c0_25 = arith.constant 0 : index
    %c0_26 = arith.constant 0 : index
    %53 = vector.load %arg9[%c0_25, %c0_26] : memref<40x128xbf16, #tpu.memory_space<vmem>>, vector<40x128xbf16>
    %cst_27 = arith.constant dense<0.000000e+00> : vector<16x128xf32>
    %54 = tpu.matmul %52, %53, %cst_27 {dimension_numbers = #tpu.dot_dimension_numbers<[1], [0], [0], [1], [0, 0, 1, 1], [], []>} : vector<16x40xbf16>, vector<40x128xbf16>, vector<16x128xf32> -> vector<16x128xf32>
    %c0_28 = arith.constant 0 : index
    %c0_29 = arith.constant 0 : index
    %55 = vector.load %arg10[%c0_28, %c0_29] : memref<1x128xf32, #tpu.memory_space<vmem>>, vector<1x128xf32>
    %56 = vector.broadcast %55 : vector<1x128xf32> to vector<16x128xf32>
    %57 = arith.addf %54, %56 : vector<16x128xf32>
    %cst_30 = arith.constant 0.000000e+00 : f32
    %58 = vector.broadcast %cst_30 : f32 to vector<16x128xf32>
    %59 = arith.maximumf %57, %58 : vector<16x128xf32>
    %60 = arith.mulf %19, %59 : vector<16x128xf32>
    %c0_31 = arith.constant 0 : index
    %c0_32 = arith.constant 0 : index
    %61 = vector.load %arg11[%c0_31, %c0_32] : memref<16x128xf32, #tpu.memory_space<vmem>>, vector<16x128xf32>
    tpu.vector_store %arg11[%c0_31, %c0_32], %60 {strides = array<i32>} : memref<16x128xf32, #tpu.memory_space<vmem>>, vector<16x128xf32>,
    %c0_33 = arith.constant 0 : index
    %c0_34 = arith.constant 0 : index
    %62 = vector.load %arg12[%c0_33, %c0_34] : memref<16x16xf32, #tpu.memory_space<vmem>>, vector<16x16xf32>
    tpu.vector_store %arg12[%c0_33, %c0_34], %46 {strides = array<i32>} : memref<16x16xf32, #tpu.memory_space<vmem>>, vector<16x16xf32>,
    return
  }
  func.func @transform_0(%arg0: i32) -> (i32, i32, i32) {
    %c0_i32 = arith.constant 0 : i32
    %c0_i32_0 = arith.constant 0 : i32
    %c0_i32_1 = arith.constant 0 : i32
    return %arg0, %c0_i32, %c0_i32_0 : i32, i32, i32
  }
  func.func @transform_1(%arg0: i32) -> (i32, i32) {
    %c0_i32 = arith.constant 0 : i32
    %c0_i32_0 = arith.constant 0 : i32
    return %arg0, %c0_i32 : i32, i32
  }
  func.func @transform_2(%arg0: i32) -> (i32, i32) {
    %c0_i32 = arith.constant 0 : i32
    %c0_i32_0 = arith.constant 0 : i32
    %c0_i32_1 = arith.constant 0 : i32
    return %c0_i32, %c0_i32_0 : i32, i32
  }
  func.func @transform_3(%arg0: i32) -> (i32, i32) {
    %c0_i32 = arith.constant 0 : i32
    %c0_i32_0 = arith.constant 0 : i32
    %c0_i32_1 = arith.constant 0 : i32
    return %c0_i32, %c0_i32_0 : i32, i32
  }
  func.func @transform_4(%arg0: i32) -> (i32, i32) {
    %c0_i32 = arith.constant 0 : i32
    %c0_i32_0 = arith.constant 0 : i32
    %c0_i32_1 = arith.constant 0 : i32
    return %c0_i32, %c0_i32_0 : i32, i32
  }
  func.func @transform_5(%arg0: i32) -> (i32, i32) {
    %c0_i32 = arith.constant 0 : i32
    %c0_i32_0 = arith.constant 0 : i32
    %c0_i32_1 = arith.constant 0 : i32
    return %c0_i32, %c0_i32_0 : i32, i32
  }
  func.func @transform_6(%arg0: i32) -> (i32, i32) {
    %c0_i32 = arith.constant 0 : i32
    %c0_i32_0 = arith.constant 0 : i32
    %c0_i32_1 = arith.constant 0 : i32
    return %c0_i32, %c0_i32_0 : i32, i32
  }
  func.func @transform_7(%arg0: i32) -> (i32, i32) {
    %c0_i32 = arith.constant 0 : i32
    %c0_i32_0 = arith.constant 0 : i32
    %c0_i32_1 = arith.constant 0 : i32
    return %c0_i32, %c0_i32_0 : i32, i32
  }
  func.func @transform_8(%arg0: i32) -> (i32, i32) {
    %c0_i32 = arith.constant 0 : i32
    %c0_i32_0 = arith.constant 0 : i32
    %c0_i32_1 = arith.constant 0 : i32
    return %c0_i32, %c0_i32_0 : i32, i32
  }
  func.func @transform_9(%arg0: i32) -> (i32, i32) {
    %c0_i32 = arith.constant 0 : i32
    %c0_i32_0 = arith.constant 0 : i32
    %c0_i32_1 = arith.constant 0 : i32
    return %c0_i32, %c0_i32_0 : i32, i32
  }
  func.func @transform_10(%arg0: i32) -> (i32, i32) {
    %c0_i32 = arith.constant 0 : i32
    %c0_i32_0 = arith.constant 0 : i32
    return %arg0, %c0_i32 : i32, i32
  }
  func.func @transform_11(%arg0: i32) -> (i32, i32) {
    %c0_i32 = arith.constant 0 : i32
    %c0_i32_0 = arith.constant 0 : i32
    return %arg0, %c0_i32 : i32, i32
  }
}

module attributes {stable_mosaic.version = 11 : i64} {
  func.func @butd_kernel(%arg0: i32, %arg1: memref<16x16x40xbf16, #tpu.memory_space<vmem>>, %arg2: memref<16x24xbf16, #tpu.memory_space<vmem>>, %arg3: memref<40x128xbf16, #tpu.memory_space<vmem>>, %arg4: memref<1x128xf32, #tpu.memory_space<vmem>>, %arg5: memref<24x256xbf16, #tpu.memory_space<vmem>>, %arg6: memref<1x256xf32, #tpu.memory_space<vmem>>, %arg7: memref<1x128xf32, #tpu.memory_space<vmem>>, %arg8: memref<1x1xf32, #tpu.memory_space<vmem>>, %arg9: memref<40x128xbf16, #tpu.memory_space<vmem>>, %arg10: memref<1x128xf32, #tpu.memory_space<vmem>>, %arg11: memref<16x128xf32, #tpu.memory_space<vmem>>, %arg12: memref<16x16xf32, #tpu.memory_space<vmem>>) attributes {dimension_semantics = [#tpu.dimension_semantics<parallel>], iteration_bounds = array<i64: 1>, scalar_prefetch = 0 : i64, scratch_operands = 0 : i64, tpu.core_type = #tpu.core_type<tc>, window_params = [{transform_indices = @transform_0, window_bounds = array<i64: 16, 16, 40>}, {transform_indices = @transform_1, window_bounds = array<i64: 16, 24>}, {pipeline_mode = #tpu.pipeline_mode<synchronous>, transform_indices = @transform_2, window_bounds = array<i64: 40, 128>}, {pipeline_mode = #tpu.pipeline_mode<synchronous>, transform_indices = @transform_3, window_bounds = array<i64: 1, 128>}, {pipeline_mode = #tpu.pipeline_mode<synchronous>, transform_indices = @transform_4, window_bounds = array<i64: 24, 256>}, {pipeline_mode = #tpu.pipeline_mode<synchronous>, transform_indices = @transform_5, window_bounds = array<i64: 1, 256>}, {pipeline_mode = #tpu.pipeline_mode<synchronous>, transform_indices = @transform_6, window_bounds = array<i64: 1, 128>}, {pipeline_mode = #tpu.pipeline_mode<synchronous>, transform_indices = @transform_7, window_bounds = array<i64: 1, 1>}, {pipeline_mode = #tpu.pipeline_mode<synchronous>, transform_indices = @transform_8, window_bounds = array<i64: 40, 128>}, {pipeline_mode = #tpu.pipeline_mode<synchronous>, transform_indices = @transform_9, window_bounds = array<i64: 1, 128>}, {transform_indices = @transform_10, window_bounds = array<i64: 16, 128>}, {transform_indices = @transform_11, window_bounds = array<i64: 16, 16>}]} {
    %c0 = arith.constant 0 : index
    %c0_0 = arith.constant 0 : index
    %c0_1 = arith.constant 0 : index
    %0 = vector.load %arg1[%c0, %c0_0, %c0_1] : memref<16x16x40xbf16, #tpu.memory_space<vmem>>, vector<16x16x40xbf16>
    %c0_2 = arith.constant 0 : index
    %c0_3 = arith.constant 0 : index
    %1 = vector.load %arg2[%c0_2, %c0_3] : memref<16x24xbf16, #tpu.memory_space<vmem>>, vector<16x24xbf16>
    %2 = vector.shape_cast %0 : vector<16x16x40xbf16> to vector<256x40xbf16>
    %c0_4 = arith.constant 0 : index
    %c0_5 = arith.constant 0 : index
    %3 = vector.load %arg3[%c0_4, %c0_5] : memref<40x128xbf16, #tpu.memory_space<vmem>>, vector<40x128xbf16>
    %cst = arith.constant dense<0.000000e+00> : vector<256x128xf32>
    %4 = tpu.matmul %2, %3, %cst {dimension_numbers = #tpu.dot_dimension_numbers<[1], [0], [0], [1], [0, 0, 1, 1], [], []>} : vector<256x40xbf16>, vector<40x128xbf16>, vector<256x128xf32> -> vector<256x128xf32>
    %c0_6 = arith.constant 0 : index
    %c0_7 = arith.constant 0 : index
    %5 = vector.load %arg4[%c0_6, %c0_7] : memref<1x128xf32, #tpu.memory_space<vmem>>, vector<1x128xf32>
    %6 = vector.broadcast %5 : vector<1x128xf32> to vector<256x128xf32>
    %7 = arith.addf %4, %6 : vector<256x128xf32>
    %cst_8 = arith.constant 0.000000e+00 : f32
    %8 = vector.broadcast %cst_8 : f32 to vector<256x128xf32>
    %9 = arith.maximumf %7, %8 : vector<256x128xf32>
    %10 = vector.shape_cast %9 : vector<256x128xf32> to vector<16x16x128xf32>
    %c0_9 = arith.constant 0 : index
    %c0_10 = arith.constant 0 : index
    %11 = vector.load %arg5[%c0_9, %c0_10] : memref<24x256xbf16, #tpu.memory_space<vmem>>, vector<24x256xbf16>
    %cst_11 = arith.constant dense<0.000000e+00> : vector<16x256xf32>
    %12 = tpu.matmul %1, %11, %cst_11 {dimension_numbers = #tpu.dot_dimension_numbers<[1], [0], [0], [1], [0, 0, 1, 1], [], []>} : vector<16x24xbf16>, vector<24x256xbf16>, vector<16x256xf32> -> vector<16x256xf32>
    %c0_12 = arith.constant 0 : index
    %c0_13 = arith.constant 0 : index
    %13 = vector.load %arg6[%c0_12, %c0_13] : memref<1x256xf32, #tpu.memory_space<vmem>>, vector<1x256xf32>
    %14 = vector.broadcast %13 : vector<1x256xf32> to vector<16x256xf32>
    %15 = arith.addf %12, %14 : vector<16x256xf32>
    %cst_14 = arith.constant 0.000000e+00 : f32
    %16 = vector.broadcast %cst_14 : f32 to vector<16x256xf32>
    %17 = arith.maximumf %15, %16 : vector<16x256xf32>
    %18 = vector.extract_strided_slice %17 {offsets = [0, 0], sizes = [16, 128], strides = [1, 1]} : vector<16x256xf32> to vector<16x128xf32>
    %19 = vector.extract_strided_slice %17 {offsets = [0, 128], sizes = [16, 128], strides = [1, 1]} : vector<16x256xf32> to vector<16x128xf32>
    %c0_15 = arith.constant 0 : index
    %c0_16 = arith.constant 0 : index
    %20 = vector.load %arg7[%c0_15, %c0_16] : memref<1x128xf32, #tpu.memory_space<vmem>>, vector<1x128xf32>
    %21 = vector.broadcast %20 : vector<1x128xf32> to vector<16x128xf32>
    %22 = arith.mulf %18, %21 : vector<16x128xf32>
    %23 = vector.shape_cast %22 : vector<16x128xf32> to vector<16x1x128xf32>
    %24 = vector.broadcast %23 : vector<16x1x128xf32> to vector<16x16x128xf32>
    %25 = arith.mulf %10, %24 : vector<16x16x128xf32>
    %cst_17 = arith.constant dense<0.000000e+00> : vector<16x16xf32>
    %26 = vector.multi_reduction <add>, %25, %cst_17 [2] : vector<16x16x128xf32> to vector<16x16xf32>
    %c0_18 = arith.constant 0 : index
    %c0_19 = arith.constant 0 : index
    %27 = vector.load %arg8[%c0_18, %c0_19] : memref<1x1xf32, #tpu.memory_space<vmem>>, vector<1x1xf32>
    %28 = vector.broadcast %27 : vector<1x1xf32> to vector<16x16xf32>
    %29 = arith.addf %26, %28 : vector<16x16xf32>
    %cst_20 = arith.constant 0.000000e+00 : f32
    %30 = vector.broadcast %cst_20 : f32 to vector<16x16xf32>
    %31 = arith.maximumf %29, %30 : vector<16x16xf32>
    %32 = tpu.iota {dimensions = array<i32: 1>} : vector<16x16xi32>
    %c12_i32 = arith.constant 12 : i32
    %33 = vector.broadcast %c12_i32 : i32 to vector<16x16xi32>
    %34 = arith.cmpi slt, %32, %33 : vector<16x16xi32>
    %cst_21 = arith.constant 0xFF800000 : f32
    %35 = vector.broadcast %cst_21 : f32 to vector<16x16xf32>
    %36 = arith.select %34, %31, %35 : vector<16x16xi1>, vector<16x16xf32>
    %cst_22 = arith.constant dense<0xFF800000> : vector<16xf32>
    %37 = vector.multi_reduction <maximumf>, %36, %cst_22 [1] : vector<16x16xf32> to vector<16xf32>
    %38 = vector.shape_cast %37 : vector<16xf32> to vector<16x1xf32>
    %39 = vector.broadcast %38 : vector<16x1xf32> to vector<16x16xf32>
    %40 = arith.subf %36, %39 : vector<16x16xf32>
    %41 = math.exp %40 : vector<16x16xf32>
    %cst_23 = arith.constant dense<0.000000e+00> : vector<16xf32>
    %42 = vector.multi_reduction <add>, %41, %cst_23 [1] : vector<16x16xf32> to vector<16xf32>
    %43 = vector.shape_cast %42 : vector<16xf32> to vector<16x1xf32>
    %44 = tpu.reciprocal %43 : vector<16x1xf32> -> vector<16x1xf32>
    %45 = vector.broadcast %44 : vector<16x1xf32> to vector<16x16xf32>
    %46 = arith.mulf %41, %45 : vector<16x16xf32>
    %47 = vector.shape_cast %46 : vector<16x16xf32> to vector<16x16x1xf32>
    %48 = arith.extf %0 : vector<16x16x40xbf16> to vector<16x16x40xf32>
    %49 = vector.broadcast %47 : vector<16x16x1xf32> to vector<16x16x40xf32>
    %50 = arith.mulf %49, %48 : vector<16x16x40xf32>
    %cst_24 = arith.constant dense<0.000000e+00> : vector<16x40xf32>
    %51 = vector.multi_reduction <add>, %50, %cst_24 [1] : vector<16x16x40xf32> to vector<16x40xf32>
    %52 = arith.truncf %51 : vector<16x40xf32> to vector<16x40xbf16>
    %c0_25 = arith.constant 0 : index
    %c0_26 = arith.constant 0 : index
    %53 = vector.load %arg9[%c0_25, %c0_26] : memref<40x128xbf16, #tpu.memory_space<vmem>>, vector<40x128xbf16>
    %cst_27 = arith.constant dense<0.000000e+00> : vector<16x128xf32>
    %54 = tpu.matmul %52, %53, %cst_27 {dimension_numbers = #tpu.dot_dimension_numbers<[1], [0], [0], [1], [0, 0, 1, 1], [], []>} : vector<16x40xbf16>, vector<40x128xbf16>, vector<16x128xf32> -> vector<16x128xf32>
    %c0_28 = arith.constant 0 : index
    %c0_29 = arith.constant 0 : index
    %55 = vector.load %arg10[%c0_28, %c0_29] : memref<1x128xf32, #tpu.memory_space<vmem>>, vector<1x128xf32>
    %56 = vector.broadcast %55 : vector<1x128xf32> to vector<16x128xf32>
    %57 = arith.addf %54, %56 : vector<16x128xf32>
    %cst_30 = arith.constant 0.000000e+00 : f32
    %58 = vector.broadcast %cst_30 : f32 to vector<16x128xf32>
    %59 = arith.maximumf %57, %58 : vector<16x128xf32>
    %60 = arith.mulf %19, %59 : vector<16x128xf32>
    %c0_31 = arith.constant 0 : index
    %c0_32 = arith.constant 0 : index
    %61 = vector.load %arg11[%c0_31, %c0_32] : memref<16x128xf32, #tpu.memory_space<vmem>>, vector<16x128xf32>
    tpu.vector_store %arg11[%c0_31, %c0_32], %60 {strides = array<i32>} : memref<16x128xf32, #tpu.memory_space<vmem>>, vector<16x128xf32>,
    %c0_33 = arith.constant 0 : index
    %c0_34 = arith.constant 0 : index
    %62 = vector.load %arg12[%c0_33, %c0_34] : memref<16x16xf32, #tpu.memory_space<vmem>>, vector<16x16xf32>
    tpu.vector_store %arg12[%c0_33, %c0_34], %46 {strides = array<i32>} : memref<16x16xf32, #tpu.memory_space<vmem>>, vector<16x16xf32>,
    return
  }
  func.func @transform_0(%arg0: i32) -> (i32, i32, i32) {
    %c0_i32 = arith.constant 0 : i32
    %c0_i32_0 = arith.constant 0 : i32
    %c0_i32_1 = arith.constant 0 : i32
    return %arg0, %c0_i32, %c0_i32_0 : i32, i32, i32
  }
  func.func @transform_1(%arg0: i32) -> (i32, i32) {
    %c0_i32 = arith.constant 0 : i32
    %c0_i32_0 = arith.constant 0 : i32
    return %arg0, %c0_i32 : i32, i32
  }
  func.func @transform_2(%arg0: i32) -> (i32, i32) {
    %c0_i32 = arith.constant 0 : i32
    %c0_i32_0 = arith.constant 0 : i32
    %c0_i32_1 = arith.constant 0 : i32
    return %c0_i32, %c0_i32_0 : i32, i32
  }
  func.func @transform_3(%arg0: i32) -> (i32, i32) {
    %c0_i32 = arith.constant 0 : i32
    %c0_i32_0 = arith.constant 0 : i32
    %c0_i32_1 = arith.constant 0 : i32
    return %c0_i32, %c0_i32_0 : i32, i32
  }
  func.func @transform_4(%arg0: i32) -> (i32, i32) {
    %c0_i32 = arith.constant 0 : i32
    %c0_i32_0 = arith.constant 0 : i32
    %c0_i32_1 = arith.constant 0 : i32
    return %c0_i32, %c0_i32_0 : i32, i32
  }
  func.func @transform_5(%arg0: i32) -> (i32, i32) {
    %c0_i32 = arith.constant 0 : i32
    %c0_i32_0 = arith.constant 0 : i32
    %c0_i32_1 = arith.constant 0 : i32
    return %c0_i32, %c0_i32_0 : i32, i32
  }
  func.func @transform_6(%arg0: i32) -> (i32, i32) {
    %c0_i32 = arith.constant 0 : i32
    %c0_i32_0 = arith.constant 0 : i32
    %c0_i32_1 = arith.constant 0 : i32
    return %c0_i32, %c0_i32_0 : i32, i32
  }
  func.func @transform_7(%arg0: i32) -> (i32, i32) {
    %c0_i32 = arith.constant 0 : i32
    %c0_i32_0 = arith.constant 0 : i32
    %c0_i32_1 = arith.constant 0 : i32
    return %c0_i32, %c0_i32_0 : i32, i32
  }
  func.func @transform_8(%arg0: i32) -> (i32, i32) {
    %c0_i32 = arith.constant 0 : i32
    %c0_i32_0 = arith.constant 0 : i32
    %c0_i32_1 = arith.constant 0 : i32
    return %c0_i32, %c0_i32_0 : i32, i32
  }
  func.func @transform_9(%arg0: i32) -> (i32, i32) {
    %c0_i32 = arith.constant 0 : i32
    %c0_i32_0 = arith.constant 0 : i32
    %c0_i32_1 = arith.constant 0 : i32
    return %c0_i32, %c0_i32_0 : i32, i32
  }
  func.func @transform_10(%arg0: i32) -> (i32, i32) {
    %c0_i32 = arith.constant 0 : i32
    %c0_i32_0 = arith.constant 0 : i32
    return %arg0, %c0_i32 : i32, i32
  }
  func.func @transform_11(%arg0: i32) -> (i32, i32) {
    %c0_i32 = arith.constant 0 : i32
    %c0_i32_0 = arith.constant 0 : i32
    return %arg0, %c0_i32 : i32, i32
  }
}

</mosaic_0001>

<bundles_post_ra>
// kernel: tpu_custom_call.1
= control target key start
LH: loop header
LB: loop body
LE: loop exit
PB: predicated region body
PF: predicated region fallthrough
CT: control target
= control target key end

     0   :  { %s2813_s0 = inlined_call_operand.hbm [shape: bf16[16,16,40], index: 0, kind: input, shape index: {}]   ;;  %s2814_s1 = inlined_call_operand.hbm [shape: bf16[16,24], index: 1, kind: input, shape index: {}]   ;;  %s2815_s2 = inlined_call_operand.hbm [shape: bf16[40,128], index: 2, kind: input, shape index: {}]   ;;  %s2816_s3 = inlined_call_operand.vmem [shape: f32[1,128], index: 3, kind: input, shape index: {}]   ;;  %s2817_s4 = inlined_call_operand.hbm [shape: bf16[24,256], index: 4, kind: input, shape index: {}]   ;;  %s2818_s5 = inlined_call_operand.vmem [shape: f32[1,256], index: 5, kind: input, shape index: {}]   ;;  %s2819_s6 = inlined_call_operand.vmem [shape: f32[1,128], index: 6, kind: input, shape index: {}]   ;;  %s2820_s7 = inlined_call_operand.<no memory space> [shape: f32[1,1], index: 7, kind: input, shape index: {}]   ;;  %s2821_s8 = inlined_call_operand.vmem [shape: bf16[40,128], index: 8, kind: input, shape index: {}]   ;;  %s2822_s9 = inlined_call_operand.vmem [shape: f32[1,128], index: 9, kind: input, shape index: {}]   ;;  %s2823_s10 = inlined_call_operand.hbm [shape: f32[16,128], index: 10, kind: output, shape index: {0}]   ;;  %s2824_s11 = inlined_call_operand.hbm [shape: f32[16,16], index: 11, kind: output, shape index: {1}]  }
   0x1   :  { %v17_v0 = vstv %s2820_s7 }
   0x2   :  { %18 = vst [vmem:[#allocation2] sm:$0x1] %v17_v0 }
   0x3   :  { %19 = vsyncpa [#allocation4], 0 }
   0x4   :  { %20 = vsyncpa [#allocation7], 0 }
   0x5   :  { %21 = vsyncpa [#allocation10], 0 }
   0x6   :  { %22 = vsyncpa [#allocation5], 0 }
   0x7   :  { %23 = vsyncpa [#allocation13], 0  ;;  %s2082_s19 = smov [#allocation6]   ;;  %s2083_s21 = smov [#allocation3]  }
   0x8   :  { %s41_s20 = sshll.u32 %s2082_s19, 4  ;;  %s29_s22 = sshll.u32 %s2083_s21, 4  ;;  %s42_s20 = int_to_ptr.vmem [resolvable:$true] %s41_s20  ;;  %s2159_s22 = int_to_ptr.vmem [resolvable:$true] %s29_s22 }
   0x9   :  { %s1940_s25 = scalar_lea.hbm %s2814_s1, 128 }
   0xa   :  { %p1941_p0 = scmp.ne.s32.totalorder %s2814_s1, %s1940_s25  ;;  %p1944_p1 = scmp.lt.u32.totalorder %s1940_s25, %s2814_s1 }
   0xc   :  { %p1946_p2 = pnand %p1944_p1, %p1941_p0 }
   0xe   :  { %1949 = shalt.err (!%p1946_p2)
}
   0xf   :  { %s1950_s29 = scalar_lea.vmem %s42_s20, 128  ;;  %p1955_p4 = scmp.lt.s32.totalorder %s42_s20, %s42_s20 }
  0x10   :  { %p1951_p3 = scmp.ne.s32.totalorder %s42_s20, %s1950_s29  ;;  %p1956_p5 = scmp.lt.s32.totalorder %s1950_s29, %s1950_s29 }
  0x12   :  { %p1957_p6 = por %p1956_p5, %p1955_p4 }
  0x14   :  { %p1958_p7 = pnand %p1957_p6, %p1951_p3 }
  0x16   :  { %1961 = shalt.err (!%p1958_p7)
}
  0x17   :  { %s2084_s30 = smov 64   ;;  %s2085_s12 = smov 4  }
  0x18   :  { %47 = dma.hbm_to_vmem [thread:$0]  %s2814_s1, 128, %s42_s20, [#allocation7], %s2084_s30, %s2084_s30, %s2085_s12  }
  0x19   :  { %s1962_s17 = scalar_lea.hbm %s2813_s0, 2048 }
  0x1a   :  { %p1963_p8 = scmp.ne.s32.totalorder %s2813_s0, %s1962_s17  ;;  %p1966_p9 = scmp.lt.u32.totalorder %s1962_s17, %s2813_s0 }
  0x1c   :  { %p1968_p10 = pnand %p1966_p9, %p1963_p8 }
  0x1e   :  { %1971 = shalt.err (!%p1968_p10)
}
  0x1f   :  { %s1972_s24 = scalar_lea.vmem %s2159_s22, 2048  ;;  %p1977_p12 = scmp.lt.s32.totalorder %s2159_s22, %s2159_s22 }
  0x20   :  { %p1973_p11 = scmp.ne.s32.totalorder %s2159_s22, %s1972_s24  ;;  %p1978_p13 = scmp.lt.s32.totalorder %s1972_s24, %s1972_s24 }
  0x22   :  { %p1979_p0 = por %p1978_p13, %p1977_p12 }
  0x24   :  { %p1980_p1 = pnand %p1979_p0, %p1973_p11 }
  0x26   :  { %1983 = shalt.err (!%p1980_p1)
}
  0x27   :  { %35 = dma.hbm_to_vmem [thread:$0]  %s2813_s0, 2048, %s2159_s22, [#allocation4], %s2084_s30, %s2084_s30, %s2085_s12  }
  0x28   :  { %s2086_s25 = smov [#allocation8]   ;;  %s2087_s27 = smov [#allocation9]  }
  0x29   :  { %s53_s26 = sshll.u32 %s2086_s25, 4  ;;  %s67_s7 = sshll.u32 %s2087_s27, 4  ;;  %s54_s26 = int_to_ptr.vmem [resolvable:$true] %s53_s26  ;;  %s2196_s7 = int_to_ptr.vmem [resolvable:$true] %s67_s7 }
  0x2a   :  { %s1984_s13 = scalar_lea.hbm %s2815_s2, 320 }
  0x2b   :  { %p1985_p2 = scmp.ne.s32.totalorder %s2815_s2, %s1984_s13  ;;  %p1988_p3 = scmp.lt.u32.totalorder %s1984_s13, %s2815_s2 }
  0x2d   :  { %p1990_p4 = pnand %p1988_p3, %p1985_p2 }
  0x2f   :  { %1993 = shalt.err (!%p1990_p4)
}
  0x30   :  { %s1994_s0 = scalar_lea.vmem %s54_s26, 320  ;;  %p1999_p6 = scmp.lt.s32.totalorder %s54_s26, %s54_s26 }
  0x31   :  { %p1995_p5 = scmp.ne.s32.totalorder %s54_s26, %s1994_s0  ;;  %p2000_p7 = scmp.lt.s32.totalorder %s1994_s0, %s1994_s0 }
  0x33   :  { %p2001_p8 = por %p2000_p7, %p1999_p6 }
  0x35   :  { %p2002_p9 = pnand %p2001_p8, %p1995_p5 }
  0x37   :  { %2005 = shalt.err (!%p2002_p9)
}
  0x38   :  { %59 = dma.hbm_to_vmem [thread:$0]  %s2815_s2, 320, %s54_s26, [#allocation7], %s2084_s30, %s2084_s30, %s2085_s12  }
  0x39   :  { %s2006_s23 = scalar_lea.hbm %s2817_s4, 384 }
  0x3a   :  { %p2007_p10 = scmp.ne.s32.totalorder %s2817_s4, %s2006_s23  ;;  %p2010_p11 = scmp.lt.u32.totalorder %s2006_s23, %s2817_s4 }
  0x3c   :  { %p2012_p12 = pnand %p2010_p11, %p2007_p10 }
  0x3e   :  { %2015 = shalt.err (!%p2012_p12)
}
  0x3f   :  { %s2016_s27 = scalar_lea.vmem %s2196_s7, 384  ;;  %p2021_p0 = scmp.lt.s32.totalorder %s2196_s7, %s2196_s7 }
  0x40   :  { %p2017_p13 = scmp.ne.s32.totalorder %s2196_s7, %s2016_s27  ;;  %p2022_p1 = scmp.lt.s32.totalorder %s2016_s27, %s2016_s27 }
  0x42   :  { %p2023_p2 = por %p2022_p1, %p2021_p0 }
  0x44   :  { %p2024_p3 = pnand %p2023_p2, %p2017_p13 }
  0x46   :  { %2027 = shalt.err (!%p2024_p3)
}
  0x47   :  { %s2088_s2 = smov 128   ;;  %s2089_s30 = smov 8  }
  0x48   :  { %73 = dma.hbm_to_vmem [thread:$0]  %s2817_s4, 384, %s2196_s7, [#allocation10], %s2088_s2, %s2088_s2, %s2089_s30  }
  0x49   :  { %2072 = dma.done.wait [#allocation4], 2048  }
  0x4a   :  { %2073 = vsyncadd [#allocation4], 4294965248 }
  0x4b   :  { %2074 = dma.done.wait [#allocation7], 448  }
  0x4c   :  { %2075 = vsyncadd [#allocation7], 4294966848 }
  0x4d   :  { %2076 = dma.done.wait [#allocation10], 384  }
  0x4e   :  { %2077 = vsyncadd [#allocation10], 4294966912  ;;  %v2090_v1 = vmov 0   ;;  %v1872_v2 = vld [vmem:[#allocation8] sm:$0xff]   ;;  %v1873_v3 = vld [vmem:[#allocation8 + $0x8] sm:$0xff]   ;;  %vm238_vm0 = vcmask 326656   ;;  %v2825_v33 = vlaneseq }
  0x4f   :  { %1871 = vset.pattern.permute.xlu0 %v2090_v1  ;;  %1801 = vmatprep.subr.bf16.mxu0 %v1872_v2  ;;  %v97_v4 = vld [vmem:[#allocation3] sm:$0xff]   ;;  %v1874_v6 = vld [vmem:[#allocation8 + $0x10] ss:$0 sps:$4 sm:$0xff]   ;;  %vm287_vm1 = vcmask 1043456   ;;  %v99_v7 = vld [vmem:[#allocation3 + $0x8] sm:$0xff]   ;;  %vm519_vm2 = vcmask 195584  }
  0x50   :  { %1849 = vmatprep.subr.bf16.mxu1 %v1872_v2  ;;  %1802 = vmatpush3.bf16.msra.mxu0 %v1872_v2  ;;  %v121_v5 = vld [vmem:[#allocation3 + $0x60] sm:$0xff]   ;;  %v123_v8 = vld [vmem:[#allocation3 + $0x68] sm:$0xff]   ;;  %v289_v9 = vsel %vm287_vm1, %v1874_v6, 0  ;;  %v101_v11 = vld [vmem:[#allocation3 + $0x10] sm:$0xff]   ;;  %v2255_v38 = vshrl.u32 %v2825_v33, 7  ;;  %vm979_vm3 = vcmask 130112  }
  0x51   :  { %1852 = vmatpush3.bf16.msra.mxu1 %v1872_v2  ;;  %1803 = vmatprep.subr.bf16.mxu0 %v1873_v3  ;;  %v1881_v10 = vld [vmem:[#allocation9 + $0x4] ss:$8 sps:$4 sm:$0xff]   ;;  %v125_v12 = vld [vmem:[#allocation3 + $0x70] sm:$0xff]   ;;  %v1879_v14 = vld [vmem:[#allocation9] ss:$8 sps:$4 sm:$0xff]   ;;  %vm1116_vm4 = vcmask 1041409  }
  0x52   :  { %1850 = vmatprep.subr.bf16.mxu1 %v1873_v3  ;;  %1807 = vmatprep.mubr.msk.bf16.mxu0 %vm238_vm0, %v97_v4  ;;  %v486_v13 = vld [vmem:[#allocation9 + $0x10] sm:$0xff]  ;;  %v103_v17 = vld [vmem:[#allocation3 + $0x18] sm:$0xff]   ;;  %v105_v20 = vld [vmem:[#allocation3 + $0x20] sm:$0xff]   ;;  %v2091_v39 = vmov 1966171168   ;;  %v2263_v45 = vsub.s32 0, %v2255_v38 }
  0x53   :  { %1831 = vmatprep.mubr.msk.bf16.mxu1 %vm238_vm0, %v121_v5  ;;  %v1768_v15 = vcombine.high %v486_v13, %v486_v13  ;;  %v1767_v16 = vcombine.low %v486_v13, %v486_v13  ;;  %v127_v18 = vld [vmem:[#allocation3 + $0x78] sm:$0xff]   ;;  %v107_v21 = vld [vmem:[#allocation3 + $0x28] sm:$0xff]   ;;  %v109_v22 = vld [vmem:[#allocation3 + $0x30] sm:$0xff]   ;;  %v589_v40 = vunpack.c.l.s4 %v2091_v39  ;;  %v2269_v49 = vsub.s32 1, %v2255_v38 }
  0x54   :  { %1804 = vmatpush3.bf16.msra.mxu0 %v1873_v3  ;;  %v1890_v23 = vld [vmem:[#allocation6] sm:$0xff]   ;;  %v111_v24 = vld [vmem:[#allocation3 + $0x38] sm:$0xff]   ;;  %v115_v26 = vld [vmem:[#allocation3 + $0x48] sm:$0xff]   ;;  %vm1118_vm5 = vcmask 1042434   ;;  %vm1120_vm6 = vcmask 1043459   ;;  %vm1122_vm7 = vcmask 1044484  }
  0x55   :  { %1853 = vmatpush3.bf16.msra.mxu1 %v1873_v3  ;;  %1855 = vmatprep.subr.msk.bf16.mxu0 %vm287_vm1, %v1874_v6  ;;  %v524_v19 = vsel %vm287_vm1, %v1767_v16, 0  ;;  %v113_v25 = vld [vmem:[#allocation3 + $0x40] sm:$0xff]   ;;  %v117_v27 = vld [vmem:[#allocation3 + $0x50] sm:$0xff]   ;;  %v119_v28 = vld [vmem:[#allocation3 + $0x58] sm:$0xff]   ;;  %v590_v54 = vunpack.c.0.s8 %v589_v40  ;;  %vm1124_vm8 = vcmask 1045509   ;;  %vm1126_vm9 = vcmask 1046534  }
  0x56   :  { %1856 = vmatprep.subr.msk.bf16.mxu1 %vm287_vm1, %v1874_v6  ;;  %v2260_v41 = vld [vmem:[%s2816_s3] ss:$0 sm:$0xff]  ;;  %vm1128_vm11 = vcmask 1047559   ;;  %vm1141_vm12 = vcmask 130048   ;;  %vm2093_vm13 = vmmov 0  }
  0x57   :  { %v487_v48 = vld [vmem:[%s2818_s5] sm:$0x3]  ;;  %v2300_v2 = vsub.s32 %v590_v54, %v2255_v38 }
  0x58   :  { %1806 = vmatpush3.bf16.msra.mxu0 %v289_v9  ;;  %v492_v61 = vrot.slane %v487_v48, %v2263_v45  ;;  %v496_v63 = vrot.slane %v487_v48, %v2269_v49  ;;  %v1771_v16 = vld [vmem:[%s2819_s6] ss:$0 sm:$0xff] }
  0x59   :  { %1854 = vmatpush3.bf16.msra.mxu1 %v289_v9 }
  0x5a   :  { %529 = vmatprep.subr.bf16.mxu1 %v1881_v10 }
  0x5b   :  { %1808 = vmatmul.mubr.msk.bf16.vlgmr.msra.gmra.mrb[0].mxu0 %vm238_vm0, %v99_v7 }
  0x5c   :  { %1832 = vmatmul.mubr.msk.bf16.vlgmr.msra.gmra.mrb[0].mxu1 %vm238_vm0, %v123_v8  ;;  %1811 = vmatprep.mubr.msk.bf16.mxu0 %vm238_vm0, %v101_v11 }
  0x5d   :  { %530 = vmatpush1.bf16.msra.mxu1 %v1879_v14  ;;  %1835 = vmatprep.mubr.msk.bf16.mxu1 %vm238_vm0, %v125_v12 }
  0x5e   :  { %1769 = vmatprep.subr.msk.bf16.mxu1 %vm287_vm1, %v1768_v15 }
  0x61   :  { %532 = vmatpush1.bf16.msra.mxu1 %v524_v19 }
  0x63   :  { %1812 = vmatmul.mubr.msk.bf16.gmra.mrb[4].mxu0 %vm238_vm0, %v103_v17 }
  0x64   :  { %1836 = vmatmul.mubr.msk.bf16.gmra.mrb[4].mxu1 %vm238_vm0, %v127_v18  ;;  %1815 = vmatprep.mubr.msk.bf16.mxu0 %vm238_vm0, %v105_v20 }
  0x65   :  { %561 = vmatprep.mubr.bf16.mxu1 %v2090_v1 }
  0x6b   :  { %1816 = vmatmul.mubr.msk.bf16.gmra.mrb[8].mxu0 %vm238_vm0, %v107_v21 }
  0x6c   :  { %1770 = vmatmul.mubr.msk.bf16.vlgmr.msra.gmra.mrb[8].mxu1 %vm519_vm2, %v1890_v23  ;;  %1819 = vmatprep.mubr.msk.bf16.mxu0 %vm238_vm0, %v109_v22 }
  0x73   :  { %1820 = vmatmul.mubr.msk.bf16.gmra.mrb[12].mxu0 %vm238_vm0, %v111_v24 }
  0x74   :  { %1823 = vmatprep.mubr.msk.bf16.mxu0 %vm238_vm0, %v113_v25 }
  0x7b   :  { %1824 = vmatmul.mubr.msk.bf16.gmra.mrb[16].mxu0 %vm238_vm0, %v115_v26 }
  0x7c   :  { %1827 = vmatprep.mubr.msk.bf16.mxu0 %vm238_vm0, %v117_v27 }
  0x83   :  { %1828 = vmatmul.mubr.msk.bf16.gmra.mrb[20].mxu0 %vm238_vm0, %v119_v28 }
 0x12e   :  { %v1809_v30 = vpop.f32.mrb[0].mxu0 }
 0x12f   :  { %v1833_v29 = vpop.f32.mrb[0].mxu1  ;;  %v325_v32 = vpop.f32.mrb[1].mxu0  ;;  %v2275_v53 = vadd.f32 %v1809_v30, %v2260_v41 }
 0x130   :  { %v421_v31 = vpop.f32.mrb[1].mxu1  ;;  %v1810_v35 = vpop.f32.mrb[2].mxu0  ;;  %v2272_v51 = vadd.f32 %v1833_v29, %v2260_v41  ;;  %v2284_v58 = vadd.f32 %v2260_v41, %v325_v32 }
 0x131   :  { %v1834_v34 = vpop.f32.mrb[2].mxu1  ;;  %v328_v37 = vpop.f32.mrb[3].mxu0  ;;  %v2278_v56 = vadd.f32 %v2260_v41, %v421_v31  ;;  %v2287_v59 = vadd.f32 %v1810_v35, %v2260_v41  ;;  %v454_v1 = vmax.f32 %v2275_v53, 0.0 }
 0x132   :  { %v424_v36 = vpop.f32.mrb[3].mxu1  ;;  %v2281_v57 = vadd.f32 %v1834_v34, %v2260_v41  ;;  %v2294_v62 = vadd.f32 %v2260_v41, %v328_v37  ;;  %v452_v5 = vmax.f32 %v2284_v58, 0.0 }
 0x133   :  { %v2290_v60 = vadd.f32 %v2260_v41, %v424_v36  ;;  %v476_v3 = vmax.f32 %v2278_v56, 0.0  ;;  %v455_v6 = vmax.f32 %v2287_v59, 0.0 }
 0x134   :  { %v453_v11 = vmax.f32 %v2294_v62, 0.0 }
 0x135   :  { %v477_v9 = vmax.f32 %v2290_v60, 0.0 }
 0x136   :  { %v1813_v43 = vpop.f32.mrb[4].mxu0 }
 0x137   :  { %v1837_v42 = vpop.f32.mrb[4].mxu1  ;;  %v341_v46 = vpop.f32.mrb[5].mxu0  ;;  %v2309_v13 = vadd.f32 %v1813_v43, %v2260_v41 }
 0x138   :  { %v437_v44 = vpop.f32.mrb[5].mxu1  ;;  %v1814_v50 = vpop.f32.mrb[6].mxu0  ;;  %v2320_v19 = vadd.f32 %v2260_v41, %v341_v46  ;;  %v2326_v22 = vadd.f32 %v1837_v42, %v2260_v41 }
 0x139   :  { %v1838_v47 = vpop.f32.mrb[6].mxu1  ;;  %v344_v55 = vpop.f32.mrb[7].mxu0  ;;  %v2312_v15 = vadd.f32 %v2260_v41, %v437_v44  ;;  %v2323_v20 = vadd.f32 %v1814_v50, %v2260_v41  ;;  %v458_v35 = vmax.f32 %v2309_v13, 0.0 }
 0x13a   :  { %v440_v52 = vpop.f32.mrb[7].mxu1  ;;  %v345_v29 = vadd.f32 %v2260_v41, %v344_v55  ;;  %v2339_v32 = vadd.f32 %v1838_v47, %v2260_v41  ;;  %v456_v39 = vmax.f32 %v2320_v19, 0.0 }
 0x13b   :  { %v2329_v23 = vadd.f32 %v2260_v41, %v440_v52  ;;  %v480_v37 = vmax.f32 %v2312_v15, 0.0  ;;  %v459_v40 = vmax.f32 %v2323_v20, 0.0  ;;  %v2828_v15 = vmax.f32 %v2281_v57, 0.0 }
 0x13c   :  { %v457_v50 = vmax.f32 %v345_v29, 0.0  ;;  %v482_v57 = vmax.f32 %v2326_v22, 0.0  ;;  %v1772_v22 = vld [vmem:[#allocation2] ss:$0 sm:$0xff] }
 0x13d   :  { %v481_v48 = vmax.f32 %v2329_v23, 0.0 }
 0x13e   :  { %v1817_v8 = vpop.f32.mrb[8].mxu0 }
 0x13f   :  { %v563_v7 = vpop.f32.mrb[8].mxu1  ;;  %v357_v14 = vpop.f32.mrb[9].mxu0  ;;  %v2335_v30 = vadd.f32 %v1817_v8, %v2260_v41 }
 0x140   :  { %v564_v10 = vadd.f32 %v563_v7, %v492_v61  ;;  %v565_v12 = vpop.f32.mrb[9].mxu1  ;;  %v1818_v21 = vpop.f32.mrb[10].mxu0  ;;  %v358_v31 = vadd.f32 %v2260_v41, %v357_v14 }
 0x141   :  { %v2317_v17 = vadd.f32 %v565_v12, %v496_v63  ;;  %v567_v18 = vpop.f32.mrb[10].mxu1  ;;  %v360_v27 = vpop.f32.mrb[11].mxu0  ;;  %v2346_v42 = vadd.f32 %v1818_v21, %v2260_v41  ;;  %v462_v52 = vmax.f32 %v2335_v30, 0.0 }
 0x142   :  { %v572_v24 = vmax.f32 %v564_v10, 0.0  ;;  %v568_v25 = vadd.f32 %v567_v18, %v492_v61  ;;  %v569_v26 = vpop.f32.mrb[11].mxu1  ;;  %v361_v47 = vadd.f32 %v2260_v41, %v360_v27  ;;  %v460_v54 = vmax.f32 %v358_v31, 0.0 }
 0x143   :  { %v2331_v28 = vadd.f32 %v569_v26, %v496_v63  ;;  %v463_v12 = vmax.f32 %v2346_v42, 0.0 }
 0x144   :  { %v583_v34 = vmul.f32 %v1771_v16, %v572_v24  ;;  %v574_v36 = vmax.f32 %v568_v25, 0.0  ;;  %v461_v25 = vmax.f32 %v361_v47, 0.0 }
 0x146   :  { %v587_v43 = vcombine.high %v583_v34, %v583_v34  ;;  %v594_v44 = vrot.slane %v583_v34, %v2300_v2  ;;  %v584_v46 = vmul.f32 %v1771_v16, %v574_v36  ;;  %v1821_v55 = vpop.f32.mrb[12].mxu0 }
 0x147   :  { %v2357_v8 = vadd.f32 %v1821_v55, %v2260_v41  ;;  %v373_v10 = vpop.f32.mrb[13].mxu0 }
 0x148   :  { %v601_v61 = vrot.slane %v587_v43, %v2300_v2  ;;  %v636_v63 = vcombine.high %v584_v46, %v584_v46  ;;  %v2354_v7 = vrot.slane %v584_v46, %v2300_v2  ;;  %v2361_v14 = vadd.f32 %v2260_v41, %v373_v10  ;;  %v1822_v16 = vpop.f32.mrb[14].mxu0 }
 0x149   :  { %v610_v18 = vrot.slane %v594_v44, %v2300_v2  ;;  %v602_v19 = vcombine.high %v594_v44, %v594_v44  ;;  %v2370_v26 = vadd.f32 %v1822_v16, %v2260_v41  ;;  %v376_v27 = vpop.f32.mrb[15].mxu0 }
 0x14a   :  { %v2365_v21 = vrot.slane %v636_v63, %v2300_v2  ;;  %v651_v24 = vcombine.high %v2354_v7, %v2354_v7  ;;  %v464_v31 = vmax.f32 %v2361_v14, 0.0  ;;  %v377_v43 = vadd.f32 %v2260_v41, %v376_v27 }
 0x14b   :  { %v688_v34 = vrot.slane %v610_v18, %v2263_v45  ;;  %v624_v36 = vrot.slane %v602_v19, %v2300_v2  ;;  %v632_v44 = vcombine.high %v610_v18, %v610_v18  ;;  %v617_v46 = vrot.slane %v601_v61, %v2300_v2 }
 0x14c   :  { %v666_v47 = vrot.slane %v2365_v21, %v2300_v2  ;;  %v659_v42 = vrot.slane %v2354_v7, %v2300_v2 }
 0x14d   :  { %v765_v63 = vmul.f32 %v688_v34, %v452_v5  ;;  %v692_v10 = vrot.slane %v624_v36, %v2263_v45  ;;  %v766_v14 = vmul.f32 %v688_v34, %v453_v11  ;;  %v696_v16 = vrot.slane %v632_v44, %v2263_v45 }
 0x14e   :  { %v704_v19 = vrot.slane %v617_v46, %v2263_v45  ;;  %v634_v18 = vcombine.high %v624_v36, %v624_v36  ;;  %v736_v27 = vrot.slane %v666_v47, %v2263_v45  ;;  %v1825_v33 = vpop.f32.mrb[16].mxu0  ;;  %v603_v5 = vcombine.high %v601_v61, %v601_v61 }
 0x14f   :  { %797 = vadd.xlane.f32.xlu0 %v765_v63  ;;  %v767_v55 = vmul.f32 %v692_v10, %v454_v1  ;;  %v768_v58 = vmul.f32 %v692_v10, %v455_v6  ;;  %v633_v4 = vcombine.high %v617_v46, %v617_v46  ;;  %v2394_v62 = vadd.f32 %v1825_v33, %v2260_v41  ;;  %v389_v11 = vpop.f32.mrb[17].mxu0 }
 0x150   :  { %v769_v34 = vmul.f32 %v696_v16, %v456_v39  ;;  %v770_v44 = vmul.f32 %v696_v16, %v457_v50  ;;  %v773_v0 = vmul.f32 %v704_v19, %v460_v54  ;;  %v2397_v36 = vadd.f32 %v2260_v41, %v389_v11  ;;  %v1826_v63 = vpop.f32.mrb[18].mxu0 }
 0x151   :  { %801 = vadd.xlane.f32.xlu1 %v767_v55  ;;  %v774_v29 = vmul.f32 %v704_v19, %v461_v25  ;;  %v700_v53 = vrot.slane %v634_v18, %v2263_v45  ;;  %v2402_v59 = vmul.f32 %v736_v27, %v476_v3  ;;  %v465_v1 = vmax.f32 %v377_v43, 0.0  ;;  %v392_v6 = vpop.f32.mrb[19].mxu0 }
 0x152   :  { %v401_v33 = vadd.f32 %v1826_v63, %v2260_v41  ;;  %v2407_v39 = vmul.f32 %v736_v27, %v477_v9  ;;  %v631_v50 = vrot.slane %v603_v5, %v2300_v2  ;;  %v470_v54 = vmax.f32 %v2394_v62, 0.0 }
 0x153   :  { %v393_v61 = vadd.f32 %v2260_v41, %v392_v6  ;;  %799 = vadd.xlane.f32.xlu0 %v766_v14  ;;  %v771_v56 = vmul.f32 %v700_v53, %v458_v35  ;;  %v772_v3 = vmul.f32 %v700_v53, %v459_v40  ;;  %v468_v25 = vmax.f32 %v2397_v36, 0.0 }
 0x154   :  { %v708_v43 = vrot.slane %v631_v50, %v2263_v45  ;;  %v712_v60 = vrot.slane %v633_v4, %v2263_v45  ;;  %v652_v9 = vcombine.high %v2365_v21, %v2365_v21  ;;  %v471_v46 = vmax.f32 %v401_v33, 0.0 }
 0x155   :  { %803 = vadd.xlane.f32.xlu1 %v768_v58  ;;  %v682_v55 = vcombine.high %v666_v47, %v666_v47  ;;  %v635_v10 = vcombine.high %v631_v50, %v631_v50  ;;  %v673_v14 = vrot.slane %v651_v24, %v2300_v2  ;;  %v469_v16 = vmax.f32 %v393_v61, 0.0 }
 0x156   :  { %v775_v13 = vmul.f32 %v708_v43, %v462_v52  ;;  %v776_v20 = vmul.f32 %v708_v43, %v463_v12  ;;  %v777_v35 = vmul.f32 %v712_v60, %v464_v31  ;;  %v778_v40 = vmul.f32 %v712_v60, %v465_v1  ;;  %v1829_v4 = vpop.f32.mrb[20].mxu0 }
 0x157   :  { %805 = vadd.xlane.f32.xlu0 %v769_v34  ;;  %v680_v19 = vrot.slane %v652_v9, %v2300_v2  ;;  %v744_v21 = vrot.slane %v682_v55, %v2263_v45  ;;  %v716_v47 = vrot.slane %v635_v10, %v2263_v45  ;;  %v414_v18 = vadd.f32 %v1829_v4, %v2260_v41  ;;  %v405_v24 = vpop.f32.mrb[21].mxu0 }
 0x158   :  { %v724_v30 = vrot.slane %v673_v14, %v2263_v45  ;;  %v683_v52 = vcombine.high %v673_v14, %v673_v14  ;;  %v406_v12 = vadd.f32 %v2260_v41, %v405_v24  ;;  %v1830_v31 = vpop.f32.mrb[22].mxu0  ;;  %v2826_v36 = vmax.f32 %v2357_v8, 0.0 }
 0x159   :  { %807 = vadd.xlane.f32.xlu1 %v770_v44  ;;  %v740_v27 = vrot.slane %v680_v19, %v2263_v45  ;;  %v793_v58 = vmul.f32 %v744_v21, %v480_v37  ;;  %v794_v5 = vmul.f32 %v744_v21, %v481_v48  ;;  %v474_v62 = vmax.f32 %v414_v18, 0.0  ;;  %v408_v34 = vpop.f32.mrb[23].mxu0 }
 0x15a   :  { %v417_v11 = vadd.f32 %v1830_v31, %v2260_v41  ;;  %v779_v2 = vmul.f32 %v716_v47, %v2826_v36  ;;  %v784_v7 = vmul.f32 %v724_v30, %v471_v46  ;;  %v472_v63 = vmax.f32 %v406_v12, 0.0 }
 0x15b   :  { %v409_v44 = vadd.f32 %v2260_v41, %v408_v34  ;;  %813 = vadd.xlane.f32.xlu0 %v773_v0  ;;  %v2827_v53 = vmax.f32 %v2272_v51, 0.0  ;;  %v792_v37 = vmul.f32 %v740_v27, %v2828_v15  ;;  %v783_v48 = vmul.f32 %v724_v30, %v470_v54 }
 0x15c   :  { %v475_v23 = vmax.f32 %v417_v11, 0.0  ;;  %v720_v33 = vrot.slane %v659_v42, %v2263_v45  ;;  %v732_v6 = vrot.slane %v683_v52, %v2263_v45  ;;  %v681_v8 = vcombine.high %v659_v42, %v659_v42 }
 0x15d   :  { %v791_v1 = vmul.f32 %v740_v27, %v2827_v53  ;;  %v473_v50 = vmax.f32 %v409_v44, 0.0  ;;  %815 = vadd.xlane.f32.xlu1 %v774_v29  ;;  %v2829_v61 = vmax.f32 %v2370_v26, 0.0  ;;  %v684_v41 = vcombine.high %v680_v19, %v680_v19 }
 0x15e   :  { %v782_v0 = vmul.f32 %v720_v33, %v469_v16  ;;  %v781_v60 = vmul.f32 %v720_v33, %v468_v25  ;;  %v788_v51 = vmul.f32 %v732_v6, %v475_v23  ;;  %v787_v9 = vmul.f32 %v732_v6, %v474_v62 }
 0x15f   :  { %v780_v43 = vmul.f32 %v716_v47, %v2829_v61  ;;  %v483_v46 = vmax.f32 %v2339_v32, 0.0  ;;  %809 = vadd.xlane.f32.xlu0 %v771_v56  ;;  %v728_v54 = vrot.slane %v681_v8, %v2263_v45  ;;  %v748_v55 = vrot.slane %v684_v41, %v2263_v45 }
 0x160   :  { %v2830_v36 = vlaneseq }
 0x161   :  { %811 = vadd.xlane.f32.xlu1 %v772_v3  ;;  %v786_v29 = vmul.f32 %v728_v54, %v473_v50  ;;  %v785_v10 = vmul.f32 %v728_v54, %v472_v63  ;;  %v795_v14 = vmul.f32 %v748_v55, %v482_v57  ;;  %v796_v26 = vmul.f32 %v748_v55, %v483_v46 }
 0x163   :  { %845 = vadd.xlane.f32.xlu0 %v2402_v59 }
 0x165   :  { %847 = vadd.xlane.f32.xlu1 %v2407_v39 }
 0x167   :  { %817 = vadd.xlane.f32.xlu0 %v775_v13 }
 0x169   :  { %819 = vadd.xlane.f32.xlu1 %v776_v20 }
 0x16b   :  { %821 = vadd.xlane.f32.xlu0 %v777_v35 }
 0x16d   :  { %823 = vadd.xlane.f32.xlu1 %v778_v40 }
 0x16f   :  { %849 = vadd.xlane.f32.xlu0 %v791_v1 }
 0x171   :  { %851 = vadd.xlane.f32.xlu1 %v792_v37 }
 0x173   :  { %853 = vadd.xlane.f32.xlu0 %v793_v58 }
 0x175   :  { %855 = vadd.xlane.f32.xlu1 %v794_v5 }
 0x177   :  { %825 = vadd.xlane.f32.xlu0 %v779_v2  ;;  %v2484_v2 = vand.u32 127, %v2830_v36 }
 0x179   :  { %835 = vadd.xlane.f32.xlu1 %v784_v7  ;;  %v974_v63 = vadd.s32 4294967288, %v2484_v2  ;;  %v2495_v1 = vsub.s32 %v2484_v2, %v2255_v38  ;;  %vm937_vm10 = vcmp.lt.s32.totalorder %v2484_v2, 12 }
 0x17b   :  { %833 = vadd.xlane.f32.xlu0 %v783_v48  ;;  %v2498_v15 = vsub.s32 %v974_v63, %v2255_v38 }
 0x17d   :  { %831 = vadd.xlane.f32.xlu1 %v782_v0 }
 0x17f   :  { %829 = vadd.xlane.f32.xlu0 %v781_v60 }
 0x181   :  { %843 = vadd.xlane.f32.xlu1 %v788_v51 }
 0x183   :  { %841 = vadd.xlane.f32.xlu0 %v787_v9 }
 0x185   :  { %839 = vadd.xlane.f32.xlu1 %v786_v29 }
 0x187   :  { %837 = vadd.xlane.f32.xlu0 %v785_v10 }
 0x189   :  { %827 = vadd.xlane.f32.xlu1 %v780_v43 }
 0x18b   :  { %857 = vadd.xlane.f32.xlu0 %v795_v14 }
 0x18d   :  { %859 = vadd.xlane.f32.xlu1 %v796_v26 }
 0x1a1   :  { %868 = vperm.xlu0 %1871, %v1772_v22  }
 0x1dc   :  { %v798_v32 = vpop.xlane.xlu0 %797 }
 0x1de   :  { %v802_v59 = vpop.xlane.xlu1 %801 }
 0x1e0   :  { %v800_v39 = vpop.xlane.xlu0 %799 }
 0x1e2   :  { %v804_v56 = vpop.xlane.xlu1 %803 }
 0x1e4   :  { %v806_v3 = vpop.xlane.xlu0 %805 }
 0x1e6   :  { %v808_v25 = vpop.xlane.xlu1 %807 }
 0x1e8   :  { %v814_v13 = vpop.xlane.xlu0 %813 }
 0x1ea   :  { %v816_v20 = vpop.xlane.xlu1 %815 }
 0x1ec   :  { %v810_v35 = vpop.xlane.xlu0 %809 }
 0x1ee   :  { %v812_v40 = vpop.xlane.xlu1 %811 }
 0x1f0   :  { %v2457_v16 = vpop.xlane.xlu0 %845 }
 0x1f2   :  { %v2459_v4 = vpop.xlane.xlu1 %847 }
 0x1f4   :  { %v818_v19 = vpop.xlane.xlu0 %817 }
 0x1f6   :  { %v820_v21 = vpop.xlane.xlu1 %819 }
 0x1f8   :  { %v822_v47 = vpop.xlane.xlu0 %821 }
 0x1fa   :  { %v824_v18 = vpop.xlane.xlu1 %823 }
 0x1fc   :  { %v2461_v24 = vpop.xlane.xlu0 %849 }
 0x1fe   :  { %v2463_v30 = vpop.xlane.xlu1 %851 }
 0x200   :  { %v2465_v42 = vpop.xlane.xlu0 %853 }
 0x202   :  { %v2467_v12 = vpop.xlane.xlu1 %855 }
 0x204   :  { %v826_v52 = vpop.xlane.xlu0 %825 }
 0x206   :  { %v2471_v27 = vpop.xlane.xlu1 %835 }
 0x208   :  { %v2469_v31 = vpop.xlane.xlu0 %833 }
 0x20a   :  { %v2477_v62 = vpop.xlane.xlu1 %831 }
 0x20c   :  { %v2473_v58 = vpop.xlane.xlu0 %829 }
 0x20e   :  { %v2481_v34 = vpop.xlane.xlu1 %843 }
 0x210   :  { %v2475_v5 = vpop.xlane.xlu0 %841 }
 0x212   :  { %v2489_v44 = vpop.xlane.xlu1 %839 }
 0x214   :  { %v2479_v11 = vpop.xlane.xlu0 %837 }
 0x216   :  { %v828_v43 = vpop.xlane.xlu1 %827 }
 0x218   :  { %v2486_v7 = vpop.xlane.xlu0 %857 }
 0x220   :  { %v2491_v53 = vpop.permute.xlu0 %868 }
 0x221   :  { %v871_v37 = vadd.f32 %v2491_v53, %v798_v32  ;;  %v872_v23 = vadd.f32 %v2491_v53, %v800_v39  ;;  %v873_v48 = vadd.f32 %v2491_v53, %v802_v59  ;;  %v874_v33 = vadd.f32 %v2491_v53, %v804_v56 }
 0x222   :  { %v875_v6 = vadd.f32 %v2491_v53, %v806_v3  ;;  %v876_v50 = vadd.f32 %v2491_v53, %v808_v25  ;;  %v877_v8 = vadd.f32 %v2491_v53, %v810_v35  ;;  %v878_v61 = vadd.f32 %v2491_v53, %v812_v40 }
 0x223   :  { %v879_v41 = vadd.f32 %v2491_v53, %v814_v13  ;;  %v880_v0 = vadd.f32 %v2491_v53, %v816_v20  ;;  %v881_v60 = vadd.f32 %v2491_v53, %v818_v19  ;;  %v882_v51 = vadd.f32 %v2491_v53, %v820_v21 }
 0x224   :  { %v883_v9 = vadd.f32 %v2491_v53, %v822_v47  ;;  %v884_v57 = vadd.f32 %v2491_v53, %v824_v18  ;;  %v885_v46 = vadd.f32 %v2491_v53, %v826_v52  ;;  %v886_v54 = vadd.f32 %v2491_v53, %v828_v43 }
 0x225   :  { %v903_v55 = vmax.f32 %v871_v37, 0.0  ;;  %v904_v29 = vmax.f32 %v872_v23, 0.0  ;;  %v905_v10 = vmax.f32 %v873_v48, 0.0  ;;  %v906_v14 = vmax.f32 %v874_v33, 0.0 }
 0x226   :  { %v907_v26 = vmax.f32 %v875_v6, 0.0  ;;  %v908_v22 = vmax.f32 %v876_v50, 0.0  ;;  %v909_v32 = vmax.f32 %v877_v8, 0.0  ;;  %v910_v59 = vmax.f32 %v878_v61, 0.0 }
 0x227   :  { %v911_v39 = vmax.f32 %v879_v41, 0.0  ;;  %v912_v56 = vmax.f32 %v880_v0, 0.0  ;;  %v913_v3 = vmax.f32 %v881_v60, 0.0  ;;  %v914_v25 = vmax.f32 %v882_v51, 0.0 }
 0x228   :  { %v915_v13 = vmax.f32 %v883_v9, 0.0  ;;  %v916_v20 = vmax.f32 %v884_v57, 0.0  ;;  %v917_v35 = vmax.f32 %v885_v46, 0.0  ;;  %v918_v40 = vmax.f32 %v886_v54, 0.0 }
 0x229   :  { %v973_v19 = vrot.slane %v903_v55, %v2495_v1  ;;  %v978_v21 = vrot.slane %v904_v29, %v2498_v15  ;;  %v984_v47 = vrot.slane %v905_v10, %v2495_v1  ;;  %v988_v18 = vrot.slane %v906_v14, %v2498_v15 }
 0x22a   :  { %v993_v52 = vrot.slane %v907_v26, %v2495_v1  ;;  %v997_v36 = vrot.slane %v908_v22, %v2498_v15  ;;  %v1002_v63 = vrot.slane %v909_v32, %v2495_v1  ;;  %v1006_v37 = vrot.slane %v910_v59, %v2498_v15 }
 0x22b   :  { %v980_v23 = vsel %vm979_vm3, %v978_v21, %v973_v19  ;;  %v989_v48 = vsel %vm979_vm3, %v988_v18, %v984_v47  ;;  %v1011_v33 = vrot.slane %v911_v39, %v2495_v1  ;;  %v1015_v6 = vrot.slane %v912_v56, %v2498_v15 }
 0x22c   :  { %v998_v50 = vsel %vm979_vm3, %v997_v36, %v993_v52  ;;  %v1020_v8 = vrot.slane %v913_v3, %v2495_v1  ;;  %v1024_v61 = vrot.slane %v914_v25, %v2498_v15  ;;  %v1029_v43 = vrot.slane %v915_v13, %v2495_v1 }
 0x22d   :  { %v1033_v41 = vrot.slane %v916_v20, %v2498_v15  ;;  %v1038_v0 = vrot.slane %v917_v35, %v2495_v1  ;;  %v1007_v60 = vsel %vm979_vm3, %v1006_v37, %v1002_v63  ;;  %v1016_v51 = vsel %vm979_vm3, %v1015_v6, %v1011_v33 }
 0x22e   :  { %v1042_v9 = vrot.slane %v918_v40, %v2498_v15  ;;  %v1117_v57 = vsel %vm1116_vm4, %v989_v48, %v980_v23  ;;  %v1025_v46 = vsel %vm979_vm3, %v1024_v61, %v1020_v8  ;;  %v887_v29 = vadd.f32 %v2491_v53, %v2473_v58  ;;  %v860_v40 = vpop.xlane.xlu1 %859 }
 0x22f   :  { %v1034_v54 = vsel %vm979_vm3, %v1033_v41, %v1029_v43  ;;  %v1119_v55 = vsel %vm1118_vm5, %v998_v50, %v1117_v57  ;;  %v888_v26 = vadd.f32 %v2491_v53, %v2477_v62  ;;  %v889_v22 = vadd.f32 %v2491_v53, %v2469_v31 }
 0x230   :  { %v1043_v10 = vsel %vm979_vm3, %v1042_v9, %v1038_v0  ;;  %v1121_v14 = vsel %vm1120_vm6, %v1007_v60, %v1119_v55  ;;  %v890_v59 = vadd.f32 %v2491_v53, %v2471_v27  ;;  %v891_v39 = vadd.f32 %v2491_v53, %v2479_v11 }
 0x231   :  { %v1123_v32 = vsel %vm1122_vm7, %v1016_v51, %v1121_v14  ;;  %v892_v58 = vadd.f32 %v2491_v53, %v2489_v44  ;;  %v893_v3 = vadd.f32 %v2491_v53, %v2475_v5  ;;  %v894_v62 = vadd.f32 %v2491_v53, %v2481_v34 }
 0x232   :  { %v1125_v56 = vsel %vm1124_vm8, %v1025_v46, %v1123_v32  ;;  %v895_v31 = vadd.f32 %v2491_v53, %v2457_v16  ;;  %v896_v27 = vadd.f32 %v2491_v53, %v2459_v4  ;;  %v897_v11 = vadd.f32 %v2491_v53, %v2461_v24 }
 0x233   :  { %v1127_v25 = vsel %vm1126_vm9, %v1034_v54, %v1125_v56  ;;  %v898_v44 = vadd.f32 %v2491_v53, %v2463_v30  ;;  %v899_v5 = vadd.f32 %v2491_v53, %v2465_v42  ;;  %v900_v34 = vadd.f32 %v2491_v53, %v2467_v12 }
 0x234   :  { %v1129_v13 = vsel %vm1128_vm11, %v1043_v10, %v1127_v25  ;;  %v901_v16 = vadd.f32 %v2491_v53, %v2486_v7  ;;  %v919_v20 = vmax.f32 %v887_v29, 0.0  ;;  %v920_v35 = vmax.f32 %v888_v26, 0.0 }
 0x235   :  { %v1139_v4 = vsel %vm937_vm10, %v1129_v13, -inf  ;;  %v921_v24 = vmax.f32 %v889_v22, 0.0  ;;  %v922_v19 = vmax.f32 %v890_v59, 0.0  ;;  %v923_v21 = vmax.f32 %v891_v39, 0.0 }
 0x236   :  { %v1142_v30 = vsel %vm1141_vm12, %v1139_v4, -inf  ;;  %v924_v47 = vmax.f32 %v892_v58, 0.0  ;;  %v902_v42 = vadd.f32 %v2491_v53, %v860_v40  ;;  %v925_v18 = vmax.f32 %v893_v3, 0.0 }
 0x237   :  { %1143 = vmax.xlane.f32.xlu1 %v1142_v30  ;;  %v926_v12 = vmax.f32 %v894_v62, 0.0  ;;  %v927_v52 = vmax.f32 %v895_v31, 0.0  ;;  %v928_v36 = vmax.f32 %v896_v27, 0.0  ;;  %v929_v7 = vmax.f32 %v897_v11, 0.0 }
 0x238   :  { %v930_v63 = vmax.f32 %v898_v44, 0.0  ;;  %v931_v37 = vmax.f32 %v899_v5, 0.0  ;;  %v932_v23 = vmax.f32 %v900_v34, 0.0  ;;  %v1047_v48 = vrot.slane %v919_v20, %v2495_v1 }
 0x239   :  { %v1051_v33 = vrot.slane %v920_v35, %v2498_v15  ;;  %v1056_v6 = vrot.slane %v921_v24, %v2495_v1  ;;  %v933_v50 = vmax.f32 %v901_v16, 0.0  ;;  %v1060_v8 = vrot.slane %v922_v19, %v2498_v15 }
 0x23a   :  { %v1065_v61 = vrot.slane %v923_v21, %v2495_v1  ;;  %v1069_v53 = vrot.slane %v924_v47, %v2498_v15  ;;  %v934_v43 = vmax.f32 %v902_v42, 0.0  ;;  %v1074_v0 = vrot.slane %v925_v18, %v2495_v1 }
 0x23b   :  { %v1052_v41 = vsel %vm979_vm3, %v1051_v33, %v1047_v48  ;;  %v1078_v60 = vrot.slane %v926_v12, %v2498_v15  ;;  %v1061_v51 = vsel %vm979_vm3, %v1060_v8, %v1056_v6  ;;  %v1083_v57 = vrot.slane %v927_v52, %v2495_v1 }
 0x23c   :  { %v1070_v9 = vsel %vm979_vm3, %v1069_v53, %v1065_v61  ;;  %v1087_v46 = vrot.slane %v928_v36, %v2498_v15  ;;  %v1092_v54 = vrot.slane %v929_v7, %v2495_v1  ;;  %v1096_v55 = vrot.slane %v930_v63, %v2498_v15 }
 0x23d   :  { %v1101_v29 = vrot.slane %v931_v37, %v2495_v1  ;;  %v1105_v10 = vrot.slane %v932_v23, %v2498_v15  ;;  %v1130_v14 = vsel %vm1116_vm4, %v1061_v51, %v1052_v41  ;;  %v1079_v26 = vsel %vm979_vm3, %v1078_v60, %v1074_v0 }
 0x23e   :  { %v1110_v22 = vrot.slane %v933_v50, %v2495_v1  ;;  %v1114_v32 = vrot.slane %v934_v43, %v2498_v15  ;;  %v1131_v59 = vsel %vm1118_vm5, %v1070_v9, %v1130_v14  ;;  %v1088_v39 = vsel %vm979_vm3, %v1087_v46, %v1083_v57  ;;  %v1898_v57 = vld [vmem:[%s2821_s8 + $0x8] sm:$0xff]   ;;  %v1899_v46 = vld [vmem:[%s2821_s8 + $0x10] ss:$0 sps:$4 sm:$0xff]  }
 0x23f   :  { %v1132_v58 = vsel %vm1120_vm6, %v1079_v26, %v1131_v59  ;;  %v1097_v56 = vsel %vm979_vm3, %v1096_v55, %v1092_v54  ;;  %v1106_v62 = vsel %vm979_vm3, %v1105_v10, %v1101_v29  ;;  %v1188_v19 = vsub.s32 2, %v2255_v38  ;;  %v1924_v26 = vld [vmem:[#allocation3] sm:$0xff]  }
 0x240   :  { %v1133_v3 = vsel %vm1122_vm7, %v1088_v39, %v1132_v58  ;;  %v1115_v25 = vsel %vm979_vm3, %v1114_v32, %v1110_v22  ;;  %v1199_v18 = vsub.s32 3, %v2255_v38  ;;  %v1210_v36 = vsub.s32 4, %v2255_v38 }
 0x241   :  { %v1134_v31 = vsel %vm1124_vm8, %v1097_v56, %v1133_v3  ;;  %v1221_v37 = vsub.s32 5, %v2255_v38  ;;  %v1232_v48 = vsub.s32 6, %v2255_v38  ;;  %v1243_v8 = vsub.s32 7, %v2255_v38  ;;  %v1925_v3 = vld [vmem:[#allocation3 + $0x8] sm:$0xff]  }
 0x242   :  { %v1135_v1 = vsel %vm1126_vm9, %v1106_v62, %v1134_v31  ;;  %v2092_v9 = vmov 0.0   ;;  %v1642_v54 = vsel %vm287_vm1, %v1899_v46, 0  ;;  %v1341_v22 = vunpack.c.h.bf16 %v1924_v26 }
 0x243   :  { %v1136_v15 = vsel %vm1128_vm11, %v1115_v25, %v1135_v1  ;;  %1839 = vmatprep.subr.bf16.mxu1 %v2092_v9  ;;  %1845 = vmatprep.mubr.msk.bf16.mxu1 %vm2093_vm13, %v2092_v9  ;;  %v1340_v39 = vunpack.c.l.bf16 %v1924_v26  ;;  %v1343_v62 = vunpack.c.h.bf16 %v1925_v3  ;;  %v1342_v1 = vunpack.c.l.bf16 %v1925_v3  ;;  %v2678_v3 = vld [vmem:[#allocation3 + $0x58] sm:$0xff]  }
 0x244   :  { %v1140_v27 = vsel %vm937_vm10, %v1136_v15, -inf }
 0x245   :  { %v1145_v11 = vsel %vm1141_vm12, %v1140_v27, -inf }
 0x246   :  { %1146 = vmax.xlane.f32.xlu1 %v1145_v11 }
 0x2c4   :  { %v1144_v44 = vpop.xlane.xlu1 %1143 }
 0x2c5   :  { %v1148_v13 = vsub.f32 %v1139_v4, %v1144_v44 }
 0x2c7   :  { %v1150_v5 = vmul.f32 1.442695, %v1148_v13 }
 0x2c9   :  { %1916 = vpow2.f32 %v1150_v5 }
 0x2d3   :  { %v1917_v34 = vpop.eup %1916  ;;  %v1147_v16 = vpop.xlane.xlu1 %1146 }
 0x2d4   :  { %v1154_v20 = vsel %vm1141_vm12, %v1917_v34, 0.0  ;;  %v1149_v35 = vsub.f32 %v1140_v27, %v1147_v16 }
 0x2d5   :  { %1155 = vadd.xlane.f32.xlu1 %v1154_v20 }
 0x2d6   :  { %v1152_v24 = vmul.f32 1.442695, %v1149_v35 }
 0x2d8   :  { %1918 = vpow2.f32 %v1152_v24 }
 0x2e2   :  { %v1919_v40 = vpop.eup %1918 }
 0x2e3   :  { %v1157_v30 = vsel %vm1141_vm12, %v1919_v40, 0.0 }
 0x2e4   :  { %1158 = vadd.xlane.f32.xlu1 %v1157_v30 }
 0x362   :  { %v1156_v2 = vpop.xlane.xlu1 %1155 }
 0x363   :  { %1920 = vrcp.f32 %v1156_v2  ;;  %v1926_v2 = vld [vmem:[#allocation3 + $0x10] sm:$0xff]  }
 0x36d   :  { %v1921_v21 = vpop.eup %1920 }
 0x36e   :  { %v1162_v4 = vmul.f32 %v1921_v21, %v1917_v34 }
 0x370   :  { %1691 = vst.msk [vmem:[#allocation12] sm:$0xff] %vm1141_vm12, %v1162_v4  ;;  %v1189_v47 = vrot.slane %v1162_v4, %v1188_v19  ;;  %v1167_v42 = vrot.slane %v1162_v4, %v2263_v45  ;;  %v1200_v52 = vrot.slane %v1162_v4, %v1199_v18  ;;  %v1211_v7 = vrot.slane %v1162_v4, %v1210_v36 }
 0x371   :  { %v1159_v12 = vpop.xlane.xlu1 %1158  ;;  %v1178_v63 = vrot.slane %v1162_v4, %v2269_v49  ;;  %v1222_v23 = vrot.slane %v1162_v4, %v1221_v37  ;;  %v1233_v50 = vrot.slane %v1162_v4, %v1232_v48  ;;  %v1244_v61 = vrot.slane %v1162_v4, %v1243_v8 }
 0x372   :  { %1191 = vbcast.lane.b32.xlu0 %v1189_v47, 256  ;;  %1169 = vbcast.lane.b32.xlu1 %v1167_v42, 256  ;;  %1922 = vrcp.f32 %v1159_v12 }
 0x376   :  { %1202 = vbcast.lane.b32.xlu0 %v1200_v52, 256  ;;  %1173 = vbcast.lane.b32.xlu1 %v1167_v42, 264 }
 0x37a   :  { %1213 = vbcast.lane.b32.xlu0 %v1211_v7, 256  ;;  %1180 = vbcast.lane.b32.xlu1 %v1178_v63, 256 }
 0x37c   :  { %v1923_v33 = vpop.eup %1922 }
 0x37d   :  { %v1163_v6 = vmul.f32 %v1923_v33, %v1919_v40 }
 0x37e   :  { %1224 = vbcast.lane.b32.xlu0 %v1222_v23, 256  ;;  %1184 = vbcast.lane.b32.xlu1 %v1178_v63, 264 }
 0x37f   :  { %1692 = vst.msk [vmem:[#allocation12 + $0x8] sm:$0xff] %vm1141_vm12, %v1163_v6  ;;  %v1255_v53 = vrot.slane %v1163_v6, %v2263_v45  ;;  %v1266_v43 = vrot.slane %v1163_v6, %v2269_v49  ;;  %v1277_v41 = vrot.slane %v1163_v6, %v1188_v19  ;;  %v1288_v0 = vrot.slane %v1163_v6, %v1199_v18  ;;  %v1897_v49 = vld [vmem:[%s2821_s8] sm:$0xff]   ;;  %s2094_s8 = smov [#allocation12]  }
 0x380   :  { %v1299_v38 = vrot.slane %v1163_v6, %v1210_v36  ;;  %v1310_v60 = vrot.slane %v1163_v6, %v1221_v37  ;;  %v1321_v51 = vrot.slane %v1163_v6, %v1232_v48  ;;  %v1332_v45 = vrot.slane %v1163_v6, %v1243_v8  ;;  %1840 = vmatpush3.bf16.msra.mxu1 %v1897_v49  ;;  %v1927_v48 = vld [vmem:[#allocation3 + $0x18] sm:$0xff]   ;;  %s1710_s0 = sshll.u32 %s2094_s8, 4  ;;  %s1711_s0 = int_to_ptr.vmem [resolvable:$true] %s1710_s0 }
 0x381   :  { %1841 = vmatprep.subr.bf16.mxu1 %v2092_v9  ;;  %v1345_v19 = vunpack.c.h.bf16 %v1926_v2  ;;  %v1346_v33 = vunpack.c.l.bf16 %v1927_v48  ;;  %v1347_v6 = vunpack.c.h.bf16 %v1927_v48  ;;  %s2028_s22 = scalar_lea.vmem %s1711_s0, 256  ;;  %p2033_p5 = scmp.lt.s32.totalorder %s1711_s0, %s1711_s0 }
 0x382   :  { %1235 = vbcast.lane.b32.xlu0 %v1233_v50, 256  ;;  %1195 = vbcast.lane.b32.xlu1 %v1189_v47, 264  ;;  %v1344_v47 = vunpack.c.l.bf16 %v1926_v2  ;;  %p2029_p4 = scmp.ne.s32.totalorder %s1711_s0, %s2028_s22  ;;  %p2034_p6 = scmp.lt.s32.totalorder %s2028_s22, %s2028_s22 }
 0x384   :  { %1842 = vmatpush3.bf16.msra.mxu1 %v1898_v57  ;;  %p2035_p7 = por %p2034_p6, %p2033_p5 }
 0x385   :  { %1843 = vmatprep.subr.bf16.mxu1 %v2092_v9  ;;  %v1932_v9 = vld [vmem:[#allocation3 + $0x40] sm:$0xff]  }
 0x386   :  { %1246 = vbcast.lane.b32.xlu0 %v1244_v61, 256  ;;  %1206 = vbcast.lane.b32.xlu1 %v1200_v52, 264  ;;  %v1356_v57 = vunpack.c.l.bf16 %v1932_v9  ;;  %p2036_p8 = pnand %p2035_p7, %p2029_p4 }
 0x388   :  { %1844 = vmatpush3.bf16.msra.mxu1 %v1642_v54 }
 0x38a   :  { %1217 = vbcast.lane.b32.xlu1 %v1211_v7, 264  ;;  %1257 = vbcast.lane.b32.xlu0 %v1255_v53, 256 }
 0x38e   :  { %1228 = vbcast.lane.b32.xlu1 %v1222_v23, 264  ;;  %1268 = vbcast.lane.b32.xlu0 %v1266_v43, 256 }
 0x392   :  { %1239 = vbcast.lane.b32.xlu1 %v1233_v50, 264  ;;  %1279 = vbcast.lane.b32.xlu0 %v1277_v41, 256 }
 0x396   :  { %1250 = vbcast.lane.b32.xlu1 %v1244_v61, 264  ;;  %1290 = vbcast.lane.b32.xlu0 %v1288_v0, 256  ;;  %v1928_v61 = vld [vmem:[#allocation3 + $0x20] sm:$0xff]  }
 0x397   :  { %v1349_v54 = vunpack.c.h.bf16 %v1928_v61 }
 0x39a   :  { %1261 = vbcast.lane.b32.xlu1 %v1255_v53, 264  ;;  %1301 = vbcast.lane.b32.xlu0 %v1299_v38, 256  ;;  %v1348_v53 = vunpack.c.l.bf16 %v1928_v61 }
 0x39e   :  { %1272 = vbcast.lane.b32.xlu1 %v1266_v43, 264  ;;  %1312 = vbcast.lane.b32.xlu0 %v1310_v60, 256  ;;  %v2664_v43 = vld [vmem:[#allocation3 + $0x28] sm:$0xff]  }
 0x3a2   :  { %1283 = vbcast.lane.b32.xlu1 %v1277_v41, 264  ;;  %1323 = vbcast.lane.b32.xlu0 %v1321_v51, 256  ;;  %v1350_v41 = vunpack.c.l.bf16 %v2664_v43 }
 0x3a6   :  { %1294 = vbcast.lane.b32.xlu1 %v1288_v0, 264  ;;  %1334 = vbcast.lane.b32.xlu0 %v1332_v45, 256  ;;  %v2667_v0 = vld [vmem:[#allocation3 + $0x30] sm:$0xff]  }
 0x3aa   :  { %1305 = vbcast.lane.b32.xlu1 %v1299_v38, 264  ;;  %v1352_v38 = vunpack.c.l.bf16 %v2667_v0 }
 0x3ae   :  { %1316 = vbcast.lane.b32.xlu1 %v1310_v60, 264 }
 0x3b2   :  { %1327 = vbcast.lane.b32.xlu1 %v1321_v51, 264 }
 0x3b6   :  { %1338 = vbcast.lane.b32.xlu1 %v1332_v45, 264  ;;  %v2670_v45 = vld [vmem:[#allocation3 + $0x38] sm:$0xff]  }
 0x3b7   :  { %v1354_v49 = vunpack.c.l.bf16 %v2670_v45 }
 0x3e4   :  { %v1192_v55 = vpop.permute.xlu0 %1191  ;;  %v1170_v29 = vpop.permute.xlu1 %1169 }
 0x3e5   :  { %v1372_v25 = vmul.f32 %v1340_v39, %v1170_v29  ;;  %v1376_v36 = vmul.f32 %v1344_v47, %v1192_v55  ;;  %v1933_v55 = vld [vmem:[#allocation3 + $0x48] sm:$0xff]  }
 0x3e6   :  { %v1358_v29 = vunpack.c.l.bf16 %v1933_v55 }
 0x3e7   :  { %v1404_v13 = vsel %vm238_vm0, %v1372_v25, 0.0  ;;  %v1422_v8 = vsel %vm238_vm0, %v1376_v36, 0.0  ;;  %v1355_v25 = vunpack.c.h.bf16 %v2670_v45 }
 0x3e8   :  { %v2640_v10 = vpop.permute.xlu0 %1202  ;;  %v1174_v14 = vpop.permute.xlu1 %1173 }
 0x3e9   :  { %v1373_v58 = vmul.f32 %v1341_v22, %v1174_v14  ;;  %v1351_v14 = vunpack.c.h.bf16 %v2664_v43 }
 0x3eb   :  { %v1405_v15 = vsel %vm238_vm0, %v1373_v58, 0.0  ;;  %v1353_v58 = vunpack.c.h.bf16 %v2667_v0 }
 0x3ec   :  { %v2642_v32 = vpop.permute.xlu0 %1213  ;;  %v1181_v59 = vpop.permute.xlu1 %1180  ;;  %v1406_v5 = vadd.f32 %v1405_v15, %v1404_v13 }
 0x3ed   :  { %v1374_v34 = vmul.f32 %v1342_v1, %v1181_v59  ;;  %v2674_v59 = vld [vmem:[#allocation3 + $0x50] sm:$0xff]   ;;  %v2682_v1 = vld [vmem:[#allocation3 + $0x60] sm:$0xff]  }
 0x3ee   :  { %v1407_v24 = vrot.slane %v1406_v5, 4  ;;  %v1360_v39 = vunpack.c.l.bf16 %v2674_v59  ;;  %v1364_v15 = vunpack.c.l.bf16 %v2682_v1 }
 0x3ef   :  { %v1413_v40 = vsel %vm238_vm0, %v1374_v34, 0.0 }
 0x3f0   :  { %v2644_v56 = vpop.permute.xlu0 %1224  ;;  %v1185_v31 = vpop.permute.xlu1 %1184  ;;  %v1408_v42 = vadd.f32 %v1407_v24, %v1406_v5  ;;  %v1378_v5 = vmul.f32 %v1346_v33, %v2640_v10  ;;  %v1380_v24 = vmul.f32 %v1348_v53, %v2642_v32  ;;  %v2697_v10 = vld [vmem:[#allocation3 + $0x78] sm:$0xff]  }
 0x3f1   :  { %v1375_v27 = vmul.f32 %v1343_v62, %v1185_v31  ;;  %v1362_v62 = vunpack.c.l.bf16 %v2678_v3  ;;  %v1382_v47 = vmul.f32 %v1350_v41, %v2644_v56  ;;  %v1370_v36 = vunpack.c.l.bf16 %v2697_v10 }
 0x3f2   :  { %v1409_v63 = vrot.slane %v1408_v42, 2  ;;  %v1431_v33 = vsel %vm238_vm0, %v1378_v5, 0.0  ;;  %v1371_v43 = vunpack.c.h.bf16 %v2697_v10 }
 0x3f3   :  { %v1414_v16 = vsel %vm238_vm0, %v1375_v27, 0.0  ;;  %v1357_v27 = vunpack.c.h.bf16 %v1932_v9 }
 0x3f4   :  { %v2647_v11 = vpop.permute.xlu0 %1235  ;;  %v1196_v44 = vpop.permute.xlu1 %1195  ;;  %v1415_v30 = vadd.f32 %v1414_v16, %v1413_v40  ;;  %v1410_v60 = vadd.f32 %v1409_v63, %v1408_v42 }
 0x3f5   :  { %v1377_v12 = vmul.f32 %v1345_v19, %v1196_v44  ;;  %v2685_v44 = vld [vmem:[#allocation3 + $0x68] sm:$0xff]   ;;  %v1361_v19 = vunpack.c.h.bf16 %v2674_v59  ;;  %v1384_v42 = vmul.f32 %v1352_v38, %v2647_v11 }
 0x3f6   :  { %v1416_v18 = vrot.slane %v1415_v30, 4  ;;  %v1366_v13 = vunpack.c.l.bf16 %v2685_v44  ;;  %v1411_v34 = vrot.slane %v1410_v60, 1  ;;  %v1367_v48 = vunpack.c.h.bf16 %v2685_v44 }
 0x3f7   :  { %v1423_v23 = vsel %vm238_vm0, %v1377_v12, 0.0  ;;  %v1458_v41 = vsel %vm238_vm0, %v1384_v42, 0.0 }
 0x3f8   :  { %v2651_v20 = vpop.permute.xlu0 %1246  ;;  %v1207_v35 = vpop.permute.xlu1 %1206  ;;  %v1417_v37 = vadd.f32 %v1416_v18, %v1415_v30  ;;  %v1424_v51 = vadd.f32 %v1423_v23, %v1422_v8  ;;  %v2690_v30 = vld [vmem:[#allocation3 + $0x70] sm:$0xff]   ;;  %v1365_v23 = vunpack.c.h.bf16 %v2682_v1  ;;  %v1412_v56 = vadd.f32 %v1411_v34, %v1410_v60 }
 0x3f9   :  { %v1379_v22 = vmul.f32 %v1347_v6, %v1207_v35  ;;  %v1359_v35 = vunpack.c.h.bf16 %v1933_v55  ;;  %v1368_v2 = vunpack.c.l.bf16 %v2690_v30  ;;  %v1369_v11 = vunpack.c.h.bf16 %v2690_v30 }
 0x3fa   :  { %v1418_v46 = vrot.slane %v1417_v37, 2  ;;  %v1425_v16 = vrot.slane %v1424_v51, 4  ;;  %v1440_v8 = vsel %vm238_vm0, %v1380_v24, 0.0  ;;  %v1386_v9 = vmul.f32 %v1354_v49, %v2651_v20 }
 0x3fb   :  { %v1432_v18 = vsel %vm238_vm0, %v1379_v22, 0.0 }
 0x3fc   :  { %v2654_v21 = vpop.permute.xlu0 %1257  ;;  %v1218_v4 = vpop.permute.xlu1 %1217  ;;  %v1419_v40 = vadd.f32 %v1418_v46, %v1417_v37  ;;  %v1363_v37 = vunpack.c.h.bf16 %v2678_v3  ;;  %v1426_v6 = vadd.f32 %v1425_v16, %v1424_v51  ;;  %v1433_v53 = vadd.f32 %v1432_v18, %v1431_v33 }
 0x3fd   :  { %v1381_v63 = vmul.f32 %v1349_v54, %v1218_v4  ;;  %v1449_v4 = vsel %vm238_vm0, %v1382_v47, 0.0  ;;  %v1548_v54 = vpack.c.bf16 %v1412_v56, %v1412_v56  ;;  %v1388_v22 = vmul.f32 %v1356_v57, %v2654_v21 }
 0x3fe   :  { %v1420_v61 = vrot.slane %v1419_v40, 1  ;;  %v1427_v55 = vrot.slane %v1426_v6, 2  ;;  %v1434_v34 = vrot.slane %v1433_v53, 4 }
 0x3ff   :  { %v1441_v60 = vsel %vm238_vm0, %v1381_v63, 0.0 }
 0x400   :  { %v2656_v52 = vpop.permute.xlu1 %1228  ;;  %v2658_v7 = vpop.permute.xlu0 %1268  ;;  %v1421_v5 = vadd.f32 %v1420_v61, %v1419_v40  ;;  %v1435_v40 = vadd.f32 %v1434_v34, %v1433_v53 }
 0x401   :  { %v1390_v0 = vmul.f32 %v1358_v29, %v2658_v7  ;;  %v1383_v51 = vmul.f32 %v1351_v14, %v2656_v52  ;;  %v1442_v29 = vadd.f32 %v1441_v60, %v1440_v8  ;;  %v1467_v14 = vsel %vm238_vm0, %v1386_v9, 0.0 }
 0x402   :  { %v1549_v42 = vpack.c.bf16 %v1421_v5, %v1421_v5 }
 0x403   :  { %v1485_v20 = vsel %vm238_vm0, %v1390_v0, 0.0  ;;  %v1443_v18 = vrot.slane %v1442_v29, 4  ;;  %v2727_v0 = vunpack.c.l.b16 %v1548_v54 }
 0x404   :  { %v2661_v50 = vpop.permute.xlu1 %1239  ;;  %v1280_v26 = vpop.permute.xlu0 %1279  ;;  %v2733_v9 = vunpack.c.l.b16 %v1549_v42 }
 0x405   :  { %v1385_v59 = vmul.f32 %v1353_v58, %v2661_v50  ;;  %v1392_v49 = vmul.f32 %v1360_v39, %v1280_v26  ;;  %v1428_v50 = vadd.f32 %v1427_v55, %v1426_v6  ;;  %v1476_v58 = vsel %vm238_vm0, %v1388_v22, 0.0 }
 0x406   :  { %v1444_v60 = vadd.f32 %v1443_v18, %v1442_v29 }
 0x407   :  { %v1494_v63 = vsel %vm238_vm0, %v1392_v49, 0.0  ;;  %v1429_v3 = vrot.slane %v1428_v50, 1 }
 0x408   :  { %v1251_v31 = vpop.permute.xlu1 %1250  ;;  %v1291_v32 = vpop.permute.xlu0 %1290 }
 0x409   :  { %v1387_v16 = vmul.f32 %v1355_v25, %v1251_v31  ;;  %v1459_v31 = vsel %vm238_vm0, %v1385_v59, 0.0  ;;  %v1394_v25 = vmul.f32 %v1362_v62, %v1291_v32 }
 0x40a   :  { %v1460_v33 = vadd.f32 %v1459_v31, %v1458_v41  ;;  %v1436_v41 = vrot.slane %v1435_v40, 2 }
 0x40b   :  { %v1468_v26 = vsel %vm238_vm0, %v1387_v16, 0.0  ;;  %v1503_v62 = vsel %vm238_vm0, %v1394_v25, 0.0  ;;  %v2739_v16 = vadd.f32 %v1429_v3, %v1428_v50 }
 0x40c   :  { %v1262_v12 = vpop.permute.xlu1 %1261  ;;  %v1302_v24 = vpop.permute.xlu0 %1301  ;;  %v1469_v32 = vadd.f32 %v1468_v26, %v1467_v14  ;;  %v1461_v54 = vrot.slane %v1460_v33, 4  ;;  %v1437_v49 = vadd.f32 %v1436_v41, %v1435_v40 }
 0x40d   :  { %v1389_v38 = vmul.f32 %v1357_v27, %v1262_v12  ;;  %v1396_v53 = vmul.f32 %v1364_v15, %v1302_v24 }
 0x40e   :  { %v1470_v59 = vrot.slane %v1469_v32, 4 }
 0x40f   :  { %v1477_v27 = vsel %vm238_vm0, %v1389_v38, 0.0  ;;  %v1512_v24 = vsel %vm238_vm0, %v1396_v53, 0.0 }
 0x410   :  { %v1273_v45 = vpop.permute.xlu1 %1272  ;;  %v1478_v39 = vadd.f32 %v1477_v27, %v1476_v58  ;;  %v1313_v56 = vpop.permute.xlu0 %1312  ;;  %v1445_v27 = vrot.slane %v1444_v60, 2 }
 0x411   :  { %v1391_v46 = vmul.f32 %v1359_v35, %v1273_v45  ;;  %v1450_v35 = vsel %vm238_vm0, %v1383_v51, 0.0  ;;  %v1398_v15 = vmul.f32 %v1366_v13, %v1313_v56 }
 0x412   :  { %v1451_v12 = vadd.f32 %v1450_v35, %v1449_v4  ;;  %v1479_v38 = vrot.slane %v1478_v39, 4  ;;  %v1462_v35 = vadd.f32 %v1461_v54, %v1460_v33  ;;  %v1446_v42 = vadd.f32 %v1445_v27, %v1444_v60 }
 0x413   :  { %v1486_v7 = vsel %vm238_vm0, %v1391_v46, 0.0  ;;  %v1521_v50 = vsel %vm238_vm0, %v1398_v15, 0.0 }
 0x414   :  { %v1284_v52 = vpop.permute.xlu1 %1283  ;;  %v1487_v21 = vadd.f32 %v1486_v7, %v1485_v20  ;;  %v1480_v7 = vadd.f32 %v1479_v38, %v1478_v39  ;;  %v1324_v29 = vpop.permute.xlu0 %1323  ;;  %v1463_v44 = vrot.slane %v1462_v35, 2 }
 0x415   :  { %v1393_v57 = vmul.f32 %v1361_v19, %v1284_v52  ;;  %v1400_v26 = vmul.f32 %v1368_v2, %v1324_v29 }
 0x416   :  { %v1488_v6 = vrot.slane %v1487_v21, 4  ;;  %v1481_v25 = vrot.slane %v1480_v7, 2 }
 0x417   :  { %v1495_v47 = vsel %vm238_vm0, %v1393_v57, 0.0  ;;  %v1471_v57 = vadd.f32 %v1470_v59, %v1469_v32 }
 0x418   :  { %v1295_v19 = vpop.permute.xlu1 %1294  ;;  %v1496_v8 = vadd.f32 %v1495_v47, %v1494_v63  ;;  %v1489_v55 = vadd.f32 %v1488_v6, %v1487_v21  ;;  %v1438_v47 = vrot.slane %v1437_v49, 1  ;;  %v1335_v33 = vpop.permute.xlu0 %1334  ;;  %v1482_v2 = vadd.f32 %v1481_v25, %v1480_v7 }
 0x419   :  { %v1395_v61 = vmul.f32 %v1363_v37, %v1295_v19  ;;  %v1452_v37 = vrot.slane %v1451_v12, 4  ;;  %v1472_v6 = vrot.slane %v1471_v57, 2  ;;  %v1402_v38 = vmul.f32 %v1370_v36, %v1335_v33 }
 0x41a   :  { %v1497_v45 = vrot.slane %v1496_v8, 4  ;;  %v1490_v21 = vrot.slane %v1489_v55, 2  ;;  %v1483_v15 = vrot.slane %v1482_v2, 1 }
 0x41b   :  { %v1504_v4 = vsel %vm238_vm0, %v1395_v61, 0.0  ;;  %v1473_v59 = vadd.f32 %v1472_v6, %v1471_v57  ;;  %v1539_v36 = vsel %vm238_vm0, %v1402_v38, 0.0 }
 0x41c   :  { %v1505_v51 = vadd.f32 %v1504_v4, %v1503_v62  ;;  %v1306_v46 = vpop.permute.xlu1 %1305  ;;  %v1498_v5 = vadd.f32 %v1497_v45, %v1496_v8  ;;  %v1530_v62 = vsel %vm238_vm0, %v1400_v26, 0.0 }
 0x41d   :  { %v1397_v22 = vmul.f32 %v1365_v23, %v1306_v46  ;;  %v1453_v23 = vadd.f32 %v1452_v37, %v1451_v12  ;;  %v1464_v37 = vadd.f32 %v1463_v44, %v1462_v35  ;;  %v1474_v35 = vrot.slane %v1473_v59, 1 }
 0x41e   :  { %v1506_v34 = vrot.slane %v1505_v51, 4  ;;  %v1499_v58 = vrot.slane %v1498_v5, 2 }
 0x41f   :  { %v1513_v20 = vsel %vm238_vm0, %v1397_v22, 0.0  ;;  %v1454_v19 = vrot.slane %v1453_v23, 2  ;;  %v1465_v10 = vrot.slane %v1464_v37, 1 }
 0x420   :  { %v1507_v52 = vadd.f32 %v1506_v34, %v1505_v51  ;;  %v1514_v14 = vadd.f32 %v1513_v20, %v1512_v24  ;;  %v1317_v1 = vpop.permute.xlu1 %1316  ;;  %v1500_v8 = vadd.f32 %v1499_v58, %v1498_v5  ;;  %v1447_v51 = vrot.slane %v1446_v42, 1 }
 0x421   :  { %v1399_v13 = vmul.f32 %v1367_v48, %v1317_v1  ;;  %v1491_v48 = vadd.f32 %v1490_v21, %v1489_v55  ;;  %v1455_v30 = vadd.f32 %v1454_v19, %v1453_v23  ;;  %v1439_v20 = vadd.f32 %v1438_v47, %v1437_v49 }
 0x422   :  { %v1515_v31 = vrot.slane %v1514_v14, 4  ;;  %v1508_v40 = vrot.slane %v1507_v52, 2  ;;  %v1501_v54 = vrot.slane %v1500_v8, 1  ;;  %v1484_v21 = vadd.f32 %v1483_v15, %v1482_v2 }
 0x423   :  { %v1522_v39 = vsel %vm238_vm0, %v1399_v13, 0.0  ;;  %v1456_v27 = vrot.slane %v1455_v30, 1  ;;  %v1448_v58 = vadd.f32 %v1447_v51, %v1446_v42  ;;  %v1551_v47 = vpack.c.bf16 %v1439_v20, %v1439_v20 }
 0x424   :  { %v1516_v18 = vadd.f32 %v1515_v31, %v1514_v14  ;;  %v1523_v12 = vadd.f32 %v1522_v39, %v1521_v50  ;;  %v1328_v63 = vpop.permute.xlu1 %1327  ;;  %v1509_v32 = vadd.f32 %v1508_v40, %v1507_v52  ;;  %v1550_v50 = vpack.c.bf16 %v2739_v16, %v2739_v16 }
 0x425   :  { %v1401_v56 = vmul.f32 %v1369_v11, %v1328_v63  ;;  %v1492_v11 = vrot.slane %v1491_v48, 1  ;;  %v1457_v26 = vadd.f32 %v1456_v27, %v1455_v30  ;;  %v1475_v19 = vadd.f32 %v1474_v35, %v1473_v59 }
 0x426   :  { %v1517_v61 = vrot.slane %v1516_v18, 2  ;;  %v1524_v3 = vrot.slane %v1523_v12, 4  ;;  %v1510_v5 = vrot.slane %v1509_v32, 1  ;;  %v1556_v44 = vpack.c.bf16 %v1484_v21, %v1484_v21 }
 0x427   :  { %v1531_v53 = vsel %vm238_vm0, %v1401_v56, 0.0  ;;  %v1493_v52 = vadd.f32 %v1492_v11, %v1491_v48  ;;  %v1594_v56 = vunpack.c.l.b16 %v1550_v50  ;;  %v1552_v6 = vpack.c.bf16 %v1448_v58, %v1448_v58 }
 0x428   :  { %v1518_v45 = vadd.f32 %v1517_v61, %v1516_v18  ;;  %v1525_v4 = vadd.f32 %v1524_v3, %v1523_v12  ;;  %v1532_v41 = vadd.f32 %v1531_v53, %v1530_v62  ;;  %v1339_v60 = vpop.permute.xlu1 %1338  ;;  %v1511_v13 = vadd.f32 %v1510_v5, %v1509_v32 }
 0x429   :  { %v1403_v46 = vmul.f32 %v1371_v43, %v1339_v60  ;;  %v1502_v43 = vadd.f32 %v1501_v54, %v1500_v8  ;;  %v1557_v40 = vpack.c.bf16 %v1493_v52, %v1493_v52  ;;  %v1466_v18 = vadd.f32 %v1465_v10, %v1464_v37 }
 0x42a   :  { %v1526_v55 = vrot.slane %v1525_v4, 2  ;;  %v1533_v22 = vrot.slane %v1532_v41, 4  ;;  %v1519_v24 = vrot.slane %v1518_v45, 1  ;;  %v1559_v48 = vpack.c.bf16 %v1511_v13, %v1511_v13 }
 0x42b   :  { %v1540_v34 = vsel %vm238_vm0, %v1403_v46, 0.0  ;;  %v1558_v12 = vpack.c.bf16 %v1502_v43, %v1502_v43  ;;  %v1553_v16 = vpack.c.bf16 %v1457_v26, %v1457_v26  ;;  %v1601_v42 = vunpack.c.l.b16 %v1557_v40 }
 0x42c   :  { %v1527_v7 = vadd.f32 %v1526_v55, %v1525_v4  ;;  %v1534_v29 = vadd.f32 %v1533_v22, %v1532_v41  ;;  %v1541_v14 = vadd.f32 %v1540_v34, %v1539_v36  ;;  %v1520_v31 = vadd.f32 %v1519_v24, %v1518_v45 }
 0x42d   :  { %v1595_v62 = vunpack.c.l.b16 %v1551_v47  ;;  %v1554_v32 = vpack.c.bf16 %v1466_v18, %v1466_v18  ;;  %v1602_v53 = vunpack.c.l.b16 %v1558_v12  ;;  %v1555_v45 = vpack.c.bf16 %v1475_v19, %v1475_v19 }
 0x42e   :  { %v1528_v1 = vrot.slane %v1527_v7, 1  ;;  %v1535_v23 = vrot.slane %v1534_v29, 2  ;;  %v1542_v57 = vrot.slane %v1541_v14, 4  ;;  %v1560_v8 = vpack.c.bf16 %v1520_v31, %v1520_v31 }
 0x42f   :  { %v1600_v4 = vunpack.c.l.b16 %v1556_v44  ;;  %v1603_v41 = vunpack.c.l.b16 %v1559_v48  ;;  %v1608_v51 = vsel %vm1116_vm4, %v2733_v9, %v2727_v0  ;;  %v1596_v30 = vunpack.c.l.b16 %v1552_v6 }
 0x430   :  { %v1536_v25 = vadd.f32 %v1535_v23, %v1534_v29  ;;  %v1529_v49 = vadd.f32 %v1528_v1, %v1527_v7  ;;  %v1543_v39 = vadd.f32 %v1542_v57, %v1541_v14  ;;  %v1604_v11 = vunpack.c.l.b16 %v1560_v8 }
 0x431   :  { %v1597_v46 = vunpack.c.l.b16 %v1553_v16  ;;  %v1615_v37 = vsel %vm1116_vm4, %v1601_v42, %v1600_v4  ;;  %v1609_v22 = vsel %vm1118_vm5, %v1594_v56, %v1608_v51  ;;  %v1598_v59 = vunpack.c.l.b16 %v1554_v32 }
 0x432   :  { %v1537_v63 = vrot.slane %v1536_v25, 1  ;;  %v1544_v33 = vrot.slane %v1543_v39, 2  ;;  %v1561_v3 = vpack.c.bf16 %v1529_v49, %v1529_v49  ;;  %v1616_v15 = vsel %vm1118_vm5, %v1602_v53, %v1615_v37 }
 0x433   :  { %v1610_v34 = vsel %vm1120_vm6, %v1595_v62, %v1609_v22  ;;  %v1599_v36 = vunpack.c.l.b16 %v1555_v45  ;;  %v1617_v24 = vsel %vm1120_vm6, %v1603_v41, %v1616_v15 }
 0x434   :  { %v1538_v61 = vadd.f32 %v1537_v63, %v1536_v25  ;;  %v1545_v2 = vadd.f32 %v1544_v33, %v1543_v39  ;;  %v1605_v54 = vunpack.c.l.b16 %v1561_v3  ;;  %v1611_v0 = vsel %vm1122_vm7, %v1596_v30, %v1610_v34 }
 0x435   :  { %v1618_v9 = vsel %vm1122_vm7, %v1604_v11, %v1617_v24  ;;  %v1612_v29 = vsel %vm1124_vm8, %v1597_v46, %v1611_v0 }
 0x436   :  { %v1562_v38 = vpack.c.bf16 %v1538_v61, %v1538_v61  ;;  %v1546_v60 = vrot.slane %v1545_v2, 1  ;;  %v1619_v20 = vsel %vm1124_vm8, %v1605_v54, %v1618_v9  ;;  %v1613_v52 = vsel %vm1126_vm9, %v1598_v59, %v1612_v29 }
 0x437   :  { %v1614_v10 = vsel %vm1128_vm11, %v1599_v36, %v1613_v52 }
 0x438   :  { %v1547_v55 = vadd.f32 %v1546_v60, %v1545_v2  ;;  %v1606_v5 = vunpack.c.l.b16 %v1562_v38 }
 0x43a   :  { %v1563_v7 = vpack.c.bf16 %v1547_v55, %v1547_v55  ;;  %v1620_v14 = vsel %vm1126_vm9, %v1606_v5, %v1619_v20 }
 0x43c   :  { %v1607_v27 = vunpack.c.l.b16 %v1563_v7 }
 0x43e   :  { %v1621_v43 = vsel %vm1128_vm11, %v1607_v27, %v1620_v14 }
 0x43f   :  { %v1622_v1 = vpack.c.b16 %v1621_v43, %v1614_v10 }
 0x441   :  { %1846 = vmatmul.mubr.msk.bf16.vlgmr.msra.gmra.mrb[12].mxu1 %vm238_vm0, %v1622_v1 }
 0x442   :  { %2039 = shalt.err (!%p2036_p8)
}
 0x443   :  { %s2040_s21 = scalar_lea.hbm %s2824_s11, 256 }
 0x444   :  { %p2041_p9 = scmp.ne.s32.totalorder %s2824_s11, %s2040_s21  ;;  %p2044_p10 = scmp.lt.u32.totalorder %s2040_s21, %s2824_s11 }
 0x446   :  { %p2046_p11 = pnand %p2044_p10, %p2041_p9 }
 0x448   :  { %2049 = shalt.err (!%p2046_p11)
}
 0x449   :  { %1716 = dma.vmem_to_hbm [thread:$0]  %s1711_s0, 256, %s2824_s11, [#allocation13], %s2088_s2, %s2088_s2, %s2089_s30   ;;  %v573_v50 = vmax.f32 %v2317_v17, 0.0  ;;  %v575_v26 = vmax.f32 %v2331_v28, 0.0 }
 0x44a   :  { %v1773_v23 = vld [vmem:[%s2822_s9] ss:$0 sm:$0xff]  ;;  %s2095_s4 = smov [#allocation11]  }
 0x44b   :  { %s1698_s7 = sshll.u32 %s2095_s4, 4  ;;  %s1699_s7 = int_to_ptr.vmem [resolvable:$true] %s1698_s7 }
 0x44c   :  { %s2050_s9 = scalar_lea.vmem %s1699_s7, 256  ;;  %p2055_p13 = scmp.lt.s32.totalorder %s1699_s7, %s1699_s7 }
 0x44d   :  { %p2051_p12 = scmp.ne.s32.totalorder %s1699_s7, %s2050_s9  ;;  %p2056_p0 = scmp.lt.s32.totalorder %s2050_s9, %s2050_s9 }
 0x44f   :  { %p2057_p1 = por %p2056_p0, %p2055_p13 }
 0x451   :  { %p2058_p2 = pnand %p2057_p1, %p2051_p12 }
 0x514   :  { %v1678_v35 = vpop.f32.mrb[12].mxu1 }
 0x515   :  { %v1679_v21 = vadd.f32 %v1773_v23, %v1678_v35  ;;  %v1847_v13 = vpop.f32.mrb[13].mxu1 }
 0x516   :  { %v1681_v57 = vpop.f32.mrb[14].mxu1 }
 0x517   :  { %v1685_v58 = vmax.f32 %v1679_v21, 0.0  ;;  %v1682_v31 = vadd.f32 %v1773_v23, %v1681_v57  ;;  %v1848_v25 = vpop.f32.mrb[15].mxu1 }
 0x519   :  { %v1687_v40 = vmul.f32 %v1685_v58, %v573_v50  ;;  %v1686_v49 = vmax.f32 %v1682_v31, 0.0 }
 0x51b   :  { %1689 = vst [vmem:[#allocation11] sm:$0xff] %v1687_v40  ;;  %v1688_v39 = vmul.f32 %v1686_v49, %v575_v26 }
 0x51d   :  { %1690 = vst [vmem:[#allocation11 + $0x8] sm:$0xff] %v1688_v39 }
 0x51e   :  { %2061 = shalt.err (!%p2058_p2)
}
 0x51f   :  { %s2062_s29 = scalar_lea.hbm %s2823_s10, 256 }
 0x520   :  { %p2063_p3 = scmp.ne.s32.totalorder %s2823_s10, %s2062_s29  ;;  %p2066_p4 = scmp.lt.u32.totalorder %s2062_s29, %s2823_s10 }
 0x522   :  { %p2068_p5 = pnand %p2066_p4, %p2063_p3 }
 0x524   :  { %2071 = shalt.err (!%p2068_p5)
}
 0x525   :  { %1704 = dma.vmem_to_hbm [thread:$0]  %s1699_s7, 256, %s2823_s10, [#allocation5], %s2088_s2, %s2088_s2, %s2089_s30  }
 0x526   :  { %2078 = dma.done.wait [#allocation5], 256  }
 0x527   :  { %2079 = vsyncadd [#allocation5], 4294967040 }
 0x528   :  { %2080 = dma.done.wait [#allocation13], 256  }
 0x529   :  { %2081 = vsyncadd [#allocation13], 4294967040 }
 0x52a   :  { %1723 = vsyncpa [#allocation4], 1 }
 0x52b   :  { %1724 = vsyncpa [#allocation7], 1 }
 0x52c   :  { %1725 = vsyncpa [#allocation10], 1 }
 0x52d   :  { %1726 = vsyncpa [#allocation5], 1 }
 0x52e   :  { %1727 = vsyncpa [#allocation13], 1 }

// kernel: tpu_custom_call.1
= control target key start
LH: loop header
LB: loop body
LE: loop exit
PB: predicated region body
PF: predicated region fallthrough
CT: control target
= control target key end

     0   :  { %s2813_s0 = inlined_call_operand.hbm [shape: bf16[16,16,40], index: 0, kind: input, shape index: {}]   ;;  %s2814_s1 = inlined_call_operand.hbm [shape: bf16[16,24], index: 1, kind: input, shape index: {}]   ;;  %s2815_s2 = inlined_call_operand.hbm [shape: bf16[40,128], index: 2, kind: input, shape index: {}]   ;;  %s2816_s3 = inlined_call_operand.vmem [shape: f32[1,128], index: 3, kind: input, shape index: {}]   ;;  %s2817_s4 = inlined_call_operand.hbm [shape: bf16[24,256], index: 4, kind: input, shape index: {}]   ;;  %s2818_s5 = inlined_call_operand.vmem [shape: f32[1,256], index: 5, kind: input, shape index: {}]   ;;  %s2819_s6 = inlined_call_operand.vmem [shape: f32[1,128], index: 6, kind: input, shape index: {}]   ;;  %s2820_s7 = inlined_call_operand.<no memory space> [shape: f32[1,1], index: 7, kind: input, shape index: {}]   ;;  %s2821_s8 = inlined_call_operand.vmem [shape: bf16[40,128], index: 8, kind: input, shape index: {}]   ;;  %s2822_s9 = inlined_call_operand.vmem [shape: f32[1,128], index: 9, kind: input, shape index: {}]   ;;  %s2823_s10 = inlined_call_operand.hbm [shape: f32[16,128], index: 10, kind: output, shape index: {0}]   ;;  %s2824_s11 = inlined_call_operand.hbm [shape: f32[16,16], index: 11, kind: output, shape index: {1}]  }
   0x1   :  { %v17_v0 = vstv %s2820_s7 }
   0x2   :  { %18 = vst [vmem:[#allocation2] sm:$0x1] %v17_v0 }
   0x3   :  { %19 = vsyncpa [#allocation4], 0 }
   0x4   :  { %20 = vsyncpa [#allocation7], 0 }
   0x5   :  { %21 = vsyncpa [#allocation10], 0 }
   0x6   :  { %22 = vsyncpa [#allocation5], 0 }
   0x7   :  { %23 = vsyncpa [#allocation13], 0  ;;  %s2082_s19 = smov [#allocation6]   ;;  %s2083_s21 = smov [#allocation3]  }
   0x8   :  { %s41_s20 = sshll.u32 %s2082_s19, 4  ;;  %s29_s22 = sshll.u32 %s2083_s21, 4  ;;  %s42_s20 = int_to_ptr.vmem [resolvable:$true] %s41_s20  ;;  %s2159_s22 = int_to_ptr.vmem [resolvable:$true] %s29_s22 }
   0x9   :  { %s1940_s25 = scalar_lea.hbm %s2814_s1, 128 }
   0xa   :  { %p1941_p0 = scmp.ne.s32.totalorder %s2814_s1, %s1940_s25  ;;  %p1944_p1 = scmp.lt.u32.totalorder %s1940_s25, %s2814_s1 }
   0xc   :  { %p1946_p2 = pnand %p1944_p1, %p1941_p0 }
   0xe   :  { %1949 = shalt.err (!%p1946_p2)
}
   0xf   :  { %s1950_s29 = scalar_lea.vmem %s42_s20, 128  ;;  %p1955_p4 = scmp.lt.s32.totalorder %s42_s20, %s42_s20 }
  0x10   :  { %p1951_p3 = scmp.ne.s32.totalorder %s42_s20, %s1950_s29  ;;  %p1956_p5 = scmp.lt.s32.totalorder %s1950_s29, %s1950_s29 }
  0x12   :  { %p1957_p6 = por %p1956_p5, %p1955_p4 }
  0x14   :  { %p1958_p7 = pnand %p1957_p6, %p1951_p3 }
  0x16   :  { %1961 = shalt.err (!%p1958_p7)
}
  0x17   :  { %s2084_s30 = smov 64   ;;  %s2085_s12 = smov 4  }
  0x18   :  { %47 = dma.hbm_to_vmem [thread:$0]  %s2814_s1, 128, %s42_s20, [#allocation7], %s2084_s30, %s2084_s30, %s2085_s12  }
  0x19   :  { %s1962_s17 = scalar_lea.hbm %s2813_s0, 2048 }
  0x1a   :  { %p1963_p8 = scmp.ne.s32.totalorder %s2813_s0, %s1962_s17  ;;  %p1966_p9 = scmp.lt.u32.totalorder %s1962_s17, %s2813_s0 }
  0x1c   :  { %p1968_p10 = pnand %p1966_p9, %p1963_p8 }
  0x1e   :  { %1971 = shalt.err (!%p1968_p10)
}
  0x1f   :  { %s1972_s24 = scalar_lea.vmem %s2159_s22, 2048  ;;  %p1977_p12 = scmp.lt.s32.totalorder %s2159_s22, %s2159_s22 }
  0x20   :  { %p1973_p11 = scmp.ne.s32.totalorder %s2159_s22, %s1972_s24  ;;  %p1978_p13 = scmp.lt.s32.totalorder %s1972_s24, %s1972_s24 }
  0x22   :  { %p1979_p0 = por %p1978_p13, %p1977_p12 }
  0x24   :  { %p1980_p1 = pnand %p1979_p0, %p1973_p11 }
  0x26   :  { %1983 = shalt.err (!%p1980_p1)
}
  0x27   :  { %35 = dma.hbm_to_vmem [thread:$0]  %s2813_s0, 2048, %s2159_s22, [#allocation4], %s2084_s30, %s2084_s30, %s2085_s12  }
  0x28   :  { %s2086_s25 = smov [#allocation8]   ;;  %s2087_s27 = smov [#allocation9]  }
  0x29   :  { %s53_s26 = sshll.u32 %s2086_s25, 4  ;;  %s67_s7 = sshll.u32 %s2087_s27, 4  ;;  %s54_s26 = int_to_ptr.vmem [resolvable:$true] %s53_s26  ;;  %s2196_s7 = int_to_ptr.vmem [resolvable:$true] %s67_s7 }
  0x2a   :  { %s1984_s13 = scalar_lea.hbm %s2815_s2, 320 }
  0x2b   :  { %p1985_p2 = scmp.ne.s32.totalorder %s2815_s2, %s1984_s13  ;;  %p1988_p3 = scmp.lt.u32.totalorder %s1984_s13, %s2815_s2 }
  0x2d   :  { %p1990_p4 = pnand %p1988_p3, %p1985_p2 }
  0x2f   :  { %1993 = shalt.err (!%p1990_p4)
}
  0x30   :  { %s1994_s0 = scalar_lea.vmem %s54_s26, 320  ;;  %p1999_p6 = scmp.lt.s32.totalorder %s54_s26, %s54_s26 }
  0x31   :  { %p1995_p5 = scmp.ne.s32.totalorder %s54_s26, %s1994_s0  ;;  %p2000_p7 = scmp.lt.s32.totalorder %s1994_s0, %s1994_s0 }
  0x33   :  { %p2001_p8 = por %p2000_p7, %p1999_p6 }
  0x35   :  { %p2002_p9 = pnand %p2001_p8, %p1995_p5 }
  0x37   :  { %2005 = shalt.err (!%p2002_p9)
}
  0x38   :  { %59 = dma.hbm_to_vmem [thread:$0]  %s2815_s2, 320, %s54_s26, [#allocation7], %s2084_s30, %s2084_s30, %s2085_s12  }
  0x39   :  { %s2006_s23 = scalar_lea.hbm %s2817_s4, 384 }
  0x3a   :  { %p2007_p10 = scmp.ne.s32.totalorder %s2817_s4, %s2006_s23  ;;  %p2010_p11 = scmp.lt.u32.totalorder %s2006_s23, %s2817_s4 }
  0x3c   :  { %p2012_p12 = pnand %p2010_p11, %p2007_p10 }
  0x3e   :  { %2015 = shalt.err (!%p2012_p12)
}
  0x3f   :  { %s2016_s27 = scalar_lea.vmem %s2196_s7, 384  ;;  %p2021_p0 = scmp.lt.s32.totalorder %s2196_s7, %s2196_s7 }
  0x40   :  { %p2017_p13 = scmp.ne.s32.totalorder %s2196_s7, %s2016_s27  ;;  %p2022_p1 = scmp.lt.s32.totalorder %s2016_s27, %s2016_s27 }
  0x42   :  { %p2023_p2 = por %p2022_p1, %p2021_p0 }
  0x44   :  { %p2024_p3 = pnand %p2023_p2, %p2017_p13 }
  0x46   :  { %2027 = shalt.err (!%p2024_p3)
}
  0x47   :  { %s2088_s2 = smov 128   ;;  %s2089_s30 = smov 8  }
  0x48   :  { %73 = dma.hbm_to_vmem [thread:$0]  %s2817_s4, 384, %s2196_s7, [#allocation10], %s2088_s2, %s2088_s2, %s2089_s30  }
  0x49   :  { %2072 = dma.done.wait [#allocation4], 2048  }
  0x4a   :  { %2073 = vsyncadd [#allocation4], 4294965248 }
  0x4b   :  { %2074 = dma.done.wait [#allocation7], 448  }
  0x4c   :  { %2075 = vsyncadd [#allocation7], 4294966848 }
  0x4d   :  { %2076 = dma.done.wait [#allocation10], 384  }
  0x4e   :  { %2077 = vsyncadd [#allocation10], 4294966912  ;;  %v2090_v1 = vmov 0   ;;  %v1872_v2 = vld [vmem:[#allocation8] sm:$0xff]   ;;  %v1873_v3 = vld [vmem:[#allocation8 + $0x8] sm:$0xff]   ;;  %vm238_vm0 = vcmask 326656   ;;  %v2825_v33 = vlaneseq }
  0x4f   :  { %1871 = vset.pattern.permute.xlu0 %v2090_v1  ;;  %1801 = vmatprep.subr.bf16.mxu0 %v1872_v2  ;;  %v97_v4 = vld [vmem:[#allocation3] sm:$0xff]   ;;  %v1874_v6 = vld [vmem:[#allocation8 + $0x10] ss:$0 sps:$4 sm:$0xff]   ;;  %vm287_vm1 = vcmask 1043456   ;;  %v99_v7 = vld [vmem:[#allocation3 + $0x8] sm:$0xff]   ;;  %vm519_vm2 = vcmask 195584  }
  0x50   :  { %1849 = vmatprep.subr.bf16.mxu1 %v1872_v2  ;;  %1802 = vmatpush3.bf16.msra.mxu0 %v1872_v2  ;;  %v121_v5 = vld [vmem:[#allocation3 + $0x60] sm:$0xff]   ;;  %v123_v8 = vld [vmem:[#allocation3 + $0x68] sm:$0xff]   ;;  %v289_v9 = vsel %vm287_vm1, %v1874_v6, 0  ;;  %v101_v11 = vld [vmem:[#allocation3 + $0x10] sm:$0xff]   ;;  %v2255_v38 = vshrl.u32 %v2825_v33, 7  ;;  %vm979_vm3 = vcmask 130112  }
  0x51   :  { %1852 = vmatpush3.bf16.msra.mxu1 %v1872_v2  ;;  %1803 = vmatprep.subr.bf16.mxu0 %v1873_v3  ;;  %v1881_v10 = vld [vmem:[#allocation9 + $0x4] ss:$8 sps:$4 sm:$0xff]   ;;  %v125_v12 = vld [vmem:[#allocation3 + $0x70] sm:$0xff]   ;;  %v1879_v14 = vld [vmem:[#allocation9] ss:$8 sps:$4 sm:$0xff]   ;;  %vm1116_vm4 = vcmask 1041409  }
  0x52   :  { %1850 = vmatprep.subr.bf16.mxu1 %v1873_v3  ;;  %1807 = vmatprep.mubr.msk.bf16.mxu0 %vm238_vm0, %v97_v4  ;;  %v486_v13 = vld [vmem:[#allocation9 + $0x10] sm:$0xff]  ;;  %v103_v17 = vld [vmem:[#allocation3 + $0x18] sm:$0xff]   ;;  %v105_v20 = vld [vmem:[#allocation3 + $0x20] sm:$0xff]   ;;  %v2091_v39 = vmov 1966171168   ;;  %v2263_v45 = vsub.s32 0, %v2255_v38 }
  0x53   :  { %1831 = vmatprep.mubr.msk.bf16.mxu1 %vm238_vm0, %v121_v5  ;;  %v1768_v15 = vcombine.high %v486_v13, %v486_v13  ;;  %v1767_v16 = vcombine.low %v486_v13, %v486_v13  ;;  %v127_v18 = vld [vmem:[#allocation3 + $0x78] sm:$0xff]   ;;  %v107_v21 = vld [vmem:[#allocation3 + $0x28] sm:$0xff]   ;;  %v109_v22 = vld [vmem:[#allocation3 + $0x30] sm:$0xff]   ;;  %v589_v40 = vunpack.c.l.s4 %v2091_v39  ;;  %v2269_v49 = vsub.s32 1, %v2255_v38 }
  0x54   :  { %1804 = vmatpush3.bf16.msra.mxu0 %v1873_v3  ;;  %v1890_v23 = vld [vmem:[#allocation6] sm:$0xff]   ;;  %v111_v24 = vld [vmem:[#allocation3 + $0x38] sm:$0xff]   ;;  %v115_v26 = vld [vmem:[#allocation3 + $0x48] sm:$0xff]   ;;  %vm1118_vm5 = vcmask 1042434   ;;  %vm1120_vm6 = vcmask 1043459   ;;  %vm1122_vm7 = vcmask 1044484  }
  0x55   :  { %1853 = vmatpush3.bf16.msra.mxu1 %v1873_v3  ;;  %1855 = vmatprep.subr.msk.bf16.mxu0 %vm287_vm1, %v1874_v6  ;;  %v524_v19 = vsel %vm287_vm1, %v1767_v16, 0  ;;  %v113_v25 = vld [vmem:[#allocation3 + $0x40] sm:$0xff]   ;;  %v117_v27 = vld [vmem:[#allocation3 + $0x50] sm:$0xff]   ;;  %v119_v28 = vld [vmem:[#allocation3 + $0x58] sm:$0xff]   ;;  %v590_v54 = vunpack.c.0.s8 %v589_v40  ;;  %vm1124_vm8 = vcmask 1045509   ;;  %vm1126_vm9 = vcmask 1046534  }
  0x56   :  { %1856 = vmatprep.subr.msk.bf16.mxu1 %vm287_vm1, %v1874_v6  ;;  %v2260_v41 = vld [vmem:[%s2816_s3] ss:$0 sm:$0xff]  ;;  %vm1128_vm11 = vcmask 1047559   ;;  %vm1141_vm12 = vcmask 130048   ;;  %vm2093_vm13 = vmmov 0  }
  0x57   :  { %v487_v48 = vld [vmem:[%s2818_s5] sm:$0x3]  ;;  %v2300_v2 = vsub.s32 %v590_v54, %v2255_v38 }
  0x58   :  { %1806 = vmatpush3.bf16.msra.mxu0 %v289_v9  ;;  %v492_v61 = vrot.slane %v487_v48, %v2263_v45  ;;  %v496_v63 = vrot.slane %v487_v48, %v2269_v49  ;;  %v1771_v16 = vld [vmem:[%s2819_s6] ss:$0 sm:$0xff] }
  0x59   :  { %1854 = vmatpush3.bf16.msra.mxu1 %v289_v9 }
  0x5a   :  { %529 = vmatprep.subr.bf16.mxu1 %v1881_v10 }
  0x5b   :  { %1808 = vmatmul.mubr.msk.bf16.vlgmr.msra.gmra.mrb[0].mxu0 %vm238_vm0, %v99_v7 }
  0x5c   :  { %1832 = vmatmul.mubr.msk.bf16.vlgmr.msra.gmra.mrb[0].mxu1 %vm238_vm0, %v123_v8  ;;  %1811 = vmatprep.mubr.msk.bf16.mxu0 %vm238_vm0, %v101_v11 }
  0x5d   :  { %530 = vmatpush1.bf16.msra.mxu1 %v1879_v14  ;;  %1835 = vmatprep.mubr.msk.bf16.mxu1 %vm238_vm0, %v125_v12 }
  0x5e   :  { %1769 = vmatprep.subr.msk.bf16.mxu1 %vm287_vm1, %v1768_v15 }
  0x61   :  { %532 = vmatpush1.bf16.msra.mxu1 %v524_v19 }
  0x63   :  { %1812 = vmatmul.mubr.msk.bf16.gmra.mrb[4].mxu0 %vm238_vm0, %v103_v17 }
  0x64   :  { %1836 = vmatmul.mubr.msk.bf16.gmra.mrb[4].mxu1 %vm238_vm0, %v127_v18  ;;  %1815 = vmatprep.mubr.msk.bf16.mxu0 %vm238_vm0, %v105_v20 }
  0x65   :  { %561 = vmatprep.mubr.bf16.mxu1 %v2090_v1 }
  0x6b   :  { %1816 = vmatmul.mubr.msk.bf16.gmra.mrb[8].mxu0 %vm238_vm0, %v107_v21 }
  0x6c   :  { %1770 = vmatmul.mubr.msk.bf16.vlgmr.msra.gmra.mrb[8].mxu1 %vm519_vm2, %v1890_v23  ;;  %1819 = vmatprep.mubr.msk.bf16.mxu0 %vm238_vm0, %v109_v22 }
  0x73   :  { %1820 = vmatmul.mubr.msk.bf16.gmra.mrb[12].mxu0 %vm238_vm0, %v111_v24 }
  0x74   :  { %1823 = vmatprep.mubr.msk.bf16.mxu0 %vm238_vm0, %v113_v25 }
  0x7b   :  { %1824 = vmatmul.mubr.msk.bf16.gmra.mrb[16].mxu0 %vm238_vm0, %v115_v26 }
  0x7c   :  { %1827 = vmatprep.mubr.msk.bf16.mxu0 %vm238_vm0, %v117_v27 }
  0x83   :  { %1828 = vmatmul.mubr.msk.bf16.gmra.mrb[20].mxu0 %vm238_vm0, %v119_v28 }
 0x12e   :  { %v1809_v30 = vpop.f32.mrb[0].mxu0 }
 0x12f   :  { %v1833_v29 = vpop.f32.mrb[0].mxu1  ;;  %v325_v32 = vpop.f32.mrb[1].mxu0  ;;  %v2275_v53 = vadd.f32 %v1809_v30, %v2260_v41 }
 0x130   :  { %v421_v31 = vpop.f32.mrb[1].mxu1  ;;  %v1810_v35 = vpop.f32.mrb[2].mxu0  ;;  %v2272_v51 = vadd.f32 %v1833_v29, %v2260_v41  ;;  %v2284_v58 = vadd.f32 %v2260_v41, %v325_v32 }
 0x131   :  { %v1834_v34 = vpop.f32.mrb[2].mxu1  ;;  %v328_v37 = vpop.f32.mrb[3].mxu0  ;;  %v2278_v56 = vadd.f32 %v2260_v41, %v421_v31  ;;  %v2287_v59 = vadd.f32 %v1810_v35, %v2260_v41  ;;  %v454_v1 = vmax.f32 %v2275_v53, 0.0 }
 0x132   :  { %v424_v36 = vpop.f32.mrb[3].mxu1  ;;  %v2281_v57 = vadd.f32 %v1834_v34, %v2260_v41  ;;  %v2294_v62 = vadd.f32 %v2260_v41, %v328_v37  ;;  %v452_v5 = vmax.f32 %v2284_v58, 0.0 }
 0x133   :  { %v2290_v60 = vadd.f32 %v2260_v41, %v424_v36  ;;  %v476_v3 = vmax.f32 %v2278_v56, 0.0  ;;  %v455_v6 = vmax.f32 %v2287_v59, 0.0 }
 0x134   :  { %v453_v11 = vmax.f32 %v2294_v62, 0.0 }
 0x135   :  { %v477_v9 = vmax.f32 %v2290_v60, 0.0 }
 0x136   :  { %v1813_v43 = vpop.f32.mrb[4].mxu0 }
 0x137   :  { %v1837_v42 = vpop.f32.mrb[4].mxu1  ;;  %v341_v46 = vpop.f32.mrb[5].mxu0  ;;  %v2309_v13 = vadd.f32 %v1813_v43, %v2260_v41 }
 0x138   :  { %v437_v44 = vpop.f32.mrb[5].mxu1  ;;  %v1814_v50 = vpop.f32.mrb[6].mxu0  ;;  %v2320_v19 = vadd.f32 %v2260_v41, %v341_v46  ;;  %v2326_v22 = vadd.f32 %v1837_v42, %v2260_v41 }
 0x139   :  { %v1838_v47 = vpop.f32.mrb[6].mxu1  ;;  %v344_v55 = vpop.f32.mrb[7].mxu0  ;;  %v2312_v15 = vadd.f32 %v2260_v41, %v437_v44  ;;  %v2323_v20 = vadd.f32 %v1814_v50, %v2260_v41  ;;  %v458_v35 = vmax.f32 %v2309_v13, 0.0 }
 0x13a   :  { %v440_v52 = vpop.f32.mrb[7].mxu1  ;;  %v345_v29 = vadd.f32 %v2260_v41, %v344_v55  ;;  %v2339_v32 = vadd.f32 %v1838_v47, %v2260_v41  ;;  %v456_v39 = vmax.f32 %v2320_v19, 0.0 }
 0x13b   :  { %v2329_v23 = vadd.f32 %v2260_v41, %v440_v52  ;;  %v480_v37 = vmax.f32 %v2312_v15, 0.0  ;;  %v459_v40 = vmax.f32 %v2323_v20, 0.0  ;;  %v2828_v15 = vmax.f32 %v2281_v57, 0.0 }
 0x13c   :  { %v457_v50 = vmax.f32 %v345_v29, 0.0  ;;  %v482_v57 = vmax.f32 %v2326_v22, 0.0  ;;  %v1772_v22 = vld [vmem:[#allocation2] ss:$0 sm:$0xff] }
 0x13d   :  { %v481_v48 = vmax.f32 %v2329_v23, 0.0 }
 0x13e   :  { %v1817_v8 = vpop.f32.mrb[8].mxu0 }
 0x13f   :  { %v563_v7 = vpop.f32.mrb[8].mxu1  ;;  %v357_v14 = vpop.f32.mrb[9].mxu0  ;;  %v2335_v30 = vadd.f32 %v1817_v8, %v2260_v41 }
 0x140   :  { %v564_v10 = vadd.f32 %v563_v7, %v492_v61  ;;  %v565_v12 = vpop.f32.mrb[9].mxu1  ;;  %v1818_v21 = vpop.f32.mrb[10].mxu0  ;;  %v358_v31 = vadd.f32 %v2260_v41, %v357_v14 }
 0x141   :  { %v2317_v17 = vadd.f32 %v565_v12, %v496_v63  ;;  %v567_v18 = vpop.f32.mrb[10].mxu1  ;;  %v360_v27 = vpop.f32.mrb[11].mxu0  ;;  %v2346_v42 = vadd.f32 %v1818_v21, %v2260_v41  ;;  %v462_v52 = vmax.f32 %v2335_v30, 0.0 }
 0x142   :  { %v572_v24 = vmax.f32 %v564_v10, 0.0  ;;  %v568_v25 = vadd.f32 %v567_v18, %v492_v61  ;;  %v569_v26 = vpop.f32.mrb[11].mxu1  ;;  %v361_v47 = vadd.f32 %v2260_v41, %v360_v27  ;;  %v460_v54 = vmax.f32 %v358_v31, 0.0 }
 0x143   :  { %v2331_v28 = vadd.f32 %v569_v26, %v496_v63  ;;  %v463_v12 = vmax.f32 %v2346_v42, 0.0 }
 0x144   :  { %v583_v34 = vmul.f32 %v1771_v16, %v572_v24  ;;  %v574_v36 = vmax.f32 %v568_v25, 0.0  ;;  %v461_v25 = vmax.f32 %v361_v47, 0.0 }
 0x146   :  { %v587_v43 = vcombine.high %v583_v34, %v583_v34  ;;  %v594_v44 = vrot.slane %v583_v34, %v2300_v2  ;;  %v584_v46 = vmul.f32 %v1771_v16, %v574_v36  ;;  %v1821_v55 = vpop.f32.mrb[12].mxu0 }
 0x147   :  { %v2357_v8 = vadd.f32 %v1821_v55, %v2260_v41  ;;  %v373_v10 = vpop.f32.mrb[13].mxu0 }
 0x148   :  { %v601_v61 = vrot.slane %v587_v43, %v2300_v2  ;;  %v636_v63 = vcombine.high %v584_v46, %v584_v46  ;;  %v2354_v7 = vrot.slane %v584_v46, %v2300_v2  ;;  %v2361_v14 = vadd.f32 %v2260_v41, %v373_v10  ;;  %v1822_v16 = vpop.f32.mrb[14].mxu0 }
 0x149   :  { %v610_v18 = vrot.slane %v594_v44, %v2300_v2  ;;  %v602_v19 = vcombine.high %v594_v44, %v594_v44  ;;  %v2370_v26 = vadd.f32 %v1822_v16, %v2260_v41  ;;  %v376_v27 = vpop.f32.mrb[15].mxu0 }
 0x14a   :  { %v2365_v21 = vrot.slane %v636_v63, %v2300_v2  ;;  %v651_v24 = vcombine.high %v2354_v7, %v2354_v7  ;;  %v464_v31 = vmax.f32 %v2361_v14, 0.0  ;;  %v377_v43 = vadd.f32 %v2260_v41, %v376_v27 }
 0x14b   :  { %v688_v34 = vrot.slane %v610_v18, %v2263_v45  ;;  %v624_v36 = vrot.slane %v602_v19, %v2300_v2  ;;  %v632_v44 = vcombine.high %v610_v18, %v610_v18  ;;  %v617_v46 = vrot.slane %v601_v61, %v2300_v2 }
 0x14c   :  { %v666_v47 = vrot.slane %v2365_v21, %v2300_v2  ;;  %v659_v42 = vrot.slane %v2354_v7, %v2300_v2 }
 0x14d   :  { %v765_v63 = vmul.f32 %v688_v34, %v452_v5  ;;  %v692_v10 = vrot.slane %v624_v36, %v2263_v45  ;;  %v766_v14 = vmul.f32 %v688_v34, %v453_v11  ;;  %v696_v16 = vrot.slane %v632_v44, %v2263_v45 }
 0x14e   :  { %v704_v19 = vrot.slane %v617_v46, %v2263_v45  ;;  %v634_v18 = vcombine.high %v624_v36, %v624_v36  ;;  %v736_v27 = vrot.slane %v666_v47, %v2263_v45  ;;  %v1825_v33 = vpop.f32.mrb[16].mxu0  ;;  %v603_v5 = vcombine.high %v601_v61, %v601_v61 }
 0x14f   :  { %797 = vadd.xlane.f32.xlu0 %v765_v63  ;;  %v767_v55 = vmul.f32 %v692_v10, %v454_v1  ;;  %v768_v58 = vmul.f32 %v692_v10, %v455_v6  ;;  %v633_v4 = vcombine.high %v617_v46, %v617_v46  ;;  %v2394_v62 = vadd.f32 %v1825_v33, %v2260_v41  ;;  %v389_v11 = vpop.f32.mrb[17].mxu0 }
 0x150   :  { %v769_v34 = vmul.f32 %v696_v16, %v456_v39  ;;  %v770_v44 = vmul.f32 %v696_v16, %v457_v50  ;;  %v773_v0 = vmul.f32 %v704_v19, %v460_v54  ;;  %v2397_v36 = vadd.f32 %v2260_v41, %v389_v11  ;;  %v1826_v63 = vpop.f32.mrb[18].mxu0 }
 0x151   :  { %801 = vadd.xlane.f32.xlu1 %v767_v55  ;;  %v774_v29 = vmul.f32 %v704_v19, %v461_v25  ;;  %v700_v53 = vrot.slane %v634_v18, %v2263_v45  ;;  %v2402_v59 = vmul.f32 %v736_v27, %v476_v3  ;;  %v465_v1 = vmax.f32 %v377_v43, 0.0  ;;  %v392_v6 = vpop.f32.mrb[19].mxu0 }
 0x152   :  { %v401_v33 = vadd.f32 %v1826_v63, %v2260_v41  ;;  %v2407_v39 = vmul.f32 %v736_v27, %v477_v9  ;;  %v631_v50 = vrot.slane %v603_v5, %v2300_v2  ;;  %v470_v54 = vmax.f32 %v2394_v62, 0.0 }
 0x153   :  { %v393_v61 = vadd.f32 %v2260_v41, %v392_v6  ;;  %799 = vadd.xlane.f32.xlu0 %v766_v14  ;;  %v771_v56 = vmul.f32 %v700_v53, %v458_v35  ;;  %v772_v3 = vmul.f32 %v700_v53, %v459_v40  ;;  %v468_v25 = vmax.f32 %v2397_v36, 0.0 }
 0x154   :  { %v708_v43 = vrot.slane %v631_v50, %v2263_v45  ;;  %v712_v60 = vrot.slane %v633_v4, %v2263_v45  ;;  %v652_v9 = vcombine.high %v2365_v21, %v2365_v21  ;;  %v471_v46 = vmax.f32 %v401_v33, 0.0 }
 0x155   :  { %803 = vadd.xlane.f32.xlu1 %v768_v58  ;;  %v682_v55 = vcombine.high %v666_v47, %v666_v47  ;;  %v635_v10 = vcombine.high %v631_v50, %v631_v50  ;;  %v673_v14 = vrot.slane %v651_v24, %v2300_v2  ;;  %v469_v16 = vmax.f32 %v393_v61, 0.0 }
 0x156   :  { %v775_v13 = vmul.f32 %v708_v43, %v462_v52  ;;  %v776_v20 = vmul.f32 %v708_v43, %v463_v12  ;;  %v777_v35 = vmul.f32 %v712_v60, %v464_v31  ;;  %v778_v40 = vmul.f32 %v712_v60, %v465_v1  ;;  %v1829_v4 = vpop.f32.mrb[20].mxu0 }
 0x157   :  { %805 = vadd.xlane.f32.xlu0 %v769_v34  ;;  %v680_v19 = vrot.slane %v652_v9, %v2300_v2  ;;  %v744_v21 = vrot.slane %v682_v55, %v2263_v45  ;;  %v716_v47 = vrot.slane %v635_v10, %v2263_v45  ;;  %v414_v18 = vadd.f32 %v1829_v4, %v2260_v41  ;;  %v405_v24 = vpop.f32.mrb[21].mxu0 }
 0x158   :  { %v724_v30 = vrot.slane %v673_v14, %v2263_v45  ;;  %v683_v52 = vcombine.high %v673_v14, %v673_v14  ;;  %v406_v12 = vadd.f32 %v2260_v41, %v405_v24  ;;  %v1830_v31 = vpop.f32.mrb[22].mxu0  ;;  %v2826_v36 = vmax.f32 %v2357_v8, 0.0 }
 0x159   :  { %807 = vadd.xlane.f32.xlu1 %v770_v44  ;;  %v740_v27 = vrot.slane %v680_v19, %v2263_v45  ;;  %v793_v58 = vmul.f32 %v744_v21, %v480_v37  ;;  %v794_v5 = vmul.f32 %v744_v21, %v481_v48  ;;  %v474_v62 = vmax.f32 %v414_v18, 0.0  ;;  %v408_v34 = vpop.f32.mrb[23].mxu0 }
 0x15a   :  { %v417_v11 = vadd.f32 %v1830_v31, %v2260_v41  ;;  %v779_v2 = vmul.f32 %v716_v47, %v2826_v36  ;;  %v784_v7 = vmul.f32 %v724_v30, %v471_v46  ;;  %v472_v63 = vmax.f32 %v406_v12, 0.0 }
 0x15b   :  { %v409_v44 = vadd.f32 %v2260_v41, %v408_v34  ;;  %813 = vadd.xlane.f32.xlu0 %v773_v0  ;;  %v2827_v53 = vmax.f32 %v2272_v51, 0.0  ;;  %v792_v37 = vmul.f32 %v740_v27, %v2828_v15  ;;  %v783_v48 = vmul.f32 %v724_v30, %v470_v54 }
 0x15c   :  { %v475_v23 = vmax.f32 %v417_v11, 0.0  ;;  %v720_v33 = vrot.slane %v659_v42, %v2263_v45  ;;  %v732_v6 = vrot.slane %v683_v52, %v2263_v45  ;;  %v681_v8 = vcombine.high %v659_v42, %v659_v42 }
 0x15d   :  { %v791_v1 = vmul.f32 %v740_v27, %v2827_v53  ;;  %v473_v50 = vmax.f32 %v409_v44, 0.0  ;;  %815 = vadd.xlane.f32.xlu1 %v774_v29  ;;  %v2829_v61 = vmax.f32 %v2370_v26, 0.0  ;;  %v684_v41 = vcombine.high %v680_v19, %v680_v19 }
 0x15e   :  { %v782_v0 = vmul.f32 %v720_v33, %v469_v16  ;;  %v781_v60 = vmul.f32 %v720_v33, %v468_v25  ;;  %v788_v51 = vmul.f32 %v732_v6, %v475_v23  ;;  %v787_v9 = vmul.f32 %v732_v6, %v474_v62 }
 0x15f   :  { %v780_v43 = vmul.f32 %v716_v47, %v2829_v61  ;;  %v483_v46 = vmax.f32 %v2339_v32, 0.0  ;;  %809 = vadd.xlane.f32.xlu0 %v771_v56  ;;  %v728_v54 = vrot.slane %v681_v8, %v2263_v45  ;;  %v748_v55 = vrot.slane %v684_v41, %v2263_v45 }
 0x160   :  { %v2830_v36 = vlaneseq }
 0x161   :  { %811 = vadd.xlane.f32.xlu1 %v772_v3  ;;  %v786_v29 = vmul.f32 %v728_v54, %v473_v50  ;;  %v785_v10 = vmul.f32 %v728_v54, %v472_v63  ;;  %v795_v14 = vmul.f32 %v748_v55, %v482_v57  ;;  %v796_v26 = vmul.f32 %v748_v55, %v483_v46 }
 0x163   :  { %845 = vadd.xlane.f32.xlu0 %v2402_v59 }
 0x165   :  { %847 = vadd.xlane.f32.xlu1 %v2407_v39 }
 0x167   :  { %817 = vadd.xlane.f32.xlu0 %v775_v13 }
 0x169   :  { %819 = vadd.xlane.f32.xlu1 %v776_v20 }
 0x16b   :  { %821 = vadd.xlane.f32.xlu0 %v777_v35 }
 0x16d   :  { %823 = vadd.xlane.f32.xlu1 %v778_v40 }
 0x16f   :  { %849 = vadd.xlane.f32.xlu0 %v791_v1 }
 0x171   :  { %851 = vadd.xlane.f32.xlu1 %v792_v37 }
 0x173   :  { %853 = vadd.xlane.f32.xlu0 %v793_v58 }
 0x175   :  { %855 = vadd.xlane.f32.xlu1 %v794_v5 }
 0x177   :  { %825 = vadd.xlane.f32.xlu0 %v779_v2  ;;  %v2484_v2 = vand.u32 127, %v2830_v36 }
 0x179   :  { %835 = vadd.xlane.f32.xlu1 %v784_v7  ;;  %v974_v63 = vadd.s32 4294967288, %v2484_v2  ;;  %v2495_v1 = vsub.s32 %v2484_v2, %v2255_v38  ;;  %vm937_vm10 = vcmp.lt.s32.totalorder %v2484_v2, 12 }
 0x17b   :  { %833 = vadd.xlane.f32.xlu0 %v783_v48  ;;  %v2498_v15 = vsub.s32 %v974_v63, %v2255_v38 }
 0x17d   :  { %831 = vadd.xlane.f32.xlu1 %v782_v0 }
 0x17f   :  { %829 = vadd.xlane.f32.xlu0 %v781_v60 }
 0x181   :  { %843 = vadd.xlane.f32.xlu1 %v788_v51 }
 0x183   :  { %841 = vadd.xlane.f32.xlu0 %v787_v9 }
 0x185   :  { %839 = vadd.xlane.f32.xlu1 %v786_v29 }
 0x187   :  { %837 = vadd.xlane.f32.xlu0 %v785_v10 }
 0x189   :  { %827 = vadd.xlane.f32.xlu1 %v780_v43 }
 0x18b   :  { %857 = vadd.xlane.f32.xlu0 %v795_v14 }
 0x18d   :  { %859 = vadd.xlane.f32.xlu1 %v796_v26 }
 0x1a1   :  { %868 = vperm.xlu0 %1871, %v1772_v22  }
 0x1dc   :  { %v798_v32 = vpop.xlane.xlu0 %797 }
 0x1de   :  { %v802_v59 = vpop.xlane.xlu1 %801 }
 0x1e0   :  { %v800_v39 = vpop.xlane.xlu0 %799 }
 0x1e2   :  { %v804_v56 = vpop.xlane.xlu1 %803 }
 0x1e4   :  { %v806_v3 = vpop.xlane.xlu0 %805 }
 0x1e6   :  { %v808_v25 = vpop.xlane.xlu1 %807 }
 0x1e8   :  { %v814_v13 = vpop.xlane.xlu0 %813 }
 0x1ea   :  { %v816_v20 = vpop.xlane.xlu1 %815 }
 0x1ec   :  { %v810_v35 = vpop.xlane.xlu0 %809 }
 0x1ee   :  { %v812_v40 = vpop.xlane.xlu1 %811 }
 0x1f0   :  { %v2457_v16 = vpop.xlane.xlu0 %845 }
 0x1f2   :  { %v2459_v4 = vpop.xlane.xlu1 %847 }
 0x1f4   :  { %v818_v19 = vpop.xlane.xlu0 %817 }
 0x1f6   :  { %v820_v21 = vpop.xlane.xlu1 %819 }
 0x1f8   :  { %v822_v47 = vpop.xlane.xlu0 %821 }
 0x1fa   :  { %v824_v18 = vpop.xlane.xlu1 %823 }
 0x1fc   :  { %v2461_v24 = vpop.xlane.xlu0 %849 }
 0x1fe   :  { %v2463_v30 = vpop.xlane.xlu1 %851 }
 0x200   :  { %v2465_v42 = vpop.xlane.xlu0 %853 }
 0x202   :  { %v2467_v12 = vpop.xlane.xlu1 %855 }
 0x204   :  { %v826_v52 = vpop.xlane.xlu0 %825 }
 0x206   :  { %v2471_v27 = vpop.xlane.xlu1 %835 }
 0x208   :  { %v2469_v31 = vpop.xlane.xlu0 %833 }
 0x20a   :  { %v2477_v62 = vpop.xlane.xlu1 %831 }
 0x20c   :  { %v2473_v58 = vpop.xlane.xlu0 %829 }
 0x20e   :  { %v2481_v34 = vpop.xlane.xlu1 %843 }
 0x210   :  { %v2475_v5 = vpop.xlane.xlu0 %841 }
 0x212   :  { %v2489_v44 = vpop.xlane.xlu1 %839 }
 0x214   :  { %v2479_v11 = vpop.xlane.xlu0 %837 }
 0x216   :  { %v828_v43 = vpop.xlane.xlu1 %827 }
 0x218   :  { %v2486_v7 = vpop.xlane.xlu0 %857 }
 0x220   :  { %v2491_v53 = vpop.permute.xlu0 %868 }
 0x221   :  { %v871_v37 = vadd.f32 %v2491_v53, %v798_v32  ;;  %v872_v23 = vadd.f32 %v2491_v53, %v800_v39  ;;  %v873_v48 = vadd.f32 %v2491_v53, %v802_v59  ;;  %v874_v33 = vadd.f32 %v2491_v53, %v804_v56 }
 0x222   :  { %v875_v6 = vadd.f32 %v2491_v53, %v806_v3  ;;  %v876_v50 = vadd.f32 %v2491_v53, %v808_v25  ;;  %v877_v8 = vadd.f32 %v2491_v53, %v810_v35  ;;  %v878_v61 = vadd.f32 %v2491_v53, %v812_v40 }
 0x223   :  { %v879_v41 = vadd.f32 %v2491_v53, %v814_v13  ;;  %v880_v0 = vadd.f32 %v2491_v53, %v816_v20  ;;  %v881_v60 = vadd.f32 %v2491_v53, %v818_v19  ;;  %v882_v51 = vadd.f32 %v2491_v53, %v820_v21 }
 0x224   :  { %v883_v9 = vadd.f32 %v2491_v53, %v822_v47  ;;  %v884_v57 = vadd.f32 %v2491_v53, %v824_v18  ;;  %v885_v46 = vadd.f32 %v2491_v53, %v826_v52  ;;  %v886_v54 = vadd.f32 %v2491_v53, %v828_v43 }
 0x225   :  { %v903_v55 = vmax.f32 %v871_v37, 0.0  ;;  %v904_v29 = vmax.f32 %v872_v23, 0.0  ;;  %v905_v10 = vmax.f32 %v873_v48, 0.0  ;;  %v906_v14 = vmax.f32 %v874_v33, 0.0 }
 0x226   :  { %v907_v26 = vmax.f32 %v875_v6, 0.0  ;;  %v908_v22 = vmax.f32 %v876_v50, 0.0  ;;  %v909_v32 = vmax.f32 %v877_v8, 0.0  ;;  %v910_v59 = vmax.f32 %v878_v61, 0.0 }
 0x227   :  { %v911_v39 = vmax.f32 %v879_v41, 0.0  ;;  %v912_v56 = vmax.f32 %v880_v0, 0.0  ;;  %v913_v3 = vmax.f32 %v881_v60, 0.0  ;;  %v914_v25 = vmax.f32 %v882_v51, 0.0 }
 0x228   :  { %v915_v13 = vmax.f32 %v883_v9, 0.0  ;;  %v916_v20 = vmax.f32 %v884_v57, 0.0  ;;  %v917_v35 = vmax.f32 %v885_v46, 0.0  ;;  %v918_v40 = vmax.f32 %v886_v54, 0.0 }
 0x229   :  { %v973_v19 = vrot.slane %v903_v55, %v2495_v1  ;;  %v978_v21 = vrot.slane %v904_v29, %v2498_v15  ;;  %v984_v47 = vrot.slane %v905_v10, %v2495_v1  ;;  %v988_v18 = vrot.slane %v906_v14, %v2498_v15 }
 0x22a   :  { %v993_v52 = vrot.slane %v907_v26, %v2495_v1  ;;  %v997_v36 = vrot.slane %v908_v22, %v2498_v15  ;;  %v1002_v63 = vrot.slane %v909_v32, %v2495_v1  ;;  %v1006_v37 = vrot.slane %v910_v59, %v2498_v15 }
 0x22b   :  { %v980_v23 = vsel %vm979_vm3, %v978_v21, %v973_v19  ;;  %v989_v48 = vsel %vm979_vm3, %v988_v18, %v984_v47  ;;  %v1011_v33 = vrot.slane %v911_v39, %v2495_v1  ;;  %v1015_v6 = vrot.slane %v912_v56, %v2498_v15 }
 0x22c   :  { %v998_v50 = vsel %vm979_vm3, %v997_v36, %v993_v52  ;;  %v1020_v8 = vrot.slane %v913_v3, %v2495_v1  ;;  %v1024_v61 = vrot.slane %v914_v25, %v2498_v15  ;;  %v1029_v43 = vrot.slane %v915_v13, %v2495_v1 }
 0x22d   :  { %v1033_v41 = vrot.slane %v916_v20, %v2498_v15  ;;  %v1038_v0 = vrot.slane %v917_v35, %v2495_v1  ;;  %v1007_v60 = vsel %vm979_vm3, %v1006_v37, %v1002_v63  ;;  %v1016_v51 = vsel %vm979_vm3, %v1015_v6, %v1011_v33 }
 0x22e   :  { %v1042_v9 = vrot.slane %v918_v40, %v2498_v15  ;;  %v1117_v57 = vsel %vm1116_vm4, %v989_v48, %v980_v23  ;;  %v1025_v46 = vsel %vm979_vm3, %v1024_v61, %v1020_v8  ;;  %v887_v29 = vadd.f32 %v2491_v53, %v2473_v58  ;;  %v860_v40 = vpop.xlane.xlu1 %859 }
 0x22f   :  { %v1034_v54 = vsel %vm979_vm3, %v1033_v41, %v1029_v43  ;;  %v1119_v55 = vsel %vm1118_vm5, %v998_v50, %v1117_v57  ;;  %v888_v26 = vadd.f32 %v2491_v53, %v2477_v62  ;;  %v889_v22 = vadd.f32 %v2491_v53, %v2469_v31 }
 0x230   :  { %v1043_v10 = vsel %vm979_vm3, %v1042_v9, %v1038_v0  ;;  %v1121_v14 = vsel %vm1120_vm6, %v1007_v60, %v1119_v55  ;;  %v890_v59 = vadd.f32 %v2491_v53, %v2471_v27  ;;  %v891_v39 = vadd.f32 %v2491_v53, %v2479_v11 }
 0x231   :  { %v1123_v32 = vsel %vm1122_vm7, %v1016_v51, %v1121_v14  ;;  %v892_v58 = vadd.f32 %v2491_v53, %v2489_v44  ;;  %v893_v3 = vadd.f32 %v2491_v53, %v2475_v5  ;;  %v894_v62 = vadd.f32 %v2491_v53, %v2481_v34 }
 0x232   :  { %v1125_v56 = vsel %vm1124_vm8, %v1025_v46, %v1123_v32  ;;  %v895_v31 = vadd.f32 %v2491_v53, %v2457_v16  ;;  %v896_v27 = vadd.f32 %v2491_v53, %v2459_v4  ;;  %v897_v11 = vadd.f32 %v2491_v53, %v2461_v24 }
 0x233   :  { %v1127_v25 = vsel %vm1126_vm9, %v1034_v54, %v1125_v56  ;;  %v898_v44 = vadd.f32 %v2491_v53, %v2463_v30  ;;  %v899_v5 = vadd.f32 %v2491_v53, %v2465_v42  ;;  %v900_v34 = vadd.f32 %v2491_v53, %v2467_v12 }
 0x234   :  { %v1129_v13 = vsel %vm1128_vm11, %v1043_v10, %v1127_v25  ;;  %v901_v16 = vadd.f32 %v2491_v53, %v2486_v7  ;;  %v919_v20 = vmax.f32 %v887_v29, 0.0  ;;  %v920_v35 = vmax.f32 %v888_v26, 0.0 }
 0x235   :  { %v1139_v4 = vsel %vm937_vm10, %v1129_v13, -inf  ;;  %v921_v24 = vmax.f32 %v889_v22, 0.0  ;;  %v922_v19 = vmax.f32 %v890_v59, 0.0  ;;  %v923_v21 = vmax.f32 %v891_v39, 0.0 }
 0x236   :  { %v1142_v30 = vsel %vm1141_vm12, %v1139_v4, -inf  ;;  %v924_v47 = vmax.f32 %v892_v58, 0.0  ;;  %v902_v42 = vadd.f32 %v2491_v53, %v860_v40  ;;  %v925_v18 = vmax.f32 %v893_v3, 0.0 }
 0x237   :  { %1143 = vmax.xlane.f32.xlu1 %v1142_v30  ;;  %v926_v12 = vmax.f32 %v894_v62, 0.0  ;;  %v927_v52 = vmax.f32 %v895_v31, 0.0  ;;  %v928_v36 = vmax.f32 %v896_v27, 0.0  ;;  %v929_v7 = vmax.f32 %v897_v11, 0.0 }
 0x238   :  { %v930_v63 = vmax.f32 %v898_v44, 0.0  ;;  %v931_v37 = vmax.f32 %v899_v5, 0.0  ;;  %v932_v23 = vmax.f32 %v900_v34, 0.0  ;;  %v1047_v48 = vrot.slane %v919_v20, %v2495_v1 }
 0x239   :  { %v1051_v33 = vrot.slane %v920_v35, %v2498_v15  ;;  %v1056_v6 = vrot.slane %v921_v24, %v2495_v1  ;;  %v933_v50 = vmax.f32 %v901_v16, 0.0  ;;  %v1060_v8 = vrot.slane %v922_v19, %v2498_v15 }
 0x23a   :  { %v1065_v61 = vrot.slane %v923_v21, %v2495_v1  ;;  %v1069_v53 = vrot.slane %v924_v47, %v2498_v15  ;;  %v934_v43 = vmax.f32 %v902_v42, 0.0  ;;  %v1074_v0 = vrot.slane %v925_v18, %v2495_v1 }
 0x23b   :  { %v1052_v41 = vsel %vm979_vm3, %v1051_v33, %v1047_v48  ;;  %v1078_v60 = vrot.slane %v926_v12, %v2498_v15  ;;  %v1061_v51 = vsel %vm979_vm3, %v1060_v8, %v1056_v6  ;;  %v1083_v57 = vrot.slane %v927_v52, %v2495_v1 }
 0x23c   :  { %v1070_v9 = vsel %vm979_vm3, %v1069_v53, %v1065_v61  ;;  %v1087_v46 = vrot.slane %v928_v36, %v2498_v15  ;;  %v1092_v54 = vrot.slane %v929_v7, %v2495_v1  ;;  %v1096_v55 = vrot.slane %v930_v63, %v2498_v15 }
 0x23d   :  { %v1101_v29 = vrot.slane %v931_v37, %v2495_v1  ;;  %v1105_v10 = vrot.slane %v932_v23, %v2498_v15  ;;  %v1130_v14 = vsel %vm1116_vm4, %v1061_v51, %v1052_v41  ;;  %v1079_v26 = vsel %vm979_vm3, %v1078_v60, %v1074_v0 }
 0x23e   :  { %v1110_v22 = vrot.slane %v933_v50, %v2495_v1  ;;  %v1114_v32 = vrot.slane %v934_v43, %v2498_v15  ;;  %v1131_v59 = vsel %vm1118_vm5, %v1070_v9, %v1130_v14  ;;  %v1088_v39 = vsel %vm979_vm3, %v1087_v46, %v1083_v57  ;;  %v1898_v57 = vld [vmem:[%s2821_s8 + $0x8] sm:$0xff]   ;;  %v1899_v46 = vld [vmem:[%s2821_s8 + $0x10] ss:$0 sps:$4 sm:$0xff]  }
 0x23f   :  { %v1132_v58 = vsel %vm1120_vm6, %v1079_v26, %v1131_v59  ;;  %v1097_v56 = vsel %vm979_vm3, %v1096_v55, %v1092_v54  ;;  %v1106_v62 = vsel %vm979_vm3, %v1105_v10, %v1101_v29  ;;  %v1188_v19 = vsub.s32 2, %v2255_v38  ;;  %v1924_v26 = vld [vmem:[#allocation3] sm:$0xff]  }
 0x240   :  { %v1133_v3 = vsel %vm1122_vm7, %v1088_v39, %v1132_v58  ;;  %v1115_v25 = vsel %vm979_vm3, %v1114_v32, %v1110_v22  ;;  %v1199_v18 = vsub.s32 3, %v2255_v38  ;;  %v1210_v36 = vsub.s32 4, %v2255_v38 }
 0x241   :  { %v1134_v31 = vsel %vm1124_vm8, %v1097_v56, %v1133_v3  ;;  %v1221_v37 = vsub.s32 5, %v2255_v38  ;;  %v1232_v48 = vsub.s32 6, %v2255_v38  ;;  %v1243_v8 = vsub.s32 7, %v2255_v38  ;;  %v1925_v3 = vld [vmem:[#allocation3 + $0x8] sm:$0xff]  }
 0x242   :  { %v1135_v1 = vsel %vm1126_vm9, %v1106_v62, %v1134_v31  ;;  %v2092_v9 = vmov 0.0   ;;  %v1642_v54 = vsel %vm287_vm1, %v1899_v46, 0  ;;  %v1341_v22 = vunpack.c.h.bf16 %v1924_v26 }
 0x243   :  { %v1136_v15 = vsel %vm1128_vm11, %v1115_v25, %v1135_v1  ;;  %1839 = vmatprep.subr.bf16.mxu1 %v2092_v9  ;;  %1845 = vmatprep.mubr.msk.bf16.mxu1 %vm2093_vm13, %v2092_v9  ;;  %v1340_v39 = vunpack.c.l.bf16 %v1924_v26  ;;  %v1343_v62 = vunpack.c.h.bf16 %v1925_v3  ;;  %v1342_v1 = vunpack.c.l.bf16 %v1925_v3  ;;  %v2678_v3 = vld [vmem:[#allocation3 + $0x58] sm:$0xff]  }
 0x244   :  { %v1140_v27 = vsel %vm937_vm10, %v1136_v15, -inf }
 0x245   :  { %v1145_v11 = vsel %vm1141_vm12, %v1140_v27, -inf }
 0x246   :  { %1146 = vmax.xlane.f32.xlu1 %v1145_v11 }
 0x2c4   :  { %v1144_v44 = vpop.xlane.xlu1 %1143 }
 0x2c5   :  { %v1148_v13 = vsub.f32 %v1139_v4, %v1144_v44 }
 0x2c7   :  { %v1150_v5 = vmul.f32 1.442695, %v1148_v13 }
 0x2c9   :  { %1916 = vpow2.f32 %v1150_v5 }
 0x2d3   :  { %v1917_v34 = vpop.eup %1916  ;;  %v1147_v16 = vpop.xlane.xlu1 %1146 }
 0x2d4   :  { %v1154_v20 = vsel %vm1141_vm12, %v1917_v34, 0.0  ;;  %v1149_v35 = vsub.f32 %v1140_v27, %v1147_v16 }
 0x2d5   :  { %1155 = vadd.xlane.f32.xlu1 %v1154_v20 }
 0x2d6   :  { %v1152_v24 = vmul.f32 1.442695, %v1149_v35 }
 0x2d8   :  { %1918 = vpow2.f32 %v1152_v24 }
 0x2e2   :  { %v1919_v40 = vpop.eup %1918 }
 0x2e3   :  { %v1157_v30 = vsel %vm1141_vm12, %v1919_v40, 0.0 }
 0x2e4   :  { %1158 = vadd.xlane.f32.xlu1 %v1157_v30 }
 0x362   :  { %v1156_v2 = vpop.xlane.xlu1 %1155 }
 0x363   :  { %1920 = vrcp.f32 %v1156_v2  ;;  %v1926_v2 = vld [vmem:[#allocation3 + $0x10] sm:$0xff]  }
 0x36d   :  { %v1921_v21 = vpop.eup %1920 }
 0x36e   :  { %v1162_v4 = vmul.f32 %v1921_v21, %v1917_v34 }
 0x370   :  { %1691 = vst.msk [vmem:[#allocation12] sm:$0xff] %vm1141_vm12, %v1162_v4  ;;  %v1189_v47 = vrot.slane %v1162_v4, %v1188_v19  ;;  %v1167_v42 = vrot.slane %v1162_v4, %v2263_v45  ;;  %v1200_v52 = vrot.slane %v1162_v4, %v1199_v18  ;;  %v1211_v7 = vrot.slane %v1162_v4, %v1210_v36 }
 0x371   :  { %v1159_v12 = vpop.xlane.xlu1 %1158  ;;  %v1178_v63 = vrot.slane %v1162_v4, %v2269_v49  ;;  %v1222_v23 = vrot.slane %v1162_v4, %v1221_v37  ;;  %v1233_v50 = vrot.slane %v1162_v4, %v1232_v48  ;;  %v1244_v61 = vrot.slane %v1162_v4, %v1243_v8 }
 0x372   :  { %1191 = vbcast.lane.b32.xlu0 %v1189_v47, 256  ;;  %1169 = vbcast.lane.b32.xlu1 %v1167_v42, 256  ;;  %1922 = vrcp.f32 %v1159_v12 }
 0x376   :  { %1202 = vbcast.lane.b32.xlu0 %v1200_v52, 256  ;;  %1173 = vbcast.lane.b32.xlu1 %v1167_v42, 264 }
 0x37a   :  { %1213 = vbcast.lane.b32.xlu0 %v1211_v7, 256  ;;  %1180 = vbcast.lane.b32.xlu1 %v1178_v63, 256 }
 0x37c   :  { %v1923_v33 = vpop.eup %1922 }
 0x37d   :  { %v1163_v6 = vmul.f32 %v1923_v33, %v1919_v40 }
 0x37e   :  { %1224 = vbcast.lane.b32.xlu0 %v1222_v23, 256  ;;  %1184 = vbcast.lane.b32.xlu1 %v1178_v63, 264 }
 0x37f   :  { %1692 = vst.msk [vmem:[#allocation12 + $0x8] sm:$0xff] %vm1141_vm12, %v1163_v6  ;;  %v1255_v53 = vrot.slane %v1163_v6, %v2263_v45  ;;  %v1266_v43 = vrot.slane %v1163_v6, %v2269_v49  ;;  %v1277_v41 = vrot.slane %v1163_v6, %v1188_v19  ;;  %v1288_v0 = vrot.slane %v1163_v6, %v1199_v18  ;;  %v1897_v49 = vld [vmem:[%s2821_s8] sm:$0xff]   ;;  %s2094_s8 = smov [#allocation12]  }
 0x380   :  { %v1299_v38 = vrot.slane %v1163_v6, %v1210_v36  ;;  %v1310_v60 = vrot.slane %v1163_v6, %v1221_v37  ;;  %v1321_v51 = vrot.slane %v1163_v6, %v1232_v48  ;;  %v1332_v45 = vrot.slane %v1163_v6, %v1243_v8  ;;  %1840 = vmatpush3.bf16.msra.mxu1 %v1897_v49  ;;  %v1927_v48 = vld [vmem:[#allocation3 + $0x18] sm:$0xff]   ;;  %s1710_s0 = sshll.u32 %s2094_s8, 4  ;;  %s1711_s0 = int_to_ptr.vmem [resolvable:$true] %s1710_s0 }
 0x381   :  { %1841 = vmatprep.subr.bf16.mxu1 %v2092_v9  ;;  %v1345_v19 = vunpack.c.h.bf16 %v1926_v2  ;;  %v1346_v33 = vunpack.c.l.bf16 %v1927_v48  ;;  %v1347_v6 = vunpack.c.h.bf16 %v1927_v48  ;;  %s2028_s22 = scalar_lea.vmem %s1711_s0, 256  ;;  %p2033_p5 = scmp.lt.s32.totalorder %s1711_s0, %s1711_s0 }
 0x382   :  { %1235 = vbcast.lane.b32.xlu0 %v1233_v50, 256  ;;  %1195 = vbcast.lane.b32.xlu1 %v1189_v47, 264  ;;  %v1344_v47 = vunpack.c.l.bf16 %v1926_v2  ;;  %p2029_p4 = scmp.ne.s32.totalorder %s1711_s0, %s2028_s22  ;;  %p2034_p6 = scmp.lt.s32.totalorder %s2028_s22, %s2028_s22 }
 0x384   :  { %1842 = vmatpush3.bf16.msra.mxu1 %v1898_v57  ;;  %p2035_p7 = por %p2034_p6, %p2033_p5 }
 0x385   :  { %1843 = vmatprep.subr.bf16.mxu1 %v2092_v9  ;;  %v1932_v9 = vld [vmem:[#allocation3 + $0x40] sm:$0xff]  }
 0x386   :  { %1246 = vbcast.lane.b32.xlu0 %v1244_v61, 256  ;;  %1206 = vbcast.lane.b32.xlu1 %v1200_v52, 264  ;;  %v1356_v57 = vunpack.c.l.bf16 %v1932_v9  ;;  %p2036_p8 = pnand %p2035_p7, %p2029_p4 }
 0x388   :  { %1844 = vmatpush3.bf16.msra.mxu1 %v1642_v54 }
 0x38a   :  { %1217 = vbcast.lane.b32.xlu1 %v1211_v7, 264  ;;  %1257 = vbcast.lane.b32.xlu0 %v1255_v53, 256 }
 0x38e   :  { %1228 = vbcast.lane.b32.xlu1 %v1222_v23, 264  ;;  %1268 = vbcast.lane.b32.xlu0 %v1266_v43, 256 }
 0x392   :  { %1239 = vbcast.lane.b32.xlu1 %v1233_v50, 264  ;;  %1279 = vbcast.lane.b32.xlu0 %v1277_v41, 256 }
 0x396   :  { %1250 = vbcast.lane.b32.xlu1 %v1244_v61, 264  ;;  %1290 = vbcast.lane.b32.xlu0 %v1288_v0, 256  ;;  %v1928_v61 = vld [vmem:[#allocation3 + $0x20] sm:$0xff]  }
 0x397   :  { %v1349_v54 = vunpack.c.h.bf16 %v1928_v61 }
 0x39a   :  { %1261 = vbcast.lane.b32.xlu1 %v1255_v53, 264  ;;  %1301 = vbcast.lane.b32.xlu0 %v1299_v38, 256  ;;  %v1348_v53 = vunpack.c.l.bf16 %v1928_v61 }
 0x39e   :  { %1272 = vbcast.lane.b32.xlu1 %v1266_v43, 264  ;;  %1312 = vbcast.lane.b32.xlu0 %v1310_v60, 256  ;;  %v2664_v43 = vld [vmem:[#allocation3 + $0x28] sm:$0xff]  }
 0x3a2   :  { %1283 = vbcast.lane.b32.xlu1 %v1277_v41, 264  ;;  %1323 = vbcast.lane.b32.xlu0 %v1321_v51, 256  ;;  %v1350_v41 = vunpack.c.l.bf16 %v2664_v43 }
 0x3a6   :  { %1294 = vbcast.lane.b32.xlu1 %v1288_v0, 264  ;;  %1334 = vbcast.lane.b32.xlu0 %v1332_v45, 256  ;;  %v2667_v0 = vld [vmem:[#allocation3 + $0x30] sm:$0xff]  }
 0x3aa   :  { %1305 = vbcast.lane.b32.xlu1 %v1299_v38, 264  ;;  %v1352_v38 = vunpack.c.l.bf16 %v2667_v0 }
 0x3ae   :  { %1316 = vbcast.lane.b32.xlu1 %v1310_v60, 264 }
 0x3b2   :  { %1327 = vbcast.lane.b32.xlu1 %v1321_v51, 264 }
 0x3b6   :  { %1338 = vbcast.lane.b32.xlu1 %v1332_v45, 264  ;;  %v2670_v45 = vld [vmem:[#allocation3 + $0x38] sm:$0xff]  }
 0x3b7   :  { %v1354_v49 = vunpack.c.l.bf16 %v2670_v45 }
 0x3e4   :  { %v1192_v55 = vpop.permute.xlu0 %1191  ;;  %v1170_v29 = vpop.permute.xlu1 %1169 }
 0x3e5   :  { %v1372_v25 = vmul.f32 %v1340_v39, %v1170_v29  ;;  %v1376_v36 = vmul.f32 %v1344_v47, %v1192_v55  ;;  %v1933_v55 = vld [vmem:[#allocation3 + $0x48] sm:$0xff]  }
 0x3e6   :  { %v1358_v29 = vunpack.c.l.bf16 %v1933_v55 }
 0x3e7   :  { %v1404_v13 = vsel %vm238_vm0, %v1372_v25, 0.0  ;;  %v1422_v8 = vsel %vm238_vm0, %v1376_v36, 0.0  ;;  %v1355_v25 = vunpack.c.h.bf16 %v2670_v45 }
 0x3e8   :  { %v2640_v10 = vpop.permute.xlu0 %1202  ;;  %v1174_v14 = vpop.permute.xlu1 %1173 }
 0x3e9   :  { %v1373_v58 = vmul.f32 %v1341_v22, %v1174_v14  ;;  %v1351_v14 = vunpack.c.h.bf16 %v2664_v43 }
 0x3eb   :  { %v1405_v15 = vsel %vm238_vm0, %v1373_v58, 0.0  ;;  %v1353_v58 = vunpack.c.h.bf16 %v2667_v0 }
 0x3ec   :  { %v2642_v32 = vpop.permute.xlu0 %1213  ;;  %v1181_v59 = vpop.permute.xlu1 %1180  ;;  %v1406_v5 = vadd.f32 %v1405_v15, %v1404_v13 }
 0x3ed   :  { %v1374_v34 = vmul.f32 %v1342_v1, %v1181_v59  ;;  %v2674_v59 = vld [vmem:[#allocation3 + $0x50] sm:$0xff]   ;;  %v2682_v1 = vld [vmem:[#allocation3 + $0x60] sm:$0xff]  }
 0x3ee   :  { %v1407_v24 = vrot.slane %v1406_v5, 4  ;;  %v1360_v39 = vunpack.c.l.bf16 %v2674_v59  ;;  %v1364_v15 = vunpack.c.l.bf16 %v2682_v1 }
 0x3ef   :  { %v1413_v40 = vsel %vm238_vm0, %v1374_v34, 0.0 }
 0x3f0   :  { %v2644_v56 = vpop.permute.xlu0 %1224  ;;  %v1185_v31 = vpop.permute.xlu1 %1184  ;;  %v1408_v42 = vadd.f32 %v1407_v24, %v1406_v5  ;;  %v1378_v5 = vmul.f32 %v1346_v33, %v2640_v10  ;;  %v1380_v24 = vmul.f32 %v1348_v53, %v2642_v32  ;;  %v2697_v10 = vld [vmem:[#allocation3 + $0x78] sm:$0xff]  }
 0x3f1   :  { %v1375_v27 = vmul.f32 %v1343_v62, %v1185_v31  ;;  %v1362_v62 = vunpack.c.l.bf16 %v2678_v3  ;;  %v1382_v47 = vmul.f32 %v1350_v41, %v2644_v56  ;;  %v1370_v36 = vunpack.c.l.bf16 %v2697_v10 }
 0x3f2   :  { %v1409_v63 = vrot.slane %v1408_v42, 2  ;;  %v1431_v33 = vsel %vm238_vm0, %v1378_v5, 0.0  ;;  %v1371_v43 = vunpack.c.h.bf16 %v2697_v10 }
 0x3f3   :  { %v1414_v16 = vsel %vm238_vm0, %v1375_v27, 0.0  ;;  %v1357_v27 = vunpack.c.h.bf16 %v1932_v9 }
 0x3f4   :  { %v2647_v11 = vpop.permute.xlu0 %1235  ;;  %v1196_v44 = vpop.permute.xlu1 %1195  ;;  %v1415_v30 = vadd.f32 %v1414_v16, %v1413_v40  ;;  %v1410_v60 = vadd.f32 %v1409_v63, %v1408_v42 }
 0x3f5   :  { %v1377_v12 = vmul.f32 %v1345_v19, %v1196_v44  ;;  %v2685_v44 = vld [vmem:[#allocation3 + $0x68] sm:$0xff]   ;;  %v1361_v19 = vunpack.c.h.bf16 %v2674_v59  ;;  %v1384_v42 = vmul.f32 %v1352_v38, %v2647_v11 }
 0x3f6   :  { %v1416_v18 = vrot.slane %v1415_v30, 4  ;;  %v1366_v13 = vunpack.c.l.bf16 %v2685_v44  ;;  %v1411_v34 = vrot.slane %v1410_v60, 1  ;;  %v1367_v48 = vunpack.c.h.bf16 %v2685_v44 }
 0x3f7   :  { %v1423_v23 = vsel %vm238_vm0, %v1377_v12, 0.0  ;;  %v1458_v41 = vsel %vm238_vm0, %v1384_v42, 0.0 }
 0x3f8   :  { %v2651_v20 = vpop.permute.xlu0 %1246  ;;  %v1207_v35 = vpop.permute.xlu1 %1206  ;;  %v1417_v37 = vadd.f32 %v1416_v18, %v1415_v30  ;;  %v1424_v51 = vadd.f32 %v1423_v23, %v1422_v8  ;;  %v2690_v30 = vld [vmem:[#allocation3 + $0x70] sm:$0xff]   ;;  %v1365_v23 = vunpack.c.h.bf16 %v2682_v1  ;;  %v1412_v56 = vadd.f32 %v1411_v34, %v1410_v60 }
 0x3f9   :  { %v1379_v22 = vmul.f32 %v1347_v6, %v1207_v35  ;;  %v1359_v35 = vunpack.c.h.bf16 %v1933_v55  ;;  %v1368_v2 = vunpack.c.l.bf16 %v2690_v30  ;;  %v1369_v11 = vunpack.c.h.bf16 %v2690_v30 }
 0x3fa   :  { %v1418_v46 = vrot.slane %v1417_v37, 2  ;;  %v1425_v16 = vrot.slane %v1424_v51, 4  ;;  %v1440_v8 = vsel %vm238_vm0, %v1380_v24, 0.0  ;;  %v1386_v9 = vmul.f32 %v1354_v49, %v2651_v20 }
 0x3fb   :  { %v1432_v18 = vsel %vm238_vm0, %v1379_v22, 0.0 }
 0x3fc   :  { %v2654_v21 = vpop.permute.xlu0 %1257  ;;  %v1218_v4 = vpop.permute.xlu1 %1217  ;;  %v1419_v40 = vadd.f32 %v1418_v46, %v1417_v37  ;;  %v1363_v37 = vunpack.c.h.bf16 %v2678_v3  ;;  %v1426_v6 = vadd.f32 %v1425_v16, %v1424_v51  ;;  %v1433_v53 = vadd.f32 %v1432_v18, %v1431_v33 }
 0x3fd   :  { %v1381_v63 = vmul.f32 %v1349_v54, %v1218_v4  ;;  %v1449_v4 = vsel %vm238_vm0, %v1382_v47, 0.0  ;;  %v1548_v54 = vpack.c.bf16 %v1412_v56, %v1412_v56  ;;  %v1388_v22 = vmul.f32 %v1356_v57, %v2654_v21 }
 0x3fe   :  { %v1420_v61 = vrot.slane %v1419_v40, 1  ;;  %v1427_v55 = vrot.slane %v1426_v6, 2  ;;  %v1434_v34 = vrot.slane %v1433_v53, 4 }
 0x3ff   :  { %v1441_v60 = vsel %vm238_vm0, %v1381_v63, 0.0 }
 0x400   :  { %v2656_v52 = vpop.permute.xlu1 %1228  ;;  %v2658_v7 = vpop.permute.xlu0 %1268  ;;  %v1421_v5 = vadd.f32 %v1420_v61, %v1419_v40  ;;  %v1435_v40 = vadd.f32 %v1434_v34, %v1433_v53 }
 0x401   :  { %v1390_v0 = vmul.f32 %v1358_v29, %v2658_v7  ;;  %v1383_v51 = vmul.f32 %v1351_v14, %v2656_v52  ;;  %v1442_v29 = vadd.f32 %v1441_v60, %v1440_v8  ;;  %v1467_v14 = vsel %vm238_vm0, %v1386_v9, 0.0 }
 0x402   :  { %v1549_v42 = vpack.c.bf16 %v1421_v5, %v1421_v5 }
 0x403   :  { %v1485_v20 = vsel %vm238_vm0, %v1390_v0, 0.0  ;;  %v1443_v18 = vrot.slane %v1442_v29, 4  ;;  %v2727_v0 = vunpack.c.l.b16 %v1548_v54 }
 0x404   :  { %v2661_v50 = vpop.permute.xlu1 %1239  ;;  %v1280_v26 = vpop.permute.xlu0 %1279  ;;  %v2733_v9 = vunpack.c.l.b16 %v1549_v42 }
 0x405   :  { %v1385_v59 = vmul.f32 %v1353_v58, %v2661_v50  ;;  %v1392_v49 = vmul.f32 %v1360_v39, %v1280_v26  ;;  %v1428_v50 = vadd.f32 %v1427_v55, %v1426_v6  ;;  %v1476_v58 = vsel %vm238_vm0, %v1388_v22, 0.0 }
 0x406   :  { %v1444_v60 = vadd.f32 %v1443_v18, %v1442_v29 }
 0x407   :  { %v1494_v63 = vsel %vm238_vm0, %v1392_v49, 0.0  ;;  %v1429_v3 = vrot.slane %v1428_v50, 1 }
 0x408   :  { %v1251_v31 = vpop.permute.xlu1 %1250  ;;  %v1291_v32 = vpop.permute.xlu0 %1290 }
 0x409   :  { %v1387_v16 = vmul.f32 %v1355_v25, %v1251_v31  ;;  %v1459_v31 = vsel %vm238_vm0, %v1385_v59, 0.0  ;;  %v1394_v25 = vmul.f32 %v1362_v62, %v1291_v32 }
 0x40a   :  { %v1460_v33 = vadd.f32 %v1459_v31, %v1458_v41  ;;  %v1436_v41 = vrot.slane %v1435_v40, 2 }
 0x40b   :  { %v1468_v26 = vsel %vm238_vm0, %v1387_v16, 0.0  ;;  %v1503_v62 = vsel %vm238_vm0, %v1394_v25, 0.0  ;;  %v2739_v16 = vadd.f32 %v1429_v3, %v1428_v50 }
 0x40c   :  { %v1262_v12 = vpop.permute.xlu1 %1261  ;;  %v1302_v24 = vpop.permute.xlu0 %1301  ;;  %v1469_v32 = vadd.f32 %v1468_v26, %v1467_v14  ;;  %v1461_v54 = vrot.slane %v1460_v33, 4  ;;  %v1437_v49 = vadd.f32 %v1436_v41, %v1435_v40 }
 0x40d   :  { %v1389_v38 = vmul.f32 %v1357_v27, %v1262_v12  ;;  %v1396_v53 = vmul.f32 %v1364_v15, %v1302_v24 }
 0x40e   :  { %v1470_v59 = vrot.slane %v1469_v32, 4 }
 0x40f   :  { %v1477_v27 = vsel %vm238_vm0, %v1389_v38, 0.0  ;;  %v1512_v24 = vsel %vm238_vm0, %v1396_v53, 0.0 }
 0x410   :  { %v1273_v45 = vpop.permute.xlu1 %1272  ;;  %v1478_v39 = vadd.f32 %v1477_v27, %v1476_v58  ;;  %v1313_v56 = vpop.permute.xlu0 %1312  ;;  %v1445_v27 = vrot.slane %v1444_v60, 2 }
 0x411   :  { %v1391_v46 = vmul.f32 %v1359_v35, %v1273_v45  ;;  %v1450_v35 = vsel %vm238_vm0, %v1383_v51, 0.0  ;;  %v1398_v15 = vmul.f32 %v1366_v13, %v1313_v56 }
 0x412   :  { %v1451_v12 = vadd.f32 %v1450_v35, %v1449_v4  ;;  %v1479_v38 = vrot.slane %v1478_v39, 4  ;;  %v1462_v35 = vadd.f32 %v1461_v54, %v1460_v33  ;;  %v1446_v42 = vadd.f32 %v1445_v27, %v1444_v60 }
 0x413   :  { %v1486_v7 = vsel %vm238_vm0, %v1391_v46, 0.0  ;;  %v1521_v50 = vsel %vm238_vm0, %v1398_v15, 0.0 }
 0x414   :  { %v1284_v52 = vpop.permute.xlu1 %1283  ;;  %v1487_v21 = vadd.f32 %v1486_v7, %v1485_v20  ;;  %v1480_v7 = vadd.f32 %v1479_v38, %v1478_v39  ;;  %v1324_v29 = vpop.permute.xlu0 %1323  ;;  %v1463_v44 = vrot.slane %v1462_v35, 2 }
 0x415   :  { %v1393_v57 = vmul.f32 %v1361_v19, %v1284_v52  ;;  %v1400_v26 = vmul.f32 %v1368_v2, %v1324_v29 }
 0x416   :  { %v1488_v6 = vrot.slane %v1487_v21, 4  ;;  %v1481_v25 = vrot.slane %v1480_v7, 2 }
 0x417   :  { %v1495_v47 = vsel %vm238_vm0, %v1393_v57, 0.0  ;;  %v1471_v57 = vadd.f32 %v1470_v59, %v1469_v32 }
 0x418   :  { %v1295_v19 = vpop.permute.xlu1 %1294  ;;  %v1496_v8 = vadd.f32 %v1495_v47, %v1494_v63  ;;  %v1489_v55 = vadd.f32 %v1488_v6, %v1487_v21  ;;  %v1438_v47 = vrot.slane %v1437_v49, 1  ;;  %v1335_v33 = vpop.permute.xlu0 %1334  ;;  %v1482_v2 = vadd.f32 %v1481_v25, %v1480_v7 }
 0x419   :  { %v1395_v61 = vmul.f32 %v1363_v37, %v1295_v19  ;;  %v1452_v37 = vrot.slane %v1451_v12, 4  ;;  %v1472_v6 = vrot.slane %v1471_v57, 2  ;;  %v1402_v38 = vmul.f32 %v1370_v36, %v1335_v33 }
 0x41a   :  { %v1497_v45 = vrot.slane %v1496_v8, 4  ;;  %v1490_v21 = vrot.slane %v1489_v55, 2  ;;  %v1483_v15 = vrot.slane %v1482_v2, 1 }
 0x41b   :  { %v1504_v4 = vsel %vm238_vm0, %v1395_v61, 0.0  ;;  %v1473_v59 = vadd.f32 %v1472_v6, %v1471_v57  ;;  %v1539_v36 = vsel %vm238_vm0, %v1402_v38, 0.0 }
 0x41c   :  { %v1505_v51 = vadd.f32 %v1504_v4, %v1503_v62  ;;  %v1306_v46 = vpop.permute.xlu1 %1305  ;;  %v1498_v5 = vadd.f32 %v1497_v45, %v1496_v8  ;;  %v1530_v62 = vsel %vm238_vm0, %v1400_v26, 0.0 }
 0x41d   :  { %v1397_v22 = vmul.f32 %v1365_v23, %v1306_v46  ;;  %v1453_v23 = vadd.f32 %v1452_v37, %v1451_v12  ;;  %v1464_v37 = vadd.f32 %v1463_v44, %v1462_v35  ;;  %v1474_v35 = vrot.slane %v1473_v59, 1 }
 0x41e   :  { %v1506_v34 = vrot.slane %v1505_v51, 4  ;;  %v1499_v58 = vrot.slane %v1498_v5, 2 }
 0x41f   :  { %v1513_v20 = vsel %vm238_vm0, %v1397_v22, 0.0  ;;  %v1454_v19 = vrot.slane %v1453_v23, 2  ;;  %v1465_v10 = vrot.slane %v1464_v37, 1 }
 0x420   :  { %v1507_v52 = vadd.f32 %v1506_v34, %v1505_v51  ;;  %v1514_v14 = vadd.f32 %v1513_v20, %v1512_v24  ;;  %v1317_v1 = vpop.permute.xlu1 %1316  ;;  %v1500_v8 = vadd.f32 %v1499_v58, %v1498_v5  ;;  %v1447_v51 = vrot.slane %v1446_v42, 1 }
 0x421   :  { %v1399_v13 = vmul.f32 %v1367_v48, %v1317_v1  ;;  %v1491_v48 = vadd.f32 %v1490_v21, %v1489_v55  ;;  %v1455_v30 = vadd.f32 %v1454_v19, %v1453_v23  ;;  %v1439_v20 = vadd.f32 %v1438_v47, %v1437_v49 }
 0x422   :  { %v1515_v31 = vrot.slane %v1514_v14, 4  ;;  %v1508_v40 = vrot.slane %v1507_v52, 2  ;;  %v1501_v54 = vrot.slane %v1500_v8, 1  ;;  %v1484_v21 = vadd.f32 %v1483_v15, %v1482_v2 }
 0x423   :  { %v1522_v39 = vsel %vm238_vm0, %v1399_v13, 0.0  ;;  %v1456_v27 = vrot.slane %v1455_v30, 1  ;;  %v1448_v58 = vadd.f32 %v1447_v51, %v1446_v42  ;;  %v1551_v47 = vpack.c.bf16 %v1439_v20, %v1439_v20 }
 0x424   :  { %v1516_v18 = vadd.f32 %v1515_v31, %v1514_v14  ;;  %v1523_v12 = vadd.f32 %v1522_v39, %v1521_v50  ;;  %v1328_v63 = vpop.permute.xlu1 %1327  ;;  %v1509_v32 = vadd.f32 %v1508_v40, %v1507_v52  ;;  %v1550_v50 = vpack.c.bf16 %v2739_v16, %v2739_v16 }
 0x425   :  { %v1401_v56 = vmul.f32 %v1369_v11, %v1328_v63  ;;  %v1492_v11 = vrot.slane %v1491_v48, 1  ;;  %v1457_v26 = vadd.f32 %v1456_v27, %v1455_v30  ;;  %v1475_v19 = vadd.f32 %v1474_v35, %v1473_v59 }
 0x426   :  { %v1517_v61 = vrot.slane %v1516_v18, 2  ;;  %v1524_v3 = vrot.slane %v1523_v12, 4  ;;  %v1510_v5 = vrot.slane %v1509_v32, 1  ;;  %v1556_v44 = vpack.c.bf16 %v1484_v21, %v1484_v21 }
 0x427   :  { %v1531_v53 = vsel %vm238_vm0, %v1401_v56, 0.0  ;;  %v1493_v52 = vadd.f32 %v1492_v11, %v1491_v48  ;;  %v1594_v56 = vunpack.c.l.b16 %v1550_v50  ;;  %v1552_v6 = vpack.c.bf16 %v1448_v58, %v1448_v58 }
 0x428   :  { %v1518_v45 = vadd.f32 %v1517_v61, %v1516_v18  ;;  %v1525_v4 = vadd.f32 %v1524_v3, %v1523_v12  ;;  %v1532_v41 = vadd.f32 %v1531_v53, %v1530_v62  ;;  %v1339_v60 = vpop.permute.xlu1 %1338  ;;  %v1511_v13 = vadd.f32 %v1510_v5, %v1509_v32 }
 0x429   :  { %v1403_v46 = vmul.f32 %v1371_v43, %v1339_v60  ;;  %v1502_v43 = vadd.f32 %v1501_v54, %v1500_v8  ;;  %v1557_v40 = vpack.c.bf16 %v1493_v52, %v1493_v52  ;;  %v1466_v18 = vadd.f32 %v1465_v10, %v1464_v37 }
 0x42a   :  { %v1526_v55 = vrot.slane %v1525_v4, 2  ;;  %v1533_v22 = vrot.slane %v1532_v41, 4  ;;  %v1519_v24 = vrot.slane %v1518_v45, 1  ;;  %v1559_v48 = vpack.c.bf16 %v1511_v13, %v1511_v13 }
 0x42b   :  { %v1540_v34 = vsel %vm238_vm0, %v1403_v46, 0.0  ;;  %v1558_v12 = vpack.c.bf16 %v1502_v43, %v1502_v43  ;;  %v1553_v16 = vpack.c.bf16 %v1457_v26, %v1457_v26  ;;  %v1601_v42 = vunpack.c.l.b16 %v1557_v40 }
 0x42c   :  { %v1527_v7 = vadd.f32 %v1526_v55, %v1525_v4  ;;  %v1534_v29 = vadd.f32 %v1533_v22, %v1532_v41  ;;  %v1541_v14 = vadd.f32 %v1540_v34, %v1539_v36  ;;  %v1520_v31 = vadd.f32 %v1519_v24, %v1518_v45 }
 0x42d   :  { %v1595_v62 = vunpack.c.l.b16 %v1551_v47  ;;  %v1554_v32 = vpack.c.bf16 %v1466_v18, %v1466_v18  ;;  %v1602_v53 = vunpack.c.l.b16 %v1558_v12  ;;  %v1555_v45 = vpack.c.bf16 %v1475_v19, %v1475_v19 }
 0x42e   :  { %v1528_v1 = vrot.slane %v1527_v7, 1  ;;  %v1535_v23 = vrot.slane %v1534_v29, 2  ;;  %v1542_v57 = vrot.slane %v1541_v14, 4  ;;  %v1560_v8 = vpack.c.bf16 %v1520_v31, %v1520_v31 }
 0x42f   :  { %v1600_v4 = vunpack.c.l.b16 %v1556_v44  ;;  %v1603_v41 = vunpack.c.l.b16 %v1559_v48  ;;  %v1608_v51 = vsel %vm1116_vm4, %v2733_v9, %v2727_v0  ;;  %v1596_v30 = vunpack.c.l.b16 %v1552_v6 }
 0x430   :  { %v1536_v25 = vadd.f32 %v1535_v23, %v1534_v29  ;;  %v1529_v49 = vadd.f32 %v1528_v1, %v1527_v7  ;;  %v1543_v39 = vadd.f32 %v1542_v57, %v1541_v14  ;;  %v1604_v11 = vunpack.c.l.b16 %v1560_v8 }
 0x431   :  { %v1597_v46 = vunpack.c.l.b16 %v1553_v16  ;;  %v1615_v37 = vsel %vm1116_vm4, %v1601_v42, %v1600_v4  ;;  %v1609_v22 = vsel %vm1118_vm5, %v1594_v56, %v1608_v51  ;;  %v1598_v59 = vunpack.c.l.b16 %v1554_v32 }
 0x432   :  { %v1537_v63 = vrot.slane %v1536_v25, 1  ;;  %v1544_v33 = vrot.slane %v1543_v39, 2  ;;  %v1561_v3 = vpack.c.bf16 %v1529_v49, %v1529_v49  ;;  %v1616_v15 = vsel %vm1118_vm5, %v1602_v53, %v1615_v37 }
 0x433   :  { %v1610_v34 = vsel %vm1120_vm6, %v1595_v62, %v1609_v22  ;;  %v1599_v36 = vunpack.c.l.b16 %v1555_v45  ;;  %v1617_v24 = vsel %vm1120_vm6, %v1603_v41, %v1616_v15 }
 0x434   :  { %v1538_v61 = vadd.f32 %v1537_v63, %v1536_v25  ;;  %v1545_v2 = vadd.f32 %v1544_v33, %v1543_v39  ;;  %v1605_v54 = vunpack.c.l.b16 %v1561_v3  ;;  %v1611_v0 = vsel %vm1122_vm7, %v1596_v30, %v1610_v34 }
 0x435   :  { %v1618_v9 = vsel %vm1122_vm7, %v1604_v11, %v1617_v24  ;;  %v1612_v29 = vsel %vm1124_vm8, %v1597_v46, %v1611_v0 }
 0x436   :  { %v1562_v38 = vpack.c.bf16 %v1538_v61, %v1538_v61  ;;  %v1546_v60 = vrot.slane %v1545_v2, 1  ;;  %v1619_v20 = vsel %vm1124_vm8, %v1605_v54, %v1618_v9  ;;  %v1613_v52 = vsel %vm1126_vm9, %v1598_v59, %v1612_v29 }
 0x437   :  { %v1614_v10 = vsel %vm1128_vm11, %v1599_v36, %v1613_v52 }
 0x438   :  { %v1547_v55 = vadd.f32 %v1546_v60, %v1545_v2  ;;  %v1606_v5 = vunpack.c.l.b16 %v1562_v38 }
 0x43a   :  { %v1563_v7 = vpack.c.bf16 %v1547_v55, %v1547_v55  ;;  %v1620_v14 = vsel %vm1126_vm9, %v1606_v5, %v1619_v20 }
 0x43c   :  { %v1607_v27 = vunpack.c.l.b16 %v1563_v7 }
 0x43e   :  { %v1621_v43 = vsel %vm1128_vm11, %v1607_v27, %v1620_v14 }
 0x43f   :  { %v1622_v1 = vpack.c.b16 %v1621_v43, %v1614_v10 }
 0x441   :  { %1846 = vmatmul.mubr.msk.bf16.vlgmr.msra.gmra.mrb[12].mxu1 %vm238_vm0, %v1622_v1 }
 0x442   :  { %2039 = shalt.err (!%p2036_p8)
}
 0x443   :  { %s2040_s21 = scalar_lea.hbm %s2824_s11, 256 }
 0x444   :  { %p2041_p9 = scmp.ne.s32.totalorder %s2824_s11, %s2040_s21  ;;  %p2044_p10 = scmp.lt.u32.totalorder %s2040_s21, %s2824_s11 }
 0x446   :  { %p2046_p11 = pnand %p2044_p10, %p2041_p9 }
 0x448   :  { %2049 = shalt.err (!%p2046_p11)
}
 0x449   :  { %1716 = dma.vmem_to_hbm [thread:$0]  %s1711_s0, 256, %s2824_s11, [#allocation13], %s2088_s2, %s2088_s2, %s2089_s30   ;;  %v573_v50 = vmax.f32 %v2317_v17, 0.0  ;;  %v575_v26 = vmax.f32 %v2331_v28, 0.0 }
 0x44a   :  { %v1773_v23 = vld [vmem:[%s2822_s9] ss:$0 sm:$0xff]  ;;  %s2095_s4 = smov [#allocation11]  }
 0x44b   :  { %s1698_s7 = sshll.u32 %s2095_s4, 4  ;;  %s1699_s7 = int_to_ptr.vmem [resolvable:$true] %s1698_s7 }
 0x44c   :  { %s2050_s9 = scalar_lea.vmem %s1699_s7, 256  ;;  %p2055_p13 = scmp.lt.s32.totalorder %s1699_s7, %s1699_s7 }
 0x44d   :  { %p2051_p12 = scmp.ne.s32.totalorder %s1699_s7, %s2050_s9  ;;  %p2056_p0 = scmp.lt.s32.totalorder %s2050_s9, %s2050_s9 }
 0x44f   :  { %p2057_p1 = por %p2056_p0, %p2055_p13 }
 0x451   :  { %p2058_p2 = pnand %p2057_p1, %p2051_p12 }
 0x514   :  { %v1678_v35 = vpop.f32.mrb[12].mxu1 }
 0x515   :  { %v1679_v21 = vadd.f32 %v1773_v23, %v1678_v35  ;;  %v1847_v13 = vpop.f32.mrb[13].mxu1 }
 0x516   :  { %v1681_v57 = vpop.f32.mrb[14].mxu1 }
 0x517   :  { %v1685_v58 = vmax.f32 %v1679_v21, 0.0  ;;  %v1682_v31 = vadd.f32 %v1773_v23, %v1681_v57  ;;  %v1848_v25 = vpop.f32.mrb[15].mxu1 }
 0x519   :  { %v1687_v40 = vmul.f32 %v1685_v58, %v573_v50  ;;  %v1686_v49 = vmax.f32 %v1682_v31, 0.0 }
 0x51b   :  { %1689 = vst [vmem:[#allocation11] sm:$0xff] %v1687_v40  ;;  %v1688_v39 = vmul.f32 %v1686_v49, %v575_v26 }
 0x51d   :  { %1690 = vst [vmem:[#allocation11 + $0x8] sm:$0xff] %v1688_v39 }
 0x51e   :  { %2061 = shalt.err (!%p2058_p2)
}
 0x51f   :  { %s2062_s29 = scalar_lea.hbm %s2823_s10, 256 }
 0x520   :  { %p2063_p3 = scmp.ne.s32.totalorder %s2823_s10, %s2062_s29  ;;  %p2066_p4 = scmp.lt.u32.totalorder %s2062_s29, %s2823_s10 }
 0x522   :  { %p2068_p5 = pnand %p2066_p4, %p2063_p3 }
 0x524   :  { %2071 = shalt.err (!%p2068_p5)
}
 0x525   :  { %1704 = dma.vmem_to_hbm [thread:$0]  %s1699_s7, 256, %s2823_s10, [#allocation5], %s2088_s2, %s2088_s2, %s2089_s30  }
 0x526   :  { %2078 = dma.done.wait [#allocation5], 256  }
 0x527   :  { %2079 = vsyncadd [#allocation5], 4294967040 }
 0x528   :  { %2080 = dma.done.wait [#allocation13], 256  }
 0x529   :  { %2081 = vsyncadd [#allocation13], 4294967040 }
 0x52a   :  { %1723 = vsyncpa [#allocation4], 1 }
 0x52b   :  { %1724 = vsyncpa [#allocation7], 1 }
 0x52c   :  { %1725 = vsyncpa [#allocation10], 1 }
 0x52d   :  { %1726 = vsyncpa [#allocation5], 1 }
 0x52e   :  { %1727 = vsyncpa [#allocation13], 1 }

</bundles_post_ra>
